<compile_context>
chip_gen: v7x
topology: tpu7x:2x2x1
jax: 0.10.0
libtpu: 0.0.40
codegen_flags: <defaults>
</compile_context>

<pallas_src>
import jax
import jax.numpy as jnp
from jax.experimental import pallas as pl
from jax.experimental.pallas import tpu as pltpu

EPS = 1e-5
C1, C2, C3 = 128, 32, 32
CTOT = C1 + C2 + C3


def _bn_block(x, g, b):
    """Training-mode BN (biased variance) for one (C, HW) channel chunk.

    x: (C, HW) activation block; g/b: (C, 1) fp32 affine params.
    Returns the normalized fp32 block.
    """
    xf = x.astype(jnp.float32)
    cnt = jnp.float32(xf.shape[-1])

    mean = jnp.sum(xf, axis=-1, keepdims=True) / cnt        # (C, 1)
    d = xf - mean
    var = jnp.sum(d * d, axis=-1, keepdims=True) / cnt      # centered -> stable

    # fold affine into per-channel scale/shift: y = x*scale + shift
    scale = g * jax.lax.rsqrt(var + EPS)                     # (C, 1)
    shift = b - mean * scale
    return xf * scale + shift


def cat_bn_kernel(x1_ref, x2_ref, x3_ref, g_ref, b_ref, o_ref):
    g = g_ref[...].astype(jnp.float32)                       # (192, 1), fetched once
    b = b_ref[...].astype(jnp.float32)

    # concat is realized purely via static output offsets (no data shuffling)
    o_ref[0:C1, :] = _bn_block(
        x1_ref[...], g[0:C1], b[0:C1]).astype(o_ref.dtype)
    o_ref[C1:C1 + C2, :] = _bn_block(
        x2_ref[...], g[C1:C1 + C2], b[C1:C1 + C2]).astype(o_ref.dtype)
    o_ref[C1 + C2:CTOT, :] = _bn_block(
        x3_ref[...], g[C1 + C2:CTOT], b[C1 + C2:CTOT]).astype(o_ref.dtype)


def cat_batchnorm(x51, x58, x65, gamma, beta):
    """cat([x51, x58, x65], dim=1) followed by BatchNorm2d(192) (training-mode fwd)."""
    n, c1, h, w = x51.shape
    c2, c3 = x58.shape[1], x65.shape[1]
    assert (c1, c2, c3) == (C1, C2, C3), (c1, c2, c3)
    assert gamma.shape == (CTOT,) and beta.shape == (CTOT,)
    # TODO(synk): general N would need 3-D (N, C, HW) blocks with batch-axis
    # stats (and CB re-derivation for v7x VMEM); the module's forward uses N=1.
    assert n == 1, "kernel specialized to batch=1 (as in the source module)"

    hw = h * w
    # free reshapes of N=1 NCHW -> channel-major, lane-dense 2-D views
    x1 = x51.reshape(c1, hw)
    x2 = x58.reshape(c2, hw)
    x3 = x65.reshape(c3, hw)
    g = gamma.reshape(CTOT, 1)
    b = beta.reshape(CTOT, 1)

    elem_bytes = jnp.dtype(x51.dtype).itemsize
    cost = pl.CostEstimate(
        flops=6 * CTOT * hw,                                  # ~2 reduce sweeps + scale/shift
        transcendentals=CTOT,                                 # one rsqrt per channel
        bytes_accessed=2 * CTOT * hw * elem_bytes + 2 * CTOT * 4,
    )

    out = pl.pallas_call(
        cat_bn_kernel,
        out_shape=jax.ShapeDtypeStruct((CTOT, hw), x51.dtype),
        grid=(1,),                                            # single invocation
        in_specs=[
            pl.BlockSpec((c1, hw), lambda i: (0, 0)),
            pl.BlockSpec((c2, hw), lambda i: (0, 0)),
            pl.BlockSpec((c3, hw), lambda i: (0, 0)),
            pl.BlockSpec((CTOT, 1), lambda i: (0, 0)),        # gamma: one DMA total
            pl.BlockSpec((CTOT, 1), lambda i: (0, 0)),        # beta:  one DMA total
        ],
        out_specs=pl.BlockSpec((CTOT, hw), lambda i: (0, 0)),
        compiler_params=pltpu.CompilerParams(
            dimension_semantics=("arbitrary",)),
        cost_estimate=cost,
    )(x1, x2, x3, g, b)

    return out.reshape(n, CTOT, h, w)                         # free reshape back to NCHW


def _reference(x51, x58, x65, gamma, beta):
    x = jnp.concatenate([x51, x58, x65], axis=1).astype(jnp.float32)
    mean = jnp.mean(x, axis=(0, 2, 3), keepdims=True)
    var = jnp.mean((x - mean) ** 2, axis=(0, 2, 3), keepdims=True)
    g = gamma.reshape(1, -1, 1, 1)
    b = beta.reshape(1, -1, 1, 1)
    return (x - mean) * jax.lax.rsqrt(var + EPS) * g + b


if __name__ == "__main__":
    key = jax.random.PRNGKey(0)
    k1, k2, k3, kg, kb = jax.random.split(key, 5)

    # shapes implied by the module's forward
    x51 = jax.random.normal(k1, (1, 128, 28, 28), dtype=jnp.float32)
    x58 = jax.random.normal(k2, (1, 32, 28, 28), dtype=jnp.float32)
    x65 = jax.random.normal(k3, (1, 32, 28, 28), dtype=jnp.float32)

    # deterministic affine parameters for BatchNorm2d(192)
    gamma = 1.0 + 0.1 * jax.random.normal(kg, (192,), dtype=jnp.float32)
    beta = 0.1 * jax.random.normal(kb, (192,), dtype=jnp.float32)

    out = jax.block_until_ready(cat_batchnorm(x51, x58, x65, gamma, beta))

    ref = _reference(x51, x58, x65, gamma, beta)
    assert out.shape == (1, 192, 28, 28), out.shape
    err = float(jnp.max(jnp.abs(out - ref)))
    assert err < 1e-3, err

    print("KERNEL_OK")
</pallas_src>

<mosaic_0001>
module attributes {stable_mosaic.version = 11 : i64} {
  func.func @cat_bn_kernel(%arg0: i32, %arg1: memref<128x784xf32, #tpu.memory_space<vmem>>, %arg2: memref<32x784xf32, #tpu.memory_space<vmem>>, %arg3: memref<32x784xf32, #tpu.memory_space<vmem>>, %arg4: memref<192x1xf32, #tpu.memory_space<vmem>>, %arg5: memref<192x1xf32, #tpu.memory_space<vmem>>, %arg6: memref<192x784xf32, #tpu.memory_space<vmem>>) attributes {dimension_semantics = [#tpu.dimension_semantics<arbitrary>], iteration_bounds = array<i64: 1>, scalar_prefetch = 0 : i64, scratch_operands = 0 : i64, tpu.core_type = #tpu.core_type<tc>, window_params = [{pipeline_mode = #tpu.pipeline_mode<synchronous>, transform_indices = @transform_0, window_bounds = array<i64: 128, 784>}, {pipeline_mode = #tpu.pipeline_mode<synchronous>, transform_indices = @transform_1, window_bounds = array<i64: 32, 784>}, {pipeline_mode = #tpu.pipeline_mode<synchronous>, transform_indices = @transform_2, window_bounds = array<i64: 32, 784>}, {pipeline_mode = #tpu.pipeline_mode<synchronous>, transform_indices = @transform_3, window_bounds = array<i64: 192, 1>}, {pipeline_mode = #tpu.pipeline_mode<synchronous>, transform_indices = @transform_4, window_bounds = array<i64: 192, 1>}, {pipeline_mode = #tpu.pipeline_mode<synchronous>, transform_indices = @transform_5, window_bounds = array<i64: 192, 784>}]} {
    %c0 = arith.constant 0 : index
    %c0_0 = arith.constant 0 : index
    %0 = vector.load %arg4[%c0, %c0_0] : memref<192x1xf32, #tpu.memory_space<vmem>>, vector<192x1xf32>
    %c0_1 = arith.constant 0 : index
    %c0_2 = arith.constant 0 : index
    %1 = vector.load %arg5[%c0_1, %c0_2] : memref<192x1xf32, #tpu.memory_space<vmem>>, vector<192x1xf32>
    %c0_3 = arith.constant 0 : index
    %c0_4 = arith.constant 0 : index
    %2 = vector.load %arg1[%c0_3, %c0_4] : memref<128x784xf32, #tpu.memory_space<vmem>>, vector<128x784xf32>
    %3 = vector.extract_strided_slice %0 {offsets = [0, 0], sizes = [128, 1], strides = [1, 1]} : vector<192x1xf32> to vector<128x1xf32>
    %4 = vector.extract_strided_slice %1 {offsets = [0, 0], sizes = [128, 1], strides = [1, 1]} : vector<192x1xf32> to vector<128x1xf32>
    %cst = arith.constant dense<0.000000e+00> : vector<128xf32>
    %5 = vector.multi_reduction <add>, %2, %cst [1] : vector<128x784xf32> to vector<128xf32>
    %6 = vector.shape_cast %5 : vector<128xf32> to vector<128x1xf32>
    %cst_5 = arith.constant 7.840000e+02 : f32
    %7 = vector.broadcast %cst_5 : f32 to vector<128x1xf32>
    %8 = arith.divf %6, %7 : vector<128x1xf32>
    %9 = vector.broadcast %8 : vector<128x1xf32> to vector<128x784xf32>
    %10 = arith.subf %2, %9 : vector<128x784xf32>
    %11 = arith.mulf %10, %10 : vector<128x784xf32>
    %cst_6 = arith.constant dense<0.000000e+00> : vector<128xf32>
    %12 = vector.multi_reduction <add>, %11, %cst_6 [1] : vector<128x784xf32> to vector<128xf32>
    %13 = vector.shape_cast %12 : vector<128xf32> to vector<128x1xf32>
    %cst_7 = arith.constant 7.840000e+02 : f32
    %14 = vector.broadcast %cst_7 : f32 to vector<128x1xf32>
    %15 = arith.divf %13, %14 : vector<128x1xf32>
    %cst_8 = arith.constant 9.99999974E-6 : f32
    %16 = vector.broadcast %cst_8 : f32 to vector<128x1xf32>
    %17 = arith.addf %15, %16 : vector<128x1xf32>
    %18 = math.rsqrt %17 : vector<128x1xf32>
    %19 = arith.mulf %3, %18 : vector<128x1xf32>
    %20 = arith.mulf %8, %19 : vector<128x1xf32>
    %21 = arith.subf %4, %20 : vector<128x1xf32>
    %22 = vector.broadcast %19 : vector<128x1xf32> to vector<128x784xf32>
    %23 = arith.mulf %2, %22 : vector<128x784xf32>
    %24 = vector.broadcast %21 : vector<128x1xf32> to vector<128x784xf32>
    %25 = arith.addf %23, %24 : vector<128x784xf32>
    %c0_9 = arith.constant 0 : index
    %c0_10 = arith.constant 0 : index
    %26 = vector.load %arg6[%c0_9, %c0_10] : memref<192x784xf32, #tpu.memory_space<vmem>>, vector<128x784xf32>
    tpu.vector_store %arg6[%c0_9, %c0_10], %25 {strides = array<i32>} : memref<192x784xf32, #tpu.memory_space<vmem>>, vector<128x784xf32>,
    %c0_11 = arith.constant 0 : index
    %c0_12 = arith.constant 0 : index
    %27 = vector.load %arg2[%c0_11, %c0_12] : memref<32x784xf32, #tpu.memory_space<vmem>>, vector<32x784xf32>
    %28 = vector.extract_strided_slice %0 {offsets = [128, 0], sizes = [32, 1], strides = [1, 1]} : vector<192x1xf32> to vector<32x1xf32>
    %29 = vector.extract_strided_slice %1 {offsets = [128, 0], sizes = [32, 1], strides = [1, 1]} : vector<192x1xf32> to vector<32x1xf32>
    %cst_13 = arith.constant dense<0.000000e+00> : vector<32xf32>
    %30 = vector.multi_reduction <add>, %27, %cst_13 [1] : vector<32x784xf32> to vector<32xf32>
    %31 = vector.shape_cast %30 : vector<32xf32> to vector<32x1xf32>
    %cst_14 = arith.constant 7.840000e+02 : f32
    %32 = vector.broadcast %cst_14 : f32 to vector<32x1xf32>
    %33 = arith.divf %31, %32 : vector<32x1xf32>
    %34 = vector.broadcast %33 : vector<32x1xf32> to vector<32x784xf32>
    %35 = arith.subf %27, %34 : vector<32x784xf32>
    %36 = arith.mulf %35, %35 : vector<32x784xf32>
    %cst_15 = arith.constant dense<0.000000e+00> : vector<32xf32>
    %37 = vector.multi_reduction <add>, %36, %cst_15 [1] : vector<32x784xf32> to vector<32xf32>
    %38 = vector.shape_cast %37 : vector<32xf32> to vector<32x1xf32>
    %cst_16 = arith.constant 7.840000e+02 : f32
    %39 = vector.broadcast %cst_16 : f32 to vector<32x1xf32>
    %40 = arith.divf %38, %39 : vector<32x1xf32>
    %cst_17 = arith.constant 9.99999974E-6 : f32
    %41 = vector.broadcast %cst_17 : f32 to vector<32x1xf32>
    %42 = arith.addf %40, %41 : vector<32x1xf32>
    %43 = math.rsqrt %42 : vector<32x1xf32>
    %44 = arith.mulf %28, %43 : vector<32x1xf32>
    %45 = arith.mulf %33, %44 : vector<32x1xf32>
    %46 = arith.subf %29, %45 : vector<32x1xf32>
    %47 = vector.broadcast %44 : vector<32x1xf32> to vector<32x784xf32>
    %48 = arith.mulf %27, %47 : vector<32x784xf32>
    %49 = vector.broadcast %46 : vector<32x1xf32> to vector<32x784xf32>
    %50 = arith.addf %48, %49 : vector<32x784xf32>
    %c128 = arith.constant 128 : index
    %c0_18 = arith.constant 0 : index
    %51 = vector.load %arg6[%c128, %c0_18] : memref<192x784xf32, #tpu.memory_space<vmem>>, vector<32x784xf32>
    tpu.vector_store %arg6[%c128, %c0_18], %50 {strides = array<i32>} : memref<192x784xf32, #tpu.memory_space<vmem>>, vector<32x784xf32>,
    %c0_19 = arith.constant 0 : index
    %c0_20 = arith.constant 0 : index
    %52 = vector.load %arg3[%c0_19, %c0_20] : memref<32x784xf32, #tpu.memory_space<vmem>>, vector<32x784xf32>
    %53 = vector.extract_strided_slice %0 {offsets = [160, 0], sizes = [32, 1], strides = [1, 1]} : vector<192x1xf32> to vector<32x1xf32>
    %54 = vector.extract_strided_slice %1 {offsets = [160, 0], sizes = [32, 1], strides = [1, 1]} : vector<192x1xf32> to vector<32x1xf32>
    %cst_21 = arith.constant dense<0.000000e+00> : vector<32xf32>
    %55 = vector.multi_reduction <add>, %52, %cst_21 [1] : vector<32x784xf32> to vector<32xf32>
    %56 = vector.shape_cast %55 : vector<32xf32> to vector<32x1xf32>
    %cst_22 = arith.constant 7.840000e+02 : f32
    %57 = vector.broadcast %cst_22 : f32 to vector<32x1xf32>
    %58 = arith.divf %56, %57 : vector<32x1xf32>
    %59 = vector.broadcast %58 : vector<32x1xf32> to vector<32x784xf32>
    %60 = arith.subf %52, %59 : vector<32x784xf32>
    %61 = arith.mulf %60, %60 : vector<32x784xf32>
    %cst_23 = arith.constant dense<0.000000e+00> : vector<32xf32>
    %62 = vector.multi_reduction <add>, %61, %cst_23 [1] : vector<32x784xf32> to vector<32xf32>
    %63 = vector.shape_cast %62 : vector<32xf32> to vector<32x1xf32>
    %cst_24 = arith.constant 7.840000e+02 : f32
    %64 = vector.broadcast %cst_24 : f32 to vector<32x1xf32>
    %65 = arith.divf %63, %64 : vector<32x1xf32>
    %cst_25 = arith.constant 9.99999974E-6 : f32
    %66 = vector.broadcast %cst_25 : f32 to vector<32x1xf32>
    %67 = arith.addf %65, %66 : vector<32x1xf32>
    %68 = math.rsqrt %67 : vector<32x1xf32>
    %69 = arith.mulf %53, %68 : vector<32x1xf32>
    %70 = arith.mulf %58, %69 : vector<32x1xf32>
    %71 = arith.subf %54, %70 : vector<32x1xf32>
    %72 = vector.broadcast %69 : vector<32x1xf32> to vector<32x784xf32>
    %73 = arith.mulf %52, %72 : vector<32x784xf32>
    %74 = vector.broadcast %71 : vector<32x1xf32> to vector<32x784xf32>
    %75 = arith.addf %73, %74 : vector<32x784xf32>
    %c160 = arith.constant 160 : index
    %c0_26 = arith.constant 0 : index
    %76 = vector.load %arg6[%c160, %c0_26] : memref<192x784xf32, #tpu.memory_space<vmem>>, vector<32x784xf32>
    tpu.vector_store %arg6[%c160, %c0_26], %75 {strides = array<i32>} : memref<192x784xf32, #tpu.memory_space<vmem>>, vector<32x784xf32>,
    return
  }
  func.func @transform_0(%arg0: i32) -> (i32, i32) {
    %c0_i32 = arith.constant 0 : i32
    %c0_i32_0 = arith.constant 0 : i32
    %c0_i32_1 = arith.constant 0 : i32
    return %c0_i32, %c0_i32_0 : i32, i32
  }
  func.func @transform_1(%arg0: i32) -> (i32, i32) {
    %c0_i32 = arith.constant 0 : i32
    %c0_i32_0 = arith.constant 0 : i32
    %c0_i32_1 = arith.constant 0 : i32
    return %c0_i32, %c0_i32_0 : i32, i32
  }
  func.func @transform_2(%arg0: i32) -> (i32, i32) {
    %c0_i32 = arith.constant 0 : i32
    %c0_i32_0 = arith.constant 0 : i32
    %c0_i32_1 = arith.constant 0 : i32
    return %c0_i32, %c0_i32_0 : i32, i32
  }
  func.func @transform_3(%arg0: i32) -> (i32, i32) {
    %c0_i32 = arith.constant 0 : i32
    %c0_i32_0 = arith.constant 0 : i32
    %c0_i32_1 = arith.constant 0 : i32
    return %c0_i32, %c0_i32_0 : i32, i32
  }
  func.func @transform_4(%arg0: i32) -> (i32, i32) {
    %c0_i32 = arith.constant 0 : i32
    %c0_i32_0 = arith.constant 0 : i32
    %c0_i32_1 = arith.constant 0 : i32
    return %c0_i32, %c0_i32_0 : i32, i32
  }
  func.func @transform_5(%arg0: i32) -> (i32, i32) {
    %c0_i32 = arith.constant 0 : i32
    %c0_i32_0 = arith.constant 0 : i32
    %c0_i32_1 = arith.constant 0 : i32
    return %c0_i32, %c0_i32_0 : i32, i32
  }
}

</mosaic_0001>

<bundles_post_ra>
// kernel: tpu_custom_call.1
= control target key start
LH: loop header
LB: loop body
LE: loop exit
PB: predicated region body
PF: predicated region fallthrough
CT: control target
= control target key end

     0   :  { %vm186_vm0 = vcmask 130048   ;;  %s5125_s0 = inlined_call_operand.vmem [shape: f32[128,784], index: 0, kind: input, shape index: {}]   ;;  %s5126_s1 = inlined_call_operand.vmem [shape: f32[32,784], index: 1, kind: input, shape index: {}]   ;;  %s5127_s2 = inlined_call_operand.vmem [shape: f32[32,784], index: 2, kind: input, shape index: {}]   ;;  %s5128_s3 = inlined_call_operand.vmem [shape: f32[192,1], index: 3, kind: input, shape index: {}]   ;;  %s5129_s4 = inlined_call_operand.vmem [shape: f32[192,1], index: 4, kind: input, shape index: {}]   ;;  %s5130_s5 = inlined_call_operand.hbm [shape: f32[192,784], index: 5, kind: output, shape index: {}]  }
   0x1   :  { %v2280_v0 = vld [vmem:[%s5125_s0 + $0x70] sm:$0xff]  ;;  %v2285_v1 = vld [vmem:[%s5125_s0 + $0x78] sm:$0xff]  ;;  %v2290_v2 = vld [vmem:[%s5125_s0 + $0x80] sm:$0xff] }
   0x2   :  { %v200_v3 = vadd.f32 %v2285_v1, %v2280_v0  ;;  %v2297_v4 = vld [vmem:[%s5125_s0 + $0x88] sm:$0xff]  ;;  %v2302_v5 = vld [vmem:[%s5125_s0] sm:$0xff]  ;;  %v2312_v7 = vld [vmem:[%s5125_s0 + $0x90] sm:$0xff] }
   0x3   :  { %v2307_v6 = vld [vmem:[%s5125_s0 + $0x8] sm:$0xff]  ;;  %v2318_v9 = vld [vmem:[%s5125_s0 + $0x10] sm:$0xff]  ;;  %v2325_v11 = vld [vmem:[%s5125_s0 + $0x98] sm:$0xff] }
   0x4   :  { %v201_v8 = vadd.f32 %v200_v3, %v2290_v2  ;;  %v181_v10 = vadd.f32 %v2307_v6, %v2302_v5  ;;  %v2330_v12 = vld [vmem:[%s5125_s0 + $0x18] sm:$0xff]  ;;  %v2335_v13 = vld [vmem:[%s5125_s0 + $0xa8] sm:$0xff]  ;;  %v2340_v14 = vld [vmem:[%s5125_s0 + $0xa0] sm:$0xff] }
   0x5   :  { %v2347_v17 = vld [vmem:[%s5125_s0 + $0xb0] sm:$0xff]  ;;  %v2352_v18 = vld [vmem:[%s5125_s0 + $0xb8] sm:$0xff]  ;;  %v2357_v19 = vld [vmem:[%s5125_s0 + $0x20] sm:$0xff]  ;;  %v205_v28 = vsel %vm186_vm0, %v2340_v14, 0.0 }
   0x6   :  { %v202_v15 = vadd.f32 %v201_v8, %v2297_v4  ;;  %v182_v16 = vadd.f32 %v181_v10, %v2318_v9  ;;  %v2362_v20 = vld [vmem:[%s5125_s0 + $0x30] sm:$0xff]  ;;  %v2367_v21 = vld [vmem:[%s5125_s0 + $0xc0] sm:$0xff]  ;;  %v209_v22 = vadd.f32 %v2347_v17, %v2335_v13  ;;  %v2376_v25 = vld [vmem:[%s5125_s0 + $0x38] sm:$0xff] }
   0x7   :  { %v2381_v26 = vld [vmem:[%s5125_s0 + $0x40] sm:$0xff]  ;;  %v2386_v27 = vld [vmem:[%s5125_s0 + $0x48] sm:$0xff]  ;;  %v2408_v35 = vld [vmem:[%s5125_s0 + $0xd0] sm:$0xff]  ;;  %v187_v39 = vsel %vm186_vm0, %v2362_v20, 0.0 }
   0x8   :  { %v203_v23 = vadd.f32 %v202_v15, %v2312_v7  ;;  %v183_v24 = vadd.f32 %v182_v16, %v2330_v12  ;;  %v2393_v29 = vld [vmem:[%s5125_s0 + $0x28] sm:$0xff]  ;;  %v210_v31 = vadd.f32 %v209_v22, %v2352_v18  ;;  %v191_v32 = vadd.f32 %v2381_v26, %v2376_v25  ;;  %v2413_v36 = vld [vmem:[%s5125_s0 + $0x50] sm:$0xff]  ;;  %v2418_v37 = vld [vmem:[%s5125_s0 + $0xe0] sm:$0xff] }
   0x9   :  { %v2398_v30 = vld [vmem:[%s5125_s0 + $0xc8] sm:$0xff]  ;;  %v2430_v40 = vld [vmem:[%s5125_s0 + $0xd8] sm:$0xff]  ;;  %v2442_v44 = vld [vmem:[%s5125_s0 + $0xf0] sm:$0xff] }
   0xa   :  { %v204_v33 = vadd.f32 %v203_v23, %v2325_v11  ;;  %v184_v34 = vadd.f32 %v183_v24, %v2357_v19  ;;  %v2423_v38 = vld [vmem:[%s5125_s0 + $0xe8] sm:$0xff]  ;;  %v211_v41 = vadd.f32 %v210_v31, %v2367_v21  ;;  %v2436_v42 = vld [vmem:[%s5125_s0 + $0x58] sm:$0xff]  ;;  %v192_v43 = vadd.f32 %v191_v32, %v2386_v27  ;;  %v2450_v48 = vld [vmem:[%s5125_s0 + $0x60] sm:$0xff] }
   0xb   :  { %v218_v45 = vadd.f32 %v2423_v38, %v2418_v37  ;;  %v2455_v49 = vld [vmem:[%s5125_s0 + $0xf8] sm:$0xff]  ;;  %v2466_v52 = vld [vmem:[%s5125_s0 + $0x68] sm:$0xff]  ;;  %v2473_v55 = vld [vmem:[%s5125_s0 + $0x120] sm:$0xff]  ;;  %v214_v58 = vsel %vm186_vm0, %v2430_v40, 0.0 }
   0xc   :  { %v206_v46 = vadd.f32 %v205_v28, %v204_v33  ;;  %v185_v47 = vadd.f32 %v184_v34, %v2393_v29  ;;  %v2460_v50 = vld [vmem:[%s5125_s0 + $0x118] sm:$0xff]  ;;  %v212_v51 = vadd.f32 %v211_v41, %v2398_v30  ;;  %v193_v53 = vadd.f32 %v192_v43, %v2413_v36  ;;  %v2478_v56 = vld [vmem:[%s5125_s0 + $0x128] sm:$0xff]  ;;  %v2485_v59 = vld [vmem:[%s5125_s0 + $0x100] sm:$0xff] }
   0xd   :  { %v219_v54 = vadd.f32 %v218_v45, %v2442_v44  ;;  %v2490_v60 = vld [vmem:[%s5125_s0 + $0x110] sm:$0xff]  ;;  %v227_v62 = vadd.f32 %v2473_v55, %v2460_v50  ;;  %v2510_v15 = vld [vmem:[%s5125_s0 + $0x158] sm:$0xff]  ;;  %v2515_v16 = vld [vmem:[%s5125_s0 + $0x160] sm:$0xff]  ;;  %v196_v22 = vsel %vm186_vm0, %v2466_v52, 0.0 }
   0xe   :  { %207 = vadd.xlane.f32.xlu1 %v206_v46  ;;  %v188_v57 = vadd.f32 %v187_v39, %v185_v47  ;;  %v2495_v61 = vld [vmem:[%s5125_s0 + $0x130] sm:$0xff]  ;;  %v213_v63 = vadd.f32 %v212_v51, %v2408_v35  ;;  %v194_v3 = vadd.f32 %v193_v53, %v2436_v42  ;;  %5200 = vst [vmem:[#allocation6_spill] sm:$0xff] %v2510_v15  ;;  %5201 = vst [vmem:[#allocation7_spill] sm:$0xff] %v2515_v16  ;;  %v2522_v23 = vld [vmem:[%s5125_s0 + $0x108] sm:$0xff] }
   0xf   :  { %v220_v8 = vadd.f32 %v219_v54, %v2455_v49  ;;  %v2505_v10 = vld [vmem:[%s5125_s0 + $0x150] sm:$0xff]  ;;  %v2527_v24 = vld [vmem:[%s5125_s0 + $0x138] sm:$0xff]  ;;  %v228_v28 = vadd.f32 %v227_v62, %v2478_v56  ;;  %v2537_v39 = vld [vmem:[%s5125_s0 + $0x140] sm:$0xff]  ;;  %v223_v46 = vsel %vm186_vm0, %v2490_v60, 0.0 }
  0x10   :  { %5199 = vst [vmem:[#allocation5_spill] sm:$0xff] %v2505_v10  ;;  %189 = vadd.xlane.f32.xlu0 %v188_v57  ;;  %5202 = vst [vmem:[#allocation8_spill] sm:$0xff] %v2527_v24  ;;  %v236_v31 = vadd.f32 %v2510_v15, %v2505_v10  ;;  %v215_v32 = vadd.f32 %v214_v58, %v213_v63  ;;  %v195_v33 = vadd.f32 %v194_v3, %v2450_v48  ;;  %v2542_v41 = vld [vmem:[%s5125_s0 + $0x168] sm:$0xff]  ;;  %v2552_v45 = vld [vmem:[%s5125_s0 + $0x190] sm:$0xff] }
  0x11   :  { %v221_v34 = vadd.f32 %v220_v8, %v2485_v59  ;;  %5203 = vst [vmem:[#allocation9_spill] sm:$0xff] %v2537_v39  ;;  %5204 = vst [vmem:[#allocation10_spill] sm:$0xff] %v2542_v41  ;;  %v2547_v43 = vld [vmem:[%s5125_s0 + $0x188] sm:$0xff]  ;;  %v229_v51 = vadd.f32 %v228_v28, %v2495_v61  ;;  %v2565_v53 = vld [vmem:[%s5125_s0 + $0x170] sm:$0xff] }
  0x12   :  { %5205 = vst [vmem:[#allocation11_spill] sm:$0xff] %v2547_v43  ;;  %5206 = vst [vmem:[#allocation12_spill] sm:$0xff] %v2552_v45  ;;  %v2559_v47 = vld [vmem:[%s5125_s0 + $0x148] sm:$0xff]  ;;  %v237_v54 = vadd.f32 %v236_v31, %v2515_v16  ;;  %v2571_v57 = vld [vmem:[%s5125_s0 + $0x198] sm:$0xff]  ;;  %v245_v58 = vadd.f32 %v2552_v45, %v2547_v43  ;;  %216 = vadd.xlane.f32.xlu1 %v215_v32  ;;  %v197_v62 = vadd.f32 %v196_v22, %v195_v33 }
  0x13   :  { %5207 = vst [vmem:[#allocation13_spill] sm:$0xff] %v2559_v47  ;;  %5208 = vst [vmem:[#allocation14_spill] sm:$0xff] %v2565_v53  ;;  %v222_v63 = vadd.f32 %v221_v34, %v2522_v23  ;;  %v2579_v3 = vld [vmem:[%s5125_s0 + $0x178] sm:$0xff]  ;;  %v2584_v8 = vld [vmem:[%s5125_s0 + $0x1a0] sm:$0xff]  ;;  %v230_v31 = vadd.f32 %v229_v51, %v2527_v24  ;;  %v232_v43 = vsel %vm186_vm0, %v2559_v47, 0.0 }
  0x14   :  { %5209 = vst [vmem:[#allocation15_spill] sm:$0xff] %v2571_v57  ;;  %5210 = vst [vmem:[#allocation16_spill] sm:$0xff] %v2579_v3  ;;  %v2589_v28 = vld [vmem:[%s5125_s0 + $0x1c0] sm:$0xff]  ;;  %v238_v32 = vadd.f32 %v237_v54, %v2542_v41  ;;  %v246_v33 = vadd.f32 %v245_v58, %v2571_v57  ;;  %v2602_v34 = vld [vmem:[%s5125_s0 + $0x1c8] sm:$0xff]  ;;  %198 = vadd.xlane.f32.xlu0 %v197_v62 }
  0x15   :  { %5211 = vst [vmem:[#allocation17_spill] sm:$0xff] %v2584_v8  ;;  %5212 = vst [vmem:[#allocation18_spill] sm:$0xff] %v2589_v28  ;;  %v2595_v22 = vld [vmem:[%s5125_s0 + $0x180] sm:$0xff]  ;;  %v2607_v45 = vld [vmem:[%s5125_s0 + $0x1d0] sm:$0xff]  ;;  %v224_v51 = vadd.f32 %v223_v46, %v222_v63  ;;  %v254_v46 = vadd.f32 %v2602_v34, %v2589_v28  ;;  %v231_v62 = vadd.f32 %v230_v31, %v2537_v39 }
  0x16   :  { %5213 = vst [vmem:[#allocation19_spill] sm:$0xff] %v2595_v22  ;;  %5214 = vst [vmem:[#allocation20_spill] sm:$0xff] %v2602_v34  ;;  %v2614_v54 = vld [vmem:[%s5125_s0 + $0x1a8] sm:$0xff]  ;;  %v2619_v58 = vld [vmem:[%s5125_s0 + $0x1b8] sm:$0xff]  ;;  %v239_v63 = vadd.f32 %v238_v32, %v2565_v53  ;;  %v247_v41 = vadd.f32 %v246_v33, %v2584_v8  ;;  %v241_v31 = vsel %vm186_vm0, %v2595_v22, 0.0 }
  0x17   :  { %5215 = vst [vmem:[#allocation21_spill] sm:$0xff] %v2607_v45  ;;  %5216 = vst [vmem:[#allocation22_spill] sm:$0xff] %v2614_v54  ;;  %v2624_v57 = vld [vmem:[%s5125_s0 + $0x1d8] sm:$0xff]  ;;  %v2639_v15 = vld [vmem:[%s5125_s0 + $0x200] sm:$0xff]  ;;  %v255_v28 = vadd.f32 %v254_v46, %v2607_v45  ;;  %v233_v53 = vadd.f32 %v232_v43, %v231_v62 }
  0x18   :  { %5217 = vst [vmem:[#allocation23_spill] sm:$0xff] %v2619_v58  ;;  %5218 = vst [vmem:[#allocation24_spill] sm:$0xff] %v2624_v57  ;;  %v2634_v16 = vld [vmem:[%s5125_s0 + $0x1f8] sm:$0xff]  ;;  %v2644_v34 = vld [vmem:[%s5125_s0 + $0x208] sm:$0xff]  ;;  %v240_v10 = vadd.f32 %v239_v63, %v2579_v3  ;;  %v248_v22 = vadd.f32 %v247_v41, %v2614_v54  ;;  %225 = vadd.xlane.f32.xlu0 %v224_v51  ;;  %v250_v41 = vsel %vm186_vm0, %v2619_v58, 0.0 }
  0x19   :  { %5219 = vst [vmem:[#allocation25_spill] sm:$0xff] %v2634_v16  ;;  %5220 = vst [vmem:[#allocation26_spill] sm:$0xff] %v2639_v15  ;;  %v2651_v32 = vld [vmem:[%s5125_s0 + $0x1b0] sm:$0xff]  ;;  %v2656_v33 = vld [vmem:[%s5125_s0 + $0x1e0] sm:$0xff]  ;;  %v263_v8 = vadd.f32 %v2639_v15, %v2634_v16  ;;  %v256_v63 = vadd.f32 %v255_v28, %v2624_v57  ;;  %234 = vadd.xlane.f32.xlu1 %v233_v53 }
  0x1a   :  { %5221 = vst [vmem:[#allocation27_spill] sm:$0xff] %v2644_v34  ;;  %5222 = vst [vmem:[#allocation28_spill] sm:$0xff] %v2651_v32  ;;  %v2666_v39 = vld [vmem:[%s5125_s0 + $0x1e8] sm:$0xff]  ;;  %v2671_v47 = vld [vmem:[%s5125_s0 + $0x210] sm:$0xff]  ;;  %v242_v58 = vadd.f32 %v241_v31, %v240_v10  ;;  %v249_v54 = vadd.f32 %v248_v22, %v2651_v32 }
  0x1b   :  { %5223 = vst [vmem:[#allocation29_spill] sm:$0xff] %v2656_v33  ;;  %5224 = vst [vmem:[#allocation30_spill] sm:$0xff] %v2666_v39  ;;  %v2676_v46 = vld [vmem:[%s5125_s0 + $0x230] sm:$0xff]  ;;  %v2681_v43 = vld [vmem:[%s5125_s0 + $0x238] sm:$0xff]  ;;  %v264_v16 = vadd.f32 %v263_v8, %v2644_v34  ;;  %v257_v53 = vadd.f32 %v256_v63, %v2656_v33 }
  0x1c   :  { %5225 = vst [vmem:[#allocation31_spill] sm:$0xff] %v2671_v47  ;;  %5226 = vst [vmem:[#allocation32_spill] sm:$0xff] %v2676_v46  ;;  %v2688_v62 = vld [vmem:[%s5125_s0 + $0x1f0] sm:$0xff]  ;;  %v2694_v15 = vld [vmem:[%s5125_s0 + $0x218] sm:$0xff]  ;;  %v272_v45 = vadd.f32 %v2681_v43, %v2676_v46  ;;  %v251_v63 = vadd.f32 %v250_v41, %v249_v54  ;;  %243 = vadd.xlane.f32.xlu0 %v242_v58 }
  0x1d   :  { %5227 = vst [vmem:[#allocation33_spill] sm:$0xff] %v2681_v43  ;;  %5228 = vst [vmem:[#allocation34_spill] sm:$0xff] %v2688_v62  ;;  %v2700_v51 = vld [vmem:[%s5125_s0 + $0x240] sm:$0xff]  ;;  %v2713_v8 = vld [vmem:[%s5125_s0 + $0x248] sm:$0xff]  ;;  %v265_v22 = vadd.f32 %v264_v16, %v2671_v47  ;;  %v259_v33 = vsel %vm186_vm0, %v2688_v62, 0.0  ;;  %v258_v41 = vadd.f32 %v257_v53, %v2666_v39 }
  0x1e   :  { %5229 = vst [vmem:[#allocation35_spill] sm:$0xff] %v2694_v15  ;;  %5230 = vst [vmem:[#allocation36_spill] sm:$0xff] %v2700_v51  ;;  %v2708_v28 = vld [vmem:[%s5125_s0 + $0x220] sm:$0xff]  ;;  %v2718_v34 = vld [vmem:[%s5125_s0 + $0x268] sm:$0xff]  ;;  %v273_v31 = vadd.f32 %v272_v45, %v2700_v51  ;;  %252 = vadd.xlane.f32.xlu1 %v251_v63 }
  0x1f   :  { %5231 = vst [vmem:[#allocation37_spill] sm:$0xff] %v2708_v28  ;;  %5232 = vst [vmem:[#allocation38_spill] sm:$0xff] %v2713_v8  ;;  %v2724_v10 = vld [vmem:[%s5125_s0 + $0x228] sm:$0xff]  ;;  %v2731_v43 = vld [vmem:[%s5125_s0 + $0x270] sm:$0xff]  ;;  %v266_v47 = vadd.f32 %v265_v22, %v2694_v15 }
  0x20   :  { %5233 = vst [vmem:[#allocation39_spill] sm:$0xff] %v2718_v34  ;;  %5234 = vst [vmem:[#allocation40_spill] sm:$0xff] %v2724_v10  ;;  %v2736_v46 = vld [vmem:[%s5125_s0 + $0x278] sm:$0xff]  ;;  %v2743_v16 = vld [vmem:[%s5125_s0 + $0x250] sm:$0xff]  ;;  %v281_v54 = vadd.f32 %v2731_v43, %v2718_v34  ;;  %v274_v62 = vadd.f32 %v273_v31, %v2713_v8  ;;  %v268_v53 = vsel %vm186_vm0, %v2724_v10, 0.0  ;;  %v260_v8 = vadd.f32 %v259_v33, %v258_v41 }
  0x21   :  { %5235 = vst [vmem:[#allocation41_spill] sm:$0xff] %v2731_v43  ;;  %5236 = vst [vmem:[#allocation42_spill] sm:$0xff] %v2736_v46  ;;  %v2748_v45 = vld [vmem:[%s5125_s0 + $0x260] sm:$0xff]  ;;  %v2768_v32 = vld [vmem:[%s5125_s0 + $0x2a8] sm:$0xff]  ;;  %v267_v63 = vadd.f32 %v266_v47, %v2708_v28 }
  0x22   :  { %5237 = vst [vmem:[#allocation43_spill] sm:$0xff] %v2743_v16  ;;  %5238 = vst [vmem:[#allocation44_spill] sm:$0xff] %v2748_v45  ;;  %v2753_v51 = vld [vmem:[%s5125_s0 + $0x280] sm:$0xff]  ;;  %v2773_v58 = vld [vmem:[%s5125_s0 + $0x2b0] sm:$0xff]  ;;  %v282_v43 = vadd.f32 %v281_v54, %v2736_v46  ;;  %v275_v10 = vadd.f32 %v274_v62, %v2743_v16  ;;  %v277_v33 = vsel %vm186_vm0, %v2748_v45, 0.0  ;;  %261 = vadd.xlane.f32.xlu0 %v260_v8 }
  0x23   :  { %5239 = vst [vmem:[#allocation45_spill] sm:$0xff] %v2753_v51  ;;  %v2763_v57 = vld [vmem:[%s5125_s0 + $0x2a0] sm:$0xff]  ;;  %5241 = vst [vmem:[#allocation47_spill] sm:$0xff] %v2768_v32  ;;  %v2780_v22 = vld [vmem:[%s5125_s0 + $0x258] sm:$0xff]  ;;  %v269_v16 = vadd.f32 %v268_v53, %v267_v63 }
  0x24   :  { %5240 = vst [vmem:[#allocation46_spill] sm:$0xff] %v2763_v57  ;;  %5242 = vst [vmem:[#allocation48_spill] sm:$0xff] %v2773_v58  ;;  %v2785_v31 = vld [vmem:[%s5125_s0 + $0x288] sm:$0xff]  ;;  %v290_v34 = vadd.f32 %v2768_v32, %v2763_v57  ;;  %v2795_v15 = vld [vmem:[%s5125_s0 + $0x290] sm:$0xff]  ;;  %v283_v41 = vadd.f32 %v282_v43, %v2753_v51  ;;  %v276_v28 = vadd.f32 %v275_v10, %v2780_v22 }
  0x25   :  { %5243 = vst [vmem:[#allocation49_spill] sm:$0xff] %v2780_v22  ;;  %5244 = vst [vmem:[#allocation50_spill] sm:$0xff] %v2785_v31  ;;  %v2800_v39 = vld [vmem:[%s5125_s0 + $0x2b8] sm:$0xff]  ;;  %v2810_v47 = vld [vmem:[%s5125_s0 + $0x2e0] sm:$0xff]  ;;  %270 = vadd.xlane.f32.xlu1 %v269_v16 }
  0x26   :  { %5245 = vst [vmem:[#allocation51_spill] sm:$0xff] %v2795_v15  ;;  %5246 = vst [vmem:[#allocation52_spill] sm:$0xff] %v2800_v39  ;;  %v2805_v54 = vld [vmem:[%s5125_s0 + $0x2d8] sm:$0xff]  ;;  %v2823_v32 = vld [vmem:[%s5125_s0 + $0x2c0] sm:$0xff]  ;;  %v291_v57 = vadd.f32 %v290_v34, %v2773_v58  ;;  %v278_v51 = vadd.f32 %v277_v33, %v276_v28 }
  0x27   :  { %5247 = vst [vmem:[#allocation53_spill] sm:$0xff] %v2805_v54  ;;  %5248 = vst [vmem:[#allocation54_spill] sm:$0xff] %v2810_v47  ;;  %v2817_v62 = vld [vmem:[%s5125_s0 + $0x298] sm:$0xff]  ;;  %v2829_v46 = vld [vmem:[%s5125_s0 + $0x2e8] sm:$0xff]  ;;  %v299_v45 = vadd.f32 %v2810_v47, %v2805_v54  ;;  %v284_v47 = vadd.f32 %v283_v41, %v2785_v31 }
  0x28   :  { %5249 = vst [vmem:[#allocation55_spill] sm:$0xff] %v2817_v62  ;;  %5250 = vst [vmem:[#allocation56_spill] sm:$0xff] %v2823_v32  ;;  %v2837_v43 = vld [vmem:[%s5125_s0 + $0x2c8] sm:$0xff]  ;;  %v2842_v34 = vld [vmem:[%s5125_s0 + $0x2f0] sm:$0xff]  ;;  %v292_v10 = vadd.f32 %v291_v57, %v2800_v39  ;;  %v286_v41 = vsel %vm186_vm0, %v2817_v62, 0.0  ;;  %279 = vadd.xlane.f32.xlu0 %v278_v51 }
  0x29   :  { %5251 = vst [vmem:[#allocation57_spill] sm:$0xff] %v2829_v46  ;;  %5252 = vst [vmem:[#allocation58_spill] sm:$0xff] %v2837_v43  ;;  %v167_v58 = vld [vmem:[%s5125_s0 + $0x310] sm:$0xff]  ;;  %v300_v53 = vadd.f32 %v299_v45, %v2829_v46  ;;  %v168_v63 = vld [vmem:[%s5125_s0 + $0x318] sm:$0xff]  ;;  %v285_v28 = vadd.f32 %v284_v47, %v2795_v15 }
  0x2a   :  { %5253 = vst [vmem:[#allocation59_spill] sm:$0xff] %v2842_v34  ;;  %v2851_v8 = vld [vmem:[%s5125_s0 + $0x2d0] sm:$0xff]  ;;  %v169_v54 = vld [vmem:[%s5125_s0 + $0x320] sm:$0xff]  ;;  %v2866_v31 = vld [vmem:[%s5125_s0 + $0x2f8] sm:$0xff]  ;;  %v308_v16 = vadd.f32 %v168_v63, %v167_v58  ;;  %v293_v33 = vadd.f32 %v292_v10, %v2823_v32 }
  0x2b   :  { %5254 = vst [vmem:[#allocation60_spill] sm:$0xff] %v2851_v8  ;;  %5255 = vst [vmem:[#allocation61_spill] sm:$0xff] %v2866_v31  ;;  %v2871_v57 = vld [vmem:[%s5125_s0 + $0x308] sm:$0xff]  ;;  %v301_v46 = vadd.f32 %v300_v53, %v2842_v34  ;;  %v175_v62 = vld [vmem:[%s5125_s0 + $0x350] sm:$0xff]  ;;  %v295_v58 = vsel %vm186_vm0, %v2851_v8, 0.0  ;;  %v287_v34 = vadd.f32 %v286_v41, %v285_v28 }
  0x2c   :  { %5256 = vst [vmem:[#allocation62_spill] sm:$0xff] %v2871_v57  ;;  %v2876_v45 = vld [vmem:[%s5125_s0 + $0x328] sm:$0xff]  ;;  %v176_v22 = vld [vmem:[%s5125_s0 + $0x358] sm:$0xff]  ;;  %v2895_v47 = vld [vmem:[%s5125_s0 + $0x300] sm:$0xff]  ;;  %v309_v53 = vadd.f32 %v308_v16, %v169_v54  ;;  %v294_v32 = vadd.f32 %v293_v33, %v2837_v43 }
  0x2d   :  { %5257 = vst [vmem:[#allocation63_spill] sm:$0xff] %v2876_v45  ;;  %v174_v39 = vld [vmem:[%s5125_s0 + $0x348] sm:$0xff]  ;;  %5258 = vst [vmem:[#allocation64_spill] sm:$0xff] %v2895_v47  ;;  %v2900_v10 = vld [vmem:[%s5125_s0 + $0x330] sm:$0xff]  ;;  %v302_v51 = vadd.f32 %v301_v46, %v2866_v31  ;;  %v304_v46 = vsel %vm186_vm0, %v2871_v57, 0.0  ;;  %288 = vadd.xlane.f32.xlu1 %v287_v34 }
  0x2e   :  { %5259 = vst [vmem:[#allocation65_spill] sm:$0xff] %v2900_v10  ;;  %v317_v63 = vadd.f32 %v175_v62, %v174_v39  ;;  %v2907_v8 = vld [vmem:[%s5125_s0 + $0x338] sm:$0xff]  ;;  %v177_v15 = vld [vmem:[%s5125_s0 + $0x360] sm:$0xff]  ;;  %v310_v62 = vadd.f32 %v309_v53, %v2876_v45  ;;  %v2929_v41 = vld [vmem:[%s5125_s0 + $0x368] sm:$0xff]  ;;  %v296_v57 = vadd.f32 %v295_v58, %v294_v32 }
  0x2f   :  { %5260 = vst [vmem:[#allocation66_spill] sm:$0xff] %v2907_v8  ;;  %v1310_v3 = vld [vmem:[%s5126_s1 + $0x38] sm:$0xff]  ;;  %v1311_v39 = vld [vmem:[%s5126_s1 + $0x40] sm:$0xff]  ;;  %5262 = vst [vmem:[#allocation68_spill] sm:$0xff] %v2929_v41  ;;  %v303_v31 = vadd.f32 %v302_v51, %v2895_v47 }
  0x30   :  { %v2923_v54 = vld [vmem:[%s5125_s0 + $0x340] sm:$0xff]  ;;  %v318_v16 = vadd.f32 %v317_v63, %v176_v22  ;;  %v1312_v28 = vld [vmem:[%s5126_s1 + $0x48] sm:$0xff]  ;;  %v1340_v33 = vadd.f32 %v1311_v39, %v1310_v3  ;;  %v2938_v43 = vld [vmem:[%s5125_s0 + $0x370] sm:$0xff]  ;;  %v311_v63 = vadd.f32 %v310_v62, %v2900_v10  ;;  %297 = vadd.xlane.f32.xlu0 %v296_v57 }
  0x31   :  { %5261 = vst [vmem:[#allocation67_spill] sm:$0xff] %v2923_v54  ;;  %5263 = vst [vmem:[#allocation69_spill] sm:$0xff] %v2938_v43  ;;  %v1313_v53 = vld [vmem:[%s5126_s1 + $0x50] sm:$0xff]  ;;  %v1303_v22 = vld [vmem:[%s5126_s1] sm:$0xff]  ;;  %v305_v39 = vadd.f32 %v304_v46, %v303_v31  ;;  %v313_v62 = vsel %vm186_vm0, %v2923_v54, 0.0 }
  0x32   :  { %v2950_v3 = vld [vmem:[%s5125_s0 + $0x378] sm:$0xff]  ;;  %v319_v32 = vadd.f32 %v318_v16, %v177_v15  ;;  %v1341_v34 = vadd.f32 %v1340_v33, %v1312_v28  ;;  %v1304_v58 = vld [vmem:[%s5126_s1 + $0x8] sm:$0xff]  ;;  %v1305_v51 = vld [vmem:[%s5126_s1 + $0x10] sm:$0xff]  ;;  %v312_v33 = vadd.f32 %v311_v63, %v2907_v8 }
  0x33   :  { %5264 = vst [vmem:[#allocation70_spill] sm:$0xff] %v2950_v3  ;;  %v1314_v10 = vld [vmem:[%s5126_s1 + $0x58] sm:$0xff]  ;;  %v1316_v15 = vld [vmem:[%s5126_s1 + $0x68] sm:$0xff]  ;;  %v1331_v28 = vadd.f32 %v1304_v58, %v1303_v22  ;;  %v1317_v46 = vld [vmem:[%s5126_s1 + $0x70] sm:$0xff]  ;;  %306 = vadd.xlane.f32.xlu1 %v305_v39  ;;  %v322_v22 = vsel %vm186_vm0, %v2950_v3, 0.0 }
  0x34   :  { %v1306_v16 = vld [vmem:[%s5126_s1 + $0x18] sm:$0xff]  ;;  %v320_v31 = vadd.f32 %v319_v32, %v2929_v41  ;;  %v1342_v57 = vadd.f32 %v1341_v34, %v1313_v53  ;;  %v1319_v45 = vld [vmem:[%s5126_s1 + $0x80] sm:$0xff]  ;;  %v314_v58 = vadd.f32 %v313_v62, %v312_v33  ;;  %v1308_v39 = vld [vmem:[%s5126_s1 + $0x28] sm:$0xff] }
  0x35   :  { %v1318_v54 = vld [vmem:[%s5126_s1 + $0x78] sm:$0xff]  ;;  %v2985_v53 = vld [vmem:[%s5126_s1 + $0x60] sm:$0xff]  ;;  %v1332_v32 = vadd.f32 %v1331_v28, %v1305_v51  ;;  %v1320_v3 = vld [vmem:[%s5126_s1 + $0x88] sm:$0xff]  ;;  %v1345_v51 = vsel %vm186_vm0, %v1316_v15, 0.0 }
  0x36   :  { %5265 = vst [vmem:[#allocation71_spill] sm:$0xff] %v2985_v53  ;;  %v1307_v63 = vld [vmem:[%s5126_s1 + $0x20] sm:$0xff]  ;;  %v1349_v34 = vadd.f32 %v1318_v54, %v1317_v46  ;;  %v321_v41 = vadd.f32 %v320_v31, %v2938_v43  ;;  %v1343_v8 = vadd.f32 %v1342_v57, %v1314_v10  ;;  %v1324_v47 = vld [vmem:[%s5126_s1 + $0xa8] sm:$0xff]  ;;  %v1325_v54 = vld [vmem:[%s5126_s1 + $0xb0] sm:$0xff]  ;;  %315 = vadd.xlane.f32.xlu0 %v314_v58 }
  0x37   :  { %v1309_v10 = vld [vmem:[%s5126_s1 + $0x30] sm:$0xff]  ;;  %v1333_v62 = vadd.f32 %v1332_v32, %v1306_v16  ;;  %v1326_v31 = vld [vmem:[%s5126_s1 + $0xb8] sm:$0xff]  ;;  %v1358_v57 = vadd.f32 %v1325_v54, %v1324_v47  ;;  %v1327_v16 = vld [vmem:[%s5126_s1 + $0xc0] sm:$0xff] }
  0x38   :  { %v1321_v28 = vld [vmem:[%s5126_s1 + $0x90] sm:$0xff]  ;;  %v1350_v33 = vadd.f32 %v1349_v34, %v1319_v45  ;;  %v323_v46 = vadd.f32 %v322_v22, %v321_v41  ;;  %v1344_v43 = vadd.f32 %v1343_v8, %v2985_v53  ;;  %v1322_v15 = vld [vmem:[%s5126_s1 + $0x98] sm:$0xff]  ;;  %v1611_v45 = vld [vmem:[%s5127_s2] sm:$0xff]  ;;  %v1336_v54 = vsel %vm186_vm0, %v1309_v10, 0.0 }
  0x39   :  { %v1334_v32 = vadd.f32 %v1333_v62, %v1307_v63  ;;  %v1323_v47 = vld [vmem:[%s5126_s1 + $0xa0] sm:$0xff]  ;;  %v1359_v22 = vadd.f32 %v1358_v57, %v1326_v31  ;;  %v1612_v8 = vld [vmem:[%s5127_s2 + $0x8] sm:$0xff]  ;;  %v1613_v34 = vld [vmem:[%s5127_s2 + $0x10] sm:$0xff] }
  0x3a   :  { %v1351_v41 = vadd.f32 %v1350_v33, %v1320_v3  ;;  %324 = vadd.xlane.f32.xlu1 %v323_v46  ;;  %v1346_v58 = vadd.f32 %v1345_v51, %v1344_v43  ;;  %v1328_v63 = vld [vmem:[%s5126_s1 + $0xc8] sm:$0xff]  ;;  %v1330_v3 = vld [vmem:[%s5126_s1 + $0xd8] sm:$0xff]  ;;  %v1639_v33 = vadd.f32 %v1612_v8, %v1611_v45  ;;  %v1619_v51 = vld [vmem:[%s5127_s2 + $0x40] sm:$0xff]  ;;  %v1354_v46 = vsel %vm186_vm0, %v1323_v47, 0.0 }
  0x3b   :  { %v1614_v62 = vld [vmem:[%s5127_s2 + $0x18] sm:$0xff]  ;;  %v1335_v31 = vadd.f32 %v1334_v32, %v1308_v39  ;;  %v1360_v53 = vadd.f32 %v1359_v22, %v1327_v16  ;;  %v1620_v10 = vld [vmem:[%s5127_s2 + $0x48] sm:$0xff]  ;;  %v1329_v39 = vld [vmem:[%s5126_s1 + $0xd0] sm:$0xff]  ;;  %v1363_v24 = vsel %vm186_vm0, %v1330_v3, 0.0 }
  0x3c   :  { %v1352_v57 = vadd.f32 %v1351_v41, %v1321_v28  ;;  %v1618_v43 = vld [vmem:[%s5127_s2 + $0x38] sm:$0xff]  ;;  %1347 = vadd.xlane.f32.xlu0 %v1346_v58  ;;  %v1615_v28 = vld [vmem:[%s5127_s2 + $0x20] sm:$0xff]  ;;  %v1640_v16 = vadd.f32 %v1639_v33, %v1613_v34  ;;  %v1621_v8 = vld [vmem:[%s5127_s2 + $0x50] sm:$0xff] }
  0x3d   :  { %v1648_v45 = vadd.f32 %v1619_v51, %v1618_v43  ;;  %v1337_v32 = vadd.f32 %v1336_v54, %v1335_v31  ;;  %v1361_v22 = vadd.f32 %v1360_v53, %v1328_v63  ;;  %v1625_v47 = vld [vmem:[%s5127_s2 + $0x70] sm:$0xff]  ;;  %v1626_v58 = vld [vmem:[%s5127_s2 + $0x78] sm:$0xff]  ;;  %v1616_v34 = vld [vmem:[%s5127_s2 + $0x28] sm:$0xff] }
  0x3e   :  { %v1353_v41 = vadd.f32 %v1352_v57, %v1322_v15  ;;  %v1617_v53 = vld [vmem:[%s5127_s2 + $0x30] sm:$0xff]  ;;  %v1641_v15 = vadd.f32 %v1640_v16, %v1614_v62  ;;  %v1627_v63 = vld [vmem:[%s5127_s2 + $0x80] sm:$0xff]  ;;  %v1657_v33 = vadd.f32 %v1626_v58, %v1625_v47  ;;  %v1622_v3 = vld [vmem:[%s5127_s2 + $0x58] sm:$0xff] }
  0x3f   :  { %v1649_v54 = vadd.f32 %v1648_v45, %v1620_v10  ;;  %1338 = vadd.xlane.f32.xlu1 %v1337_v32  ;;  %v1362_v57 = vadd.f32 %v1361_v22, %v1329_v39  ;;  %v1628_v43 = vld [vmem:[%s5127_s2 + $0x88] sm:$0xff]  ;;  %v1633_v39 = vld [vmem:[%s5127_s2 + $0xb0] sm:$0xff]  ;;  %v1634_v45 = vld [vmem:[%s5127_s2 + $0xb8] sm:$0xff] }
  0x40   :  { %v1355_v31 = vadd.f32 %v1354_v46, %v1353_v41  ;;  %v1632_v62 = vld [vmem:[%s5127_s2 + $0xa8] sm:$0xff]  ;;  %v1642_v51 = vadd.f32 %v1641_v15, %v1615_v28  ;;  %v1658_v46 = vadd.f32 %v1657_v33, %v1627_v63  ;;  %v1644_v41 = vsel %vm186_vm0, %v1617_v53, 0.0  ;;  %v1623_v28 = vld [vmem:[%s5127_s2 + $0x60] sm:$0xff]  ;;  %v1629_v22 = vld [vmem:[%s5127_s2 + $0x90] sm:$0xff] }
  0x41   :  { %v1624_v10 = vld [vmem:[%s5127_s2 + $0x68] sm:$0xff]  ;;  %v1650_v16 = vadd.f32 %v1649_v54, %v1621_v8  ;;  %v1364_v32 = vadd.f32 %v1363_v24, %v1362_v57  ;;  %v1666_v8 = vadd.f32 %v1633_v39, %v1632_v62  ;;  %v1631_v15 = vld [vmem:[%s5127_s2 + $0xa0] sm:$0xff] }
  0x42   :  { %1356 = vadd.xlane.f32.xlu0 %v1355_v31  ;;  %v1643_v47 = vadd.f32 %v1642_v51, %v1616_v34  ;;  %v1659_v54 = vadd.f32 %v1658_v46, %v1628_v43  ;;  %v1635_v24 = vld [vmem:[%s5127_s2 + $0xc0] sm:$0xff] }
  0x43   :  { %v1651_v58 = vadd.f32 %v1650_v16, %v1622_v3 }
  0x44   :  { %10 = vsyncpa [#allocation3], 0  ;;  %1365 = vadd.xlane.f32.xlu1 %v1364_v32  ;;  %v1653_v53 = vsel %vm186_vm0, %v1624_v10, 0.0  ;;  %v1630_v63 = vld [vmem:[%s5127_s2 + $0x98] sm:$0xff]  ;;  %v1667_v33 = vadd.f32 %v1666_v8, %v1634_v45  ;;  %v1645_v34 = vadd.f32 %v1644_v41, %v1643_v47  ;;  %v1660_v57 = vadd.f32 %v1659_v54, %v1629_v22  ;;  %v1636_v3 = vld [vmem:[%s5127_s2 + $0xc8] sm:$0xff] }
  0x45   :  { %v1652_v31 = vadd.f32 %v1651_v58, %v1623_v28  ;;  %v1662_v43 = vsel %vm186_vm0, %v1631_v15, 0.0  ;;  %v1638_v62 = vld [vmem:[%s5127_s2 + $0xd8] sm:$0xff]  ;;  %v1637_v46 = vld [vmem:[%s5127_s2 + $0xd0] sm:$0xff] }
  0x46   :  { %v1668_v51 = vadd.f32 %v1667_v33, %v1635_v24  ;;  %1646 = vadd.xlane.f32.xlu0 %v1645_v34  ;;  %v1661_v16 = vadd.f32 %v1660_v57, %v1630_v63  ;;  %v1671_v32 = vsel %vm186_vm0, %v1638_v62, 0.0 }
  0x47   :  { %v1654_v10 = vadd.f32 %v1653_v53, %v1652_v31 }
  0x48   :  { %v1669_v39 = vadd.f32 %v1668_v51, %v1636_v3  ;;  %v1663_v45 = vadd.f32 %v1662_v43, %v1661_v16 }
  0x49   :  { %1655 = vadd.xlane.f32.xlu1 %v1654_v10 }
  0x4a   :  { %v1670_v41 = vadd.f32 %v1669_v39, %v1637_v46  ;;  %1664 = vadd.xlane.f32.xlu0 %v1663_v45 }
  0x4c   :  { %v1672_v28 = vadd.f32 %v1671_v32, %v1670_v41 }
  0x4e   :  { %1673 = vadd.xlane.f32.xlu1 %v1672_v28 }
  0x9b   :  { %v208_v22 = vpop.xlane.xlu1 %207 }
  0x9c   :  { %v3123_v8 = vmul.f32 0.0012755102, %v208_v22 }
  0x9d   :  { %v190_v47 = vpop.xlane.xlu0 %189 }
  0x9e   :  { %v3125_v58 = vmul.f32 0.0012755102, %v190_v47  ;;  %v357_v15 = vsub.f32 %v2280_v0, %v3123_v8  ;;  %v358_v54 = vsub.f32 %v2285_v1, %v3123_v8  ;;  %v359_v24 = vsub.f32 %v2290_v2, %v3123_v8 }
  0x9f   :  { %v360_v53 = vsub.f32 %v2297_v4, %v3123_v8  ;;  %v217_v63 = vpop.xlane.xlu1 %216  ;;  %v361_v0 = vsub.f32 %v2312_v7, %v3123_v8  ;;  %v363_v7 = vsub.f32 %v2340_v14, %v3123_v8 }
  0xa0   :  { %v343_v33 = vsub.f32 %v2302_v5, %v3125_v58  ;;  %v344_v34 = vsub.f32 %v2307_v6, %v3125_v58  ;;  %v345_v31 = vsub.f32 %v2318_v9, %v3125_v58  ;;  %v346_v1 = vsub.f32 %v2330_v12, %v3125_v58 }
  0xa1   :  { %v347_v2 = vsub.f32 %v2357_v19, %v3125_v58  ;;  %v348_v4 = vsub.f32 %v2393_v29, %v3125_v58  ;;  %v349_v5 = vsub.f32 %v2362_v20, %v3125_v58  ;;  %v199_v57 = vpop.xlane.xlu0 %198  ;;  %v362_v9 = vsub.f32 %v2325_v11, %v3123_v8 }
  0xa2   :  { %v455_v6 = vmul.f32 %v343_v33, %v343_v33  ;;  %v456_v3 = vmul.f32 %v344_v34, %v344_v34  ;;  %v3155_v43 = vmul.f32 0.0012755102, %v217_v63  ;;  %v3157_v12 = vmul.f32 0.0012755102, %v199_v57 }
  0xa3   :  { %v457_v19 = vmul.f32 %v345_v31, %v345_v31  ;;  %v461_v62 = vmul.f32 %v349_v5, %v349_v5  ;;  %v469_v29 = vmul.f32 %v357_v15, %v357_v15  ;;  %v470_v10 = vmul.f32 %v358_v54, %v358_v54 }
  0xa4   :  { %v567_v51 = vadd.f32 %v456_v3, %v455_v6  ;;  %v471_v16 = vmul.f32 %v359_v24, %v359_v24  ;;  %v458_v20 = vmul.f32 %v346_v1, %v346_v1  ;;  %v459_v46 = vmul.f32 %v347_v2, %v347_v2 }
  0xa5   :  { %v460_v39 = vmul.f32 %v348_v4, %v348_v4  ;;  %v572_v45 = vsel %vm186_vm0, %v461_v62, 0.0  ;;  %v226_v32 = vpop.xlane.xlu0 %225  ;;  %v472_v41 = vmul.f32 %v360_v53, %v360_v53  ;;  %v585_v28 = vadd.f32 %v470_v10, %v469_v29 }
  0xa6   :  { %v568_v11 = vadd.f32 %v567_v51, %v457_v19  ;;  %v350_v14 = vsub.f32 %v2376_v25, %v3157_v12  ;;  %v235_v22 = vpop.xlane.xlu1 %234  ;;  %v473_v47 = vmul.f32 %v361_v0, %v361_v0  ;;  %v475_v63 = vmul.f32 %v363_v7, %v363_v7 }
  0xa7   :  { %v351_v15 = vsub.f32 %v2381_v26, %v3157_v12  ;;  %v352_v54 = vsub.f32 %v2386_v27, %v3157_v12  ;;  %v474_v33 = vmul.f32 %v362_v9, %v362_v9  ;;  %v586_v34 = vadd.f32 %v585_v28, %v471_v16 }
  0xa8   :  { %v569_v24 = vadd.f32 %v568_v11, %v458_v20  ;;  %v353_v31 = vsub.f32 %v2413_v36, %v3157_v12  ;;  %v3168_v53 = vmul.f32 0.0012755102, %v226_v32  ;;  %v3170_v1 = vmul.f32 0.0012755102, %v235_v22 }
  0xa9   :  { %v356_v25 = vsub.f32 %v2466_v52, %v3157_v12  ;;  %v462_v0 = vmul.f32 %v350_v14, %v350_v14  ;;  %v244_v2 = vpop.xlane.xlu0 %243  ;;  %v587_v26 = vadd.f32 %v586_v34, %v472_v41  ;;  %v354_v27 = vsub.f32 %v2436_v42, %v3157_v12 }
  0xaa   :  { %v570_v4 = vadd.f32 %v569_v24, %v459_v46  ;;  %v463_v5 = vmul.f32 %v351_v15, %v351_v15  ;;  %v3176_v57 = vmul.f32 0.0012755102, %v244_v2  ;;  %v590_v36 = vsel %vm186_vm0, %v475_v63, 0.0 }
  0xab   :  { %v253_v6 = vpop.xlane.xlu1 %252  ;;  %v355_v3 = vsub.f32 %v2450_v48, %v3157_v12  ;;  %v464_v9 = vmul.f32 %v352_v54, %v352_v54  ;;  %v588_v19 = vadd.f32 %v587_v26, %v473_v47  ;;  %v465_v52 = vmul.f32 %v353_v31, %v353_v31 }
  0xac   :  { %v571_v7 = vadd.f32 %v570_v4, %v460_v39  ;;  %v468_v62 = vmul.f32 %v356_v25, %v356_v25  ;;  %v576_v51 = vadd.f32 %v463_v5, %v462_v0  ;;  %v364_v29 = vsub.f32 %v2335_v13, %v3155_v43 }
  0xad   :  { %v365_v42 = vsub.f32 %v2347_v17, %v3155_v43  ;;  %v366_v10 = vsub.f32 %v2352_v18, %v3155_v43  ;;  %v589_v46 = vadd.f32 %v588_v19, %v474_v33  ;;  %v466_v32 = vmul.f32 %v354_v27, %v354_v27 }
  0xae   :  { %v573_v20 = vadd.f32 %v572_v45, %v571_v7  ;;  %v367_v48 = vsub.f32 %v2367_v21, %v3155_v43  ;;  %v3189_v39 = vmul.f32 0.0012755102, %v253_v6  ;;  %v467_v11 = vmul.f32 %v355_v3, %v355_v3 }
  0xaf   :  { %v262_v16 = vpop.xlane.xlu0 %261  ;;  %v577_v41 = vadd.f32 %v576_v51, %v464_v9  ;;  %v581_v28 = vsel %vm186_vm0, %v468_v62, 0.0  ;;  %v368_v17 = vsub.f32 %v2398_v30, %v3155_v43  ;;  %v370_v18 = vsub.f32 %v2430_v40, %v3155_v43 }
  0xb0   :  { %574 = vadd.xlane.f32.xlu0 %v573_v20  ;;  %v476_v45 = vmul.f32 %v364_v29, %v364_v29  ;;  %v477_v14 = vmul.f32 %v365_v42, %v365_v42  ;;  %v3196_v22 = vmul.f32 0.0012755102, %v262_v16  ;;  %v369_v21 = vsub.f32 %v2408_v35, %v3155_v43 }
  0xb1   :  { %v578_v47 = vadd.f32 %v577_v41, %v465_v52  ;;  %v478_v63 = vmul.f32 %v366_v10, %v366_v10  ;;  %v591_v24 = vadd.f32 %v590_v36, %v589_v46  ;;  %v479_v33 = vmul.f32 %v367_v48, %v367_v48 }
  0xb2   :  { %v271_v13 = vpop.xlane.xlu1 %270  ;;  %v594_v34 = vadd.f32 %v477_v14, %v476_v45  ;;  %v482_v30 = vmul.f32 %v370_v18, %v370_v18  ;;  %v371_v40 = vsub.f32 %v2418_v37, %v3168_v53  ;;  %v372_v25 = vsub.f32 %v2423_v38, %v3168_v53 }
  0xb3   :  { %v3200_v15 = vmul.f32 0.0012755102, %v271_v13  ;;  %v579_v31 = vadd.f32 %v578_v47, %v466_v32  ;;  %v480_v0 = vmul.f32 %v368_v17, %v368_v17  ;;  %v373_v35 = vsub.f32 %v2442_v44, %v3168_v53 }
  0xb4   :  { %592 = vadd.xlane.f32.xlu0 %v591_v24  ;;  %v595_v2 = vadd.f32 %v594_v34, %v478_v63  ;;  %v374_v4 = vsub.f32 %v2455_v49, %v3168_v53  ;;  %v481_v6 = vmul.f32 %v369_v21, %v369_v21  ;;  %v377_v37 = vsub.f32 %v2490_v60, %v3168_v53  ;;  %v5268_v63 = vld [vmem:[#allocation9_spill] sm:$0xff] }
  0xb5   :  { %v280_v54 = vpop.xlane.xlu0 %279  ;;  %v580_v27 = vadd.f32 %v579_v31, %v467_v11  ;;  %v375_v38 = vsub.f32 %v2485_v59, %v3168_v53  ;;  %v483_v3 = vmul.f32 %v371_v40, %v371_v40  ;;  %v484_v9 = vmul.f32 %v372_v25, %v372_v25  ;;  %v5269_v34 = vld [vmem:[#allocation5_spill] sm:$0xff]  ;;  %v5270_v25 = vld [vmem:[#allocation6_spill] sm:$0xff] }
  0xb6   :  { %v3210_v26 = vmul.f32 0.0012755102, %v280_v54  ;;  %v596_v36 = vadd.f32 %v595_v2, %v479_v33  ;;  %v599_v44 = vsel %vm186_vm0, %v482_v30, 0.0  ;;  %v376_v49 = vsub.f32 %v2522_v23, %v3168_v53  ;;  %v5271_v2 = vld [vmem:[#allocation7_spill] sm:$0xff] }
  0xb7   :  { %v582_v7 = vadd.f32 %v581_v28, %v580_v27  ;;  %v485_v52 = vmul.f32 %v373_v35, %v373_v35  ;;  %v486_v29 = vmul.f32 %v374_v4, %v374_v4  ;;  %v489_v42 = vmul.f32 %v377_v37, %v377_v37  ;;  %v5266_v28 = vld [vmem:[#allocation8_spill] sm:$0xff]  ;;  %v5272_v4 = vld [vmem:[#allocation10_spill] sm:$0xff] }
  0xb8   :  { %v597_v51 = vadd.f32 %v596_v36, %v480_v0  ;;  %v603_v60 = vadd.f32 %v484_v9, %v483_v3  ;;  %v378_v59 = vsub.f32 %v2460_v50, %v3170_v1  ;;  %v379_v10 = vsub.f32 %v2473_v55, %v3170_v1  ;;  %v5267_v50 = vld [vmem:[#allocation13_spill] sm:$0xff]  ;;  %v5273_v37 = vld [vmem:[#allocation14_spill] sm:$0xff] }
  0xb9   :  { %583 = vadd.xlane.f32.xlu1 %v582_v7  ;;  %v380_v16 = vsub.f32 %v2478_v56, %v3170_v1  ;;  %v487_v46 = vmul.f32 %v375_v38, %v375_v38  ;;  %v381_v48 = vsub.f32 %v2495_v61, %v3170_v1  ;;  %v488_v11 = vmul.f32 %v376_v49, %v376_v49  ;;  %v5274_v38 = vld [vmem:[#allocation16_spill] sm:$0xff]  ;;  %v5275_v7 = vld [vmem:[#allocation19_spill] sm:$0xff] }
  0xba   :  { %v289_v5 = vpop.xlane.xlu1 %288  ;;  %v598_v23 = vadd.f32 %v597_v51, %v481_v6  ;;  %v604_v41 = vadd.f32 %v603_v60, %v485_v52  ;;  %v382_v13 = vsub.f32 %v5266_v28, %v3170_v1  ;;  %v384_v17 = vsub.f32 %v5267_v50, %v3170_v1  ;;  %v5277_v50 = vld [vmem:[#allocation12_spill] sm:$0xff] }
  0xbb   :  { %v3219_v62 = vmul.f32 0.0012755102, %v289_v5  ;;  %v490_v18 = vmul.f32 %v378_v59, %v378_v59  ;;  %v491_v45 = vmul.f32 %v379_v10, %v379_v10  ;;  %v492_v56 = vmul.f32 %v380_v16, %v380_v16 }
  0xbc   :  { %v600_v55 = vadd.f32 %v599_v44, %v598_v23  ;;  %v605_v14 = vadd.f32 %v604_v41, %v486_v29  ;;  %v608_v47 = vsel %vm186_vm0, %v489_v42, 0.0  ;;  %v383_v61 = vsub.f32 %v5268_v63, %v3170_v1  ;;  %v5280_v63 = vld [vmem:[#allocation22_spill] sm:$0xff] }
  0xbd   :  { %v298_v19 = vpop.xlane.xlu0 %297  ;;  %v493_v54 = vmul.f32 %v381_v48, %v381_v48  ;;  %v496_v24 = vmul.f32 %v384_v17, %v384_v17  ;;  %v612_v33 = vadd.f32 %v491_v45, %v490_v18  ;;  %v385_v31 = vsub.f32 %v5269_v34, %v3176_v57 }
  0xbe   :  { %v3227_v20 = vmul.f32 0.0012755102, %v298_v19  ;;  %601 = vadd.xlane.f32.xlu1 %v600_v55  ;;  %v606_v30 = vadd.f32 %v605_v14, %v487_v46  ;;  %v386_v0 = vsub.f32 %v5270_v25, %v3176_v57  ;;  %v387_v35 = vsub.f32 %v5271_v2, %v3176_v57  ;;  %v5278_v55 = vld [vmem:[#allocation15_spill] sm:$0xff]  ;;  %v5279_v14 = vld [vmem:[#allocation17_spill] sm:$0xff]  ;;  %v5282_v25 = vld [vmem:[#allocation28_spill] sm:$0xff] }
  0xbf   :  { %v388_v27 = vsub.f32 %v5272_v4, %v3176_v57  ;;  %v494_v5 = vmul.f32 %v382_v13, %v382_v13  ;;  %v613_v6 = vadd.f32 %v612_v33, %v492_v56  ;;  %v389_v36 = vsub.f32 %v5273_v37, %v3176_v57 }
  0xc0   :  { %v307_v32 = vpop.xlane.xlu1 %306  ;;  %v390_v3 = vsub.f32 %v5274_v38, %v3176_v57  ;;  %v607_v9 = vadd.f32 %v606_v30, %v488_v11  ;;  %v391_v19 = vsub.f32 %v5275_v7, %v3176_v57  ;;  %v497_v44 = vmul.f32 %v385_v31, %v385_v31  ;;  %v5276_v11 = vld [vmem:[#allocation11_spill] sm:$0xff]  ;;  %v5286_v7 = vld [vmem:[#allocation24_spill] sm:$0xff] }
  0xc1   :  { %v3236_v21 = vmul.f32 0.0012755102, %v307_v32  ;;  %v498_v49 = vmul.f32 %v386_v0, %v386_v0  ;;  %v495_v51 = vmul.f32 %v383_v61, %v383_v61  ;;  %v614_v29 = vadd.f32 %v613_v6, %v493_v54  ;;  %v5283_v6 = vld [vmem:[#allocation18_spill] sm:$0xff] }
  0xc2   :  { %v499_v42 = vmul.f32 %v387_v35, %v387_v35  ;;  %v609_v60 = vadd.f32 %v608_v47, %v607_v9  ;;  %v617_v59 = vsel %vm186_vm0, %v496_v24, 0.0  ;;  %v500_v10 = vmul.f32 %v388_v27, %v388_v27  ;;  %v5281_v24 = vld [vmem:[#allocation23_spill] sm:$0xff] }
  0xc3   :  { %v316_v40 = vpop.xlane.xlu0 %315  ;;  %v621_v16 = vadd.f32 %v498_v49, %v497_v44  ;;  %v615_v46 = vadd.f32 %v614_v29, %v494_v5  ;;  %v501_v32 = vmul.f32 %v389_v36, %v389_v36  ;;  %v503_v48 = vmul.f32 %v391_v19, %v391_v19  ;;  %v5284_v36 = vld [vmem:[#allocation20_spill] sm:$0xff] }
  0xc4   :  { %v3254_v52 = vmul.f32 0.0012755102, %v316_v40  ;;  %v392_v41 = vsub.f32 %v5276_v11, %v3189_v39  ;;  %610 = vadd.xlane.f32.xlu0 %v609_v60  ;;  %v502_v28 = vmul.f32 %v390_v3, %v390_v3  ;;  %v393_v17 = vsub.f32 %v5277_v50, %v3189_v39  ;;  %v5285_v3 = vld [vmem:[#allocation21_spill] sm:$0xff] }
  0xc5   :  { %v622_v13 = vadd.f32 %v621_v16, %v499_v42  ;;  %v394_v18 = vsub.f32 %v5278_v55, %v3189_v39  ;;  %v616_v45 = vadd.f32 %v615_v46, %v495_v51  ;;  %v395_v47 = vsub.f32 %v5279_v14, %v3189_v39  ;;  %v5287_v42 = vld [vmem:[#allocation29_spill] sm:$0xff]  ;;  %v5289_v16 = vld [vmem:[#allocation34_spill] sm:$0xff] }
  0xc6   :  { %v396_v61 = vsub.f32 %v5280_v63, %v3189_v39  ;;  %v398_v33 = vsub.f32 %v5281_v24, %v3189_v39  ;;  %v504_v34 = vmul.f32 %v392_v41, %v392_v41  ;;  %v505_v31 = vmul.f32 %v393_v17, %v393_v17  ;;  %v5290_v63 = vld [vmem:[#allocation25_spill] sm:$0xff] }
  0xc7   :  { %v325_v23 = vpop.xlane.xlu1 %324  ;;  %v623_v54 = vadd.f32 %v622_v13, %v500_v10  ;;  %v618_v30 = vadd.f32 %v617_v59, %v616_v45  ;;  %v626_v40 = vsel %vm186_vm0, %v503_v48, 0.0  ;;  %v397_v0 = vsub.f32 %v5282_v25, %v3189_v39  ;;  %v5288_v59 = vld [vmem:[#allocation30_spill] sm:$0xff] }
  0xc8   :  { %v3263_v56 = vmul.f32 0.0012755102, %v325_v23  ;;  %v506_v2 = vmul.f32 %v394_v18, %v394_v18  ;;  %v507_v4 = vmul.f32 %v395_v47, %v395_v47  ;;  %v510_v27 = vmul.f32 %v398_v33, %v398_v33  ;;  %v5291_v33 = vld [vmem:[#allocation26_spill] sm:$0xff] }
  0xc9   :  { %v624_v35 = vadd.f32 %v623_v54, %v501_v32  ;;  %v630_v5 = vadd.f32 %v505_v31, %v504_v34  ;;  %619 = vadd.xlane.f32.xlu1 %v618_v30  ;;  %v399_v37 = vsub.f32 %v5283_v6, %v3196_v22  ;;  %v400_v38 = vsub.f32 %v5284_v36, %v3196_v22  ;;  %v1348_v49 = vpop.xlane.xlu0 %1347  ;;  %v5292_v31 = vld [vmem:[#allocation27_spill] sm:$0xff] }
  0xca   :  { %v401_v9 = vsub.f32 %v5285_v3, %v3196_v22  ;;  %v402_v19 = vsub.f32 %v5286_v7, %v3196_v22  ;;  %v508_v51 = vmul.f32 %v396_v61, %v396_v61  ;;  %v403_v60 = vsub.f32 %v5287_v42, %v3196_v22  ;;  %v5297_v42 = vld [vmem:[#allocation32_spill] sm:$0xff] }
  0xcb   :  { %v625_v44 = vadd.f32 %v624_v35, %v502_v28  ;;  %v631_v29 = vadd.f32 %v630_v5, %v506_v2  ;;  %v404_v10 = vsub.f32 %v5288_v59, %v3196_v22  ;;  %v405_v23 = vsub.f32 %v5289_v16, %v3196_v22  ;;  %v5294_v35 = vld [vmem:[#allocation35_spill] sm:$0xff]  ;;  %v5295_v5 = vld [vmem:[#allocation40_spill] sm:$0xff]  ;;  %v5298_v59 = vld [vmem:[#allocation33_spill] sm:$0xff] }
  0xcc   :  { %v511_v46 = vmul.f32 %v399_v37, %v399_v37  ;;  %v512_v32 = vmul.f32 %v400_v38, %v400_v38  ;;  %v509_v11 = vmul.f32 %v397_v0, %v397_v0  ;;  %v513_v13 = vmul.f32 %v401_v9, %v401_v9  ;;  %v1339_v18 = vpop.xlane.xlu1 %1338  ;;  %v5293_v0 = vld [vmem:[#allocation31_spill] sm:$0xff]  ;;  %v5296_v9 = vld [vmem:[#allocation37_spill] sm:$0xff]  ;;  %v5299_v16 = vld [vmem:[#allocation36_spill] sm:$0xff] }
  0xcd   :  { %v627_v48 = vadd.f32 %v626_v40, %v625_v44  ;;  %v632_v41 = vadd.f32 %v631_v29, %v507_v4  ;;  %v3288_v50 = vmul.f32 0.0012755102, %v1348_v49  ;;  %v635_v28 = vsel %vm186_vm0, %v510_v27, 0.0 }
  0xce   :  { %v514_v17 = vmul.f32 %v402_v19, %v402_v19  ;;  %v639_v55 = vadd.f32 %v512_v32, %v511_v46  ;;  %v515_v14 = vmul.f32 %v403_v60, %v403_v60  ;;  %v517_v47 = vmul.f32 %v405_v23, %v405_v23  ;;  %v5300_v46 = vld [vmem:[#allocation38_spill] sm:$0xff] }
  0xcf   :  { %628 = vadd.xlane.f32.xlu0 %v627_v48  ;;  %v633_v45 = vadd.f32 %v632_v41, %v508_v51  ;;  %v406_v61 = vsub.f32 %v5290_v63, %v3200_v15  ;;  %v516_v54 = vmul.f32 %v404_v10, %v404_v10  ;;  %v407_v34 = vsub.f32 %v5291_v33, %v3200_v15 }
  0xd0   :  { %v640_v24 = vadd.f32 %v639_v55, %v513_v13  ;;  %v408_v30 = vsub.f32 %v5292_v31, %v3200_v15  ;;  %v3297_v25 = vmul.f32 0.0012755102, %v1339_v18  ;;  %v409_v2 = vsub.f32 %v5293_v0, %v3200_v15  ;;  %v5302_v55 = vld [vmem:[#allocation49_spill] sm:$0xff] }
  0xd1   :  { %v634_v40 = vadd.f32 %v633_v45, %v509_v11  ;;  %v410_v4 = vsub.f32 %v5294_v35, %v3200_v15  ;;  %v412_v6 = vsub.f32 %v5295_v5, %v3200_v15  ;;  %v518_v37 = vmul.f32 %v406_v61, %v406_v61  ;;  %v1357_v11 = vpop.xlane.xlu0 %1356  ;;  %v5303_v45 = vld [vmem:[#allocation44_spill] sm:$0xff]  ;;  %v1366_v0 = vpop.xlane.xlu1 %1365 }
  0xd2   :  { %v641_v27 = vadd.f32 %v640_v24, %v514_v17  ;;  %v519_v36 = vmul.f32 %v407_v34, %v407_v34  ;;  %v644_v3 = vsel %vm186_vm0, %v517_v47, 0.0  ;;  %v411_v7 = vsub.f32 %v5296_v9, %v3200_v15 }
  0xd3   :  { %v636_v38 = vadd.f32 %v635_v28, %v634_v40  ;;  %v520_v19 = vmul.f32 %v408_v30, %v408_v30  ;;  %v521_v49 = vmul.f32 %v409_v2, %v409_v2  ;;  %v524_v51 = vmul.f32 %v412_v6, %v412_v6  ;;  %v5301_v28 = vld [vmem:[#allocation43_spill] sm:$0xff] }
  0xd4   :  { %v642_v44 = vadd.f32 %v641_v27, %v515_v14  ;;  %v648_v29 = vadd.f32 %v519_v36, %v518_v37  ;;  %v413_v60 = vsub.f32 %v5297_v42, %v3210_v26  ;;  %v414_v10 = vsub.f32 %v5298_v59, %v3210_v26  ;;  %v5304_v27 = vld [vmem:[#allocation39_spill] sm:$0xff]  ;;  %v5305_v36 = vld [vmem:[#allocation41_spill] sm:$0xff] }
  0xd5   :  { %637 = vadd.xlane.f32.xlu1 %v636_v38  ;;  %v415_v23 = vsub.f32 %v5299_v16, %v3210_v26  ;;  %v416_v32 = vsub.f32 %v5300_v46, %v3210_v26  ;;  %v522_v41 = vmul.f32 %v410_v4, %v410_v4  ;;  %v417_v17 = vsub.f32 %v5301_v28, %v3210_v26 }
  0xd6   :  { %v643_v48 = vadd.f32 %v642_v44, %v516_v54  ;;  %v649_v13 = vadd.f32 %v648_v29, %v520_v19  ;;  %v418_v18 = vsub.f32 %v5302_v55, %v3210_v26  ;;  %v419_v14 = vsub.f32 %v5303_v45, %v3210_v26  ;;  %v5307_v44 = vld [vmem:[#allocation45_spill] sm:$0xff]  ;;  %v5311_v55 = vld [vmem:[#allocation46_spill] sm:$0xff]  ;;  %v5312_v45 = vld [vmem:[#allocation47_spill] sm:$0xff] }
  0xd7   :  { %v525_v47 = vmul.f32 %v413_v60, %v413_v60  ;;  %v526_v63 = vmul.f32 %v414_v10, %v414_v10  ;;  %v523_v24 = vmul.f32 %v411_v7, %v411_v7  ;;  %v527_v34 = vmul.f32 %v415_v23, %v415_v23  ;;  %v5309_v60 = vld [vmem:[#allocation55_spill] sm:$0xff] }
  0xd8   :  { %v645_v61 = vadd.f32 %v644_v3, %v643_v48  ;;  %v650_v33 = vadd.f32 %v649_v13, %v521_v49  ;;  %v3322_v31 = vmul.f32 0.0012755102, %v1357_v11  ;;  %v653_v54 = vsel %vm186_vm0, %v524_v51, 0.0  ;;  %v5306_v3 = vld [vmem:[#allocation42_spill] sm:$0xff] }
  0xd9   :  { %v528_v30 = vmul.f32 %v416_v32, %v416_v32  ;;  %v657_v40 = vadd.f32 %v526_v63, %v525_v47  ;;  %v529_v35 = vmul.f32 %v417_v17, %v417_v17  ;;  %v531_v4 = vmul.f32 %v419_v14, %v419_v14  ;;  %v5308_v51 = vld [vmem:[#allocation50_spill] sm:$0xff]  ;;  %v5310_v32 = vld [vmem:[#allocation51_spill] sm:$0xff]  ;;  %v5313_v47 = vld [vmem:[#allocation48_spill] sm:$0xff] }
  0xda   :  { %646 = vadd.xlane.f32.xlu0 %v645_v61  ;;  %v651_v2 = vadd.f32 %v650_v33, %v522_v41  ;;  %v420_v5 = vsub.f32 %v5304_v27, %v3219_v62  ;;  %v530_v6 = vmul.f32 %v418_v18, %v418_v18  ;;  %v421_v38 = vsub.f32 %v5305_v36, %v3219_v62  ;;  %v5314_v61 = vld [vmem:[#allocation52_spill] sm:$0xff] }
  0xdb   :  { %v658_v37 = vadd.f32 %v657_v40, %v527_v34  ;;  %v422_v9 = vsub.f32 %v5306_v3, %v3219_v62  ;;  %v3331_v19 = vmul.f32 0.0012755102, %v1366_v0  ;;  %v423_v49 = vsub.f32 %v5307_v44, %v3219_v62  ;;  %v1647_v34 = vpop.xlane.xlu0 %1646  ;;  %v5315_v40 = vld [vmem:[#allocation56_spill] sm:$0xff] }
  0xdc   :  { %v652_v7 = vadd.f32 %v651_v2, %v523_v24  ;;  %v424_v29 = vsub.f32 %v5308_v51, %v3219_v62  ;;  %v426_v59 = vsub.f32 %v5309_v60, %v3219_v62  ;;  %v532_v10 = vmul.f32 %v420_v5, %v420_v5  ;;  %v5316_v2 = vld [vmem:[#allocation58_spill] sm:$0xff]  ;;  %v1656_v51 = vpop.xlane.xlu1 %1655 }
  0xdd   :  { %v659_v42 = vadd.f32 %v658_v37, %v528_v30  ;;  %v533_v16 = vmul.f32 %v421_v38, %v421_v38  ;;  %v662_v46 = vsel %vm186_vm0, %v531_v4, 0.0  ;;  %v425_v48 = vsub.f32 %v5310_v32, %v3219_v62  ;;  %v5317_v4 = vld [vmem:[#allocation60_spill] sm:$0xff] }
  0xde   :  { %v654_v23 = vadd.f32 %v653_v54, %v652_v7  ;;  %v534_v11 = vmul.f32 %v422_v9, %v422_v9  ;;  %v535_v13 = vmul.f32 %v423_v49, %v423_v49  ;;  %v538_v28 = vmul.f32 %v426_v59, %v426_v59  ;;  %v5318_v59 = vld [vmem:[#allocation53_spill] sm:$0xff] }
  0xdf   :  { %v660_v41 = vadd.f32 %v659_v42, %v529_v35  ;;  %v666_v17 = vadd.f32 %v533_v16, %v532_v10  ;;  %v427_v18 = vsub.f32 %v5311_v55, %v3227_v20  ;;  %v428_v14 = vsub.f32 %v5312_v45, %v3227_v20  ;;  %v5322_v55 = vld [vmem:[#allocation61_spill] sm:$0xff] }
  0xe0   :  { %655 = vadd.xlane.f32.xlu1 %v654_v23  ;;  %v429_v63 = vsub.f32 %v5313_v47, %v3227_v20  ;;  %v430_v24 = vsub.f32 %v5314_v61, %v3227_v20  ;;  %v536_v54 = vmul.f32 %v424_v29, %v424_v29  ;;  %v431_v0 = vsub.f32 %v5315_v40, %v3227_v20 }
  0xe1   :  { %v661_v33 = vadd.f32 %v660_v41, %v530_v6  ;;  %v667_v30 = vadd.f32 %v666_v17, %v534_v11  ;;  %v432_v35 = vsub.f32 %v5316_v2, %v3227_v20  ;;  %v433_v27 = vsub.f32 %v5317_v4, %v3227_v20  ;;  %v1989_v4 = vld [vmem:[%s5125_s0 + $0x310] sm:$0xff] }
  0xe2   :  { %v539_v5 = vmul.f32 %v427_v18, %v427_v18  ;;  %v540_v37 = vmul.f32 %v428_v14, %v428_v14  ;;  %v537_v38 = vmul.f32 %v425_v48, %v425_v48  ;;  %v541_v9 = vmul.f32 %v429_v63, %v429_v63  ;;  %v5320_v48 = vld [vmem:[#allocation57_spill] sm:$0xff]  ;;  %v5323_v14 = vld [vmem:[#allocation62_spill] sm:$0xff] }
  0xe3   :  { %v663_v36 = vadd.f32 %v662_v46, %v661_v33  ;;  %v668_v3 = vadd.f32 %v667_v30, %v535_v13  ;;  %v3356_v7 = vmul.f32 0.0012755102, %v1647_v34  ;;  %v671_v6 = vsel %vm186_vm0, %v538_v28, 0.0  ;;  %v5319_v46 = vld [vmem:[#allocation54_spill] sm:$0xff]  ;;  %v5321_v28 = vld [vmem:[#allocation59_spill] sm:$0xff]  ;;  %v5324_v34 = vld [vmem:[#allocation64_spill] sm:$0xff] }
  0xe4   :  { %v542_v44 = vmul.f32 %v430_v24, %v430_v24  ;;  %v675_v49 = vadd.f32 %v540_v37, %v539_v5  ;;  %v543_v42 = vmul.f32 %v431_v0, %v431_v0  ;;  %v545_v60 = vmul.f32 %v433_v27, %v433_v27  ;;  %v1990_v5 = vld [vmem:[%s5125_s0 + $0x318] sm:$0xff] }
  0xe5   :  { %664 = vadd.xlane.f32.xlu0 %v663_v36  ;;  %v669_v29 = vadd.f32 %v668_v3, %v536_v54  ;;  %v434_v10 = vsub.f32 %v5318_v59, %v3236_v21  ;;  %v544_v16 = vmul.f32 %v432_v35, %v432_v35  ;;  %v435_v32 = vsub.f32 %v5319_v46, %v3236_v21  ;;  %v1991_v36 = vld [vmem:[%s5125_s0 + $0x320] sm:$0xff]  ;;  %v5325_v3 = vld [vmem:[#allocation63_spill] sm:$0xff] }
  0xe6   :  { %v676_v23 = vadd.f32 %v675_v49, %v541_v9  ;;  %v436_v11 = vsub.f32 %v5320_v48, %v3236_v21  ;;  %v3365_v13 = vmul.f32 0.0012755102, %v1656_v51  ;;  %v437_v17 = vsub.f32 %v5321_v28, %v3236_v21  ;;  %v5326_v51 = vld [vmem:[#allocation65_spill] sm:$0xff]  ;;  %v5328_v59 = vld [vmem:[#allocation67_spill] sm:$0xff] }
  0xe7   :  { %v670_v41 = vadd.f32 %v669_v29, %v537_v38  ;;  %v438_v18 = vsub.f32 %v5322_v55, %v3236_v21  ;;  %v440_v47 = vsub.f32 %v5323_v14, %v3236_v21  ;;  %v546_v63 = vmul.f32 %v434_v10, %v434_v10  ;;  %v1992_v14 = vld [vmem:[%s5125_s0 + $0x348] sm:$0xff] }
  0xe8   :  { %v677_v45 = vadd.f32 %v676_v23, %v542_v44  ;;  %v547_v61 = vmul.f32 %v435_v32, %v435_v32  ;;  %v680_v33 = vsel %vm186_vm0, %v545_v60, 0.0  ;;  %v439_v54 = vsub.f32 %v5324_v34, %v3236_v21 }
  0xe9   :  { %v672_v24 = vadd.f32 %v671_v6, %v670_v41  ;;  %v548_v30 = vmul.f32 %v436_v11, %v436_v11  ;;  %v549_v0 = vmul.f32 %v437_v17, %v437_v17  ;;  %v552_v2 = vmul.f32 %v440_v47, %v440_v47 }
  0xea   :  { %v678_v40 = vadd.f32 %v677_v45, %v543_v42  ;;  %v684_v35 = vadd.f32 %v547_v61, %v546_v63  ;;  %v441_v27 = vsub.f32 %v1989_v4, %v3254_v52  ;;  %v442_v37 = vsub.f32 %v1990_v5, %v3254_v52  ;;  %v5327_v42 = vld [vmem:[#allocation66_spill] sm:$0xff]  ;;  %v1993_v63 = vld [vmem:[%s5125_s0 + $0x350] sm:$0xff] }
  0xeb   :  { %673 = vadd.xlane.f32.xlu1 %v672_v24  ;;  %v443_v38 = vsub.f32 %v1991_v36, %v3254_v52  ;;  %v444_v9 = vsub.f32 %v5325_v3, %v3254_v52  ;;  %v550_v44 = vmul.f32 %v438_v18, %v438_v18  ;;  %v445_v29 = vsub.f32 %v5326_v51, %v3254_v52  ;;  %v1665_v24 = vpop.xlane.xlu0 %1664 }
  0xec   :  { %v679_v6 = vadd.f32 %v678_v40, %v544_v16  ;;  %v685_v49 = vadd.f32 %v684_v35, %v548_v30  ;;  %v446_v60 = vsub.f32 %v5327_v42, %v3254_v52  ;;  %v447_v10 = vsub.f32 %v5328_v59, %v3254_v52  ;;  %v1995_v40 = vld [vmem:[%s5125_s0 + $0x360] sm:$0xff]  ;;  %v5329_v35 = vld [vmem:[#allocation68_spill] sm:$0xff] }
  0xed   :  { %v553_v23 = vmul.f32 %v441_v27, %v441_v27  ;;  %v554_v46 = vmul.f32 %v442_v37, %v442_v37  ;;  %v551_v48 = vmul.f32 %v439_v54, %v439_v54  ;;  %v555_v41 = vmul.f32 %v443_v38, %v443_v38  ;;  %v1994_v54 = vld [vmem:[%s5125_s0 + $0x358] sm:$0xff]  ;;  %v5330_v27 = vld [vmem:[#allocation69_spill] sm:$0xff]  ;;  %v5331_v37 = vld [vmem:[#allocation70_spill] sm:$0xff] }
  0xee   :  { %v681_v32 = vadd.f32 %v680_v33, %v679_v6  ;;  %v686_v11 = vadd.f32 %v685_v49, %v549_v0  ;;  %v689_v28 = vsel %vm186_vm0, %v552_v2, 0.0  ;;  %v556_v16 = vmul.f32 %v444_v9, %v444_v9 }
  0xef   :  { %v557_v17 = vmul.f32 %v445_v29, %v445_v29  ;;  %v693_v55 = vadd.f32 %v554_v46, %v553_v23  ;;  %v559_v45 = vmul.f32 %v447_v10, %v447_v10  ;;  %v448_v47 = vsub.f32 %v1992_v14, %v3263_v56  ;;  %v1996_v10 = vld [vmem:[%s5126_s1 + $0x38] sm:$0xff] }
  0xf0   :  { %682 = vadd.xlane.f32.xlu0 %v681_v32  ;;  %v687_v18 = vadd.f32 %v686_v11, %v550_v44  ;;  %v449_v61 = vsub.f32 %v1993_v63, %v3263_v56  ;;  %v558_v33 = vmul.f32 %v446_v60, %v446_v60  ;;  %v450_v30 = vsub.f32 %v1994_v54, %v3263_v56  ;;  %v1997_v32 = vld [vmem:[%s5126_s1 + $0x40] sm:$0xff]  ;;  %v1998_v11 = vld [vmem:[%s5126_s1 + $0x48] sm:$0xff] }
  0xf1   :  { %v694_v34 = vadd.f32 %v693_v55, %v555_v41  ;;  %v451_v0 = vsub.f32 %v1995_v40, %v3263_v56  ;;  %v452_v4 = vsub.f32 %v5329_v35, %v3263_v56  ;;  %v453_v5 = vsub.f32 %v5330_v27, %v3263_v56  ;;  %v5332_v40 = vld [vmem:[#allocation71_spill] sm:$0xff]  ;;  %v2002_v27 = vld [vmem:[%s5126_s1] sm:$0xff] }
  0xf2   :  { %v688_v2 = vadd.f32 %v687_v18, %v551_v48  ;;  %v454_v36 = vsub.f32 %v5331_v37, %v3263_v56  ;;  %v560_v3 = vmul.f32 %v448_v47, %v448_v47  ;;  %v561_v9 = vmul.f32 %v449_v61, %v449_v61  ;;  %v2001_v47 = vld [vmem:[%s5126_s1 + $0x68] sm:$0xff] }
  0xf3   :  { %v695_v38 = vadd.f32 %v694_v34, %v556_v16  ;;  %v562_v6 = vmul.f32 %v450_v30, %v450_v30  ;;  %v3419_v44 = vmul.f32 0.0012755102, %v1665_v24  ;;  %v698_v51 = vsel %vm186_vm0, %v559_v45, 0.0  ;;  %v2000_v45 = vld [vmem:[%s5126_s1 + $0x58] sm:$0xff] }
  0xf4   :  { %v690_v49 = vadd.f32 %v689_v28, %v688_v2  ;;  %v563_v29 = vmul.f32 %v451_v0, %v451_v0  ;;  %v566_v60 = vmul.f32 %v454_v36, %v454_v36  ;;  %v702_v59 = vadd.f32 %v561_v9, %v560_v3  ;;  %v1999_v28 = vld [vmem:[%s5126_s1 + $0x50] sm:$0xff]  ;;  %v2003_v36 = vld [vmem:[%s5126_s1 + $0x8] sm:$0xff] }
  0xf5   :  { %v696_v42 = vadd.f32 %v695_v38, %v557_v17  ;;  %v1378_v23 = vsub.f32 %v1996_v10, %v3288_v50  ;;  %v564_v46 = vmul.f32 %v452_v4, %v452_v4  ;;  %v1379_v48 = vsub.f32 %v1997_v32, %v3288_v50  ;;  %v2004_v3 = vld [vmem:[%s5126_s1 + $0x10] sm:$0xff] }
  0xf6   :  { %691 = vadd.xlane.f32.xlu1 %v690_v49  ;;  %v1380_v41 = vsub.f32 %v1998_v11, %v3288_v50  ;;  %v1381_v16 = vsub.f32 %v1999_v28, %v3288_v50  ;;  %v565_v55 = vmul.f32 %v453_v5, %v453_v5  ;;  %v703_v18 = vadd.f32 %v702_v59, %v562_v6  ;;  %v2005_v6 = vld [vmem:[%s5126_s1 + $0x18] sm:$0xff]  ;;  %v2007_v59 = vld [vmem:[%s5126_s1 + $0x28] sm:$0xff] }
  0xf7   :  { %v697_v17 = vadd.f32 %v696_v42, %v558_v33  ;;  %v1382_v14 = vsub.f32 %v2000_v45, %v3288_v50  ;;  %v1384_v63 = vsub.f32 %v2001_v47, %v3288_v50  ;;  %v1406_v61 = vmul.f32 %v1378_v23, %v1378_v23  ;;  %v2006_v42 = vld [vmem:[%s5126_s1 + $0x20] sm:$0xff] }
  0xf8   :  { %v1407_v24 = vmul.f32 %v1379_v48, %v1379_v48  ;;  %v1408_v34 = vmul.f32 %v1380_v41, %v1380_v41  ;;  %v704_v30 = vadd.f32 %v703_v18, %v563_v29  ;;  %v707_v33 = vsel %vm186_vm0, %v566_v60, 0.0 }
  0xf9   :  { %v699_v54 = vadd.f32 %v698_v51, %v697_v17  ;;  %v1383_v0 = vsub.f32 %v5332_v40, %v3288_v50  ;;  %v1409_v2 = vmul.f32 %v1381_v16, %v1381_v16  ;;  %v1412_v35 = vmul.f32 %v1384_v63, %v1384_v63 }
  0xfa   :  { %v1436_v4 = vadd.f32 %v1407_v24, %v1406_v61  ;;  %v1371_v5 = vsub.f32 %v2002_v27, %v3297_v25  ;;  %v705_v37 = vadd.f32 %v704_v30, %v564_v46  ;;  %v1372_v38 = vsub.f32 %v2003_v36, %v3297_v25  ;;  %v2008_v46 = vld [vmem:[%s5126_s1 + $0x30] sm:$0xff]  ;;  %v2010_v24 = vld [vmem:[%s5126_s1 + $0x78] sm:$0xff]  ;;  %v2014_v36 = vld [vmem:[%s5126_s1 + $0xa0] sm:$0xff] }
  0xfb   :  { %700 = vadd.xlane.f32.xlu0 %v699_v54  ;;  %v1373_v9 = vsub.f32 %v2004_v3, %v3297_v25  ;;  %v1374_v49 = vsub.f32 %v2005_v6, %v3297_v25  ;;  %v1410_v51 = vmul.f32 %v1382_v14, %v1382_v14  ;;  %v1375_v60 = vsub.f32 %v2006_v42, %v3297_v25  ;;  %v2011_v54 = vld [vmem:[%s5126_s1 + $0x80] sm:$0xff]  ;;  %v2015_v6 = vld [vmem:[%s5126_s1 + $0x98] sm:$0xff] }
  0xfc   :  { %v1437_v29 = vadd.f32 %v1436_v4, %v1408_v34  ;;  %v1376_v10 = vsub.f32 %v2007_v59, %v3297_v25  ;;  %v706_v23 = vadd.f32 %v705_v37, %v565_v55  ;;  %v1377_v32 = vsub.f32 %v2008_v46, %v3297_v25  ;;  %v2009_v55 = vld [vmem:[%s5126_s1 + $0x70] sm:$0xff] }
  0xfd   :  { %v1399_v48 = vmul.f32 %v1371_v5, %v1371_v5  ;;  %v1400_v11 = vmul.f32 %v1372_v38, %v1372_v38  ;;  %v1411_v41 = vmul.f32 %v1383_v0, %v1383_v0  ;;  %v1441_v16 = vsel %vm186_vm0, %v1412_v35, 0.0  ;;  %v2012_v35 = vld [vmem:[%s5126_s1 + $0x88] sm:$0xff]  ;;  %v2013_v5 = vld [vmem:[%s5126_s1 + $0x90] sm:$0xff] }
  0xfe   :  { %v1438_v28 = vadd.f32 %v1437_v29, %v1409_v2  ;;  %v1401_v17 = vmul.f32 %v1373_v9, %v1373_v9  ;;  %v708_v18 = vadd.f32 %v707_v33, %v706_v23  ;;  %v1402_v45 = vmul.f32 %v1374_v49, %v1374_v49  ;;  %v1674_v33 = vpop.xlane.xlu1 %1673 }
  0xff   :  { %v1403_v14 = vmul.f32 %v1375_v60, %v1375_v60  ;;  %v1427_v47 = vadd.f32 %v1400_v11, %v1399_v48  ;;  %v1385_v61 = vsub.f32 %v2009_v55, %v3322_v31  ;;  %v1386_v34 = vsub.f32 %v2010_v24, %v3322_v31  ;;  %v2017_v11 = vld [vmem:[%s5126_s1 + $0xb0] sm:$0xff] }
 0x100   :  { %v1439_v63 = vadd.f32 %v1438_v28, %v1410_v51  ;;  %v1387_v30 = vsub.f32 %v2011_v54, %v3322_v31  ;;  %709 = vadd.xlane.f32.xlu1 %v708_v18  ;;  %v1404_v40 = vmul.f32 %v1376_v10, %v1376_v10  ;;  %v1405_v0 = vmul.f32 %v1377_v32, %v1377_v32  ;;  %v2016_v32 = vld [vmem:[%s5126_s1 + $0xa8] sm:$0xff] }
 0x101   :  { %v1428_v2 = vadd.f32 %v1427_v47, %v1401_v17  ;;  %v1388_v4 = vsub.f32 %v2012_v35, %v3322_v31  ;;  %v1389_v37 = vsub.f32 %v2013_v5, %v3322_v31  ;;  %v1391_v38 = vsub.f32 %v2014_v36, %v3322_v31  ;;  %v2018_v17 = vld [vmem:[%s5126_s1 + $0xb8] sm:$0xff]  ;;  %v2023_v36 = vld [vmem:[%s5127_s2] sm:$0xff] }
 0x102   :  { %v1440_v27 = vadd.f32 %v1439_v63, %v1411_v41  ;;  %v1413_v3 = vmul.f32 %v1385_v61, %v1385_v61  ;;  %v1390_v49 = vsub.f32 %v2015_v6, %v3322_v31  ;;  %v1414_v51 = vmul.f32 %v1386_v34, %v1386_v34  ;;  %v2020_v61 = vld [vmem:[%s5126_s1 + $0xc8] sm:$0xff]  ;;  %v2021_v34 = vld [vmem:[%s5126_s1 + $0xd8] sm:$0xff] }
 0x103   :  { %v1429_v9 = vadd.f32 %v1428_v2, %v1402_v45  ;;  %v1415_v29 = vmul.f32 %v1387_v30, %v1387_v30  ;;  %v3506_v42 = vmul.f32 0.0012755102, %v1674_v33  ;;  %v1416_v59 = vmul.f32 %v1388_v4, %v1388_v4  ;;  %v2019_v45 = vld [vmem:[%s5126_s1 + $0xc0] sm:$0xff]  ;;  %v2022_v4 = vld [vmem:[%s5126_s1 + $0xd0] sm:$0xff] }
 0x104   :  { %v1442_v60 = vadd.f32 %v1441_v16, %v1440_v27  ;;  %v1419_v10 = vmul.f32 %v1391_v38, %v1391_v38  ;;  %v1445_v46 = vadd.f32 %v1414_v51, %v1413_v3  ;;  %v1392_v48 = vsub.f32 %v2016_v32, %v3331_v19  ;;  %v2024_v3 = vld [vmem:[%s5127_s2 + $0x8] sm:$0xff]  ;;  %v2025_v51 = vld [vmem:[%s5127_s2 + $0x10] sm:$0xff] }
 0x105   :  { %v1430_v23 = vadd.f32 %v1429_v9, %v1403_v14  ;;  %v1393_v41 = vsub.f32 %v2017_v11, %v3331_v19  ;;  %v1432_v28 = vsel %vm186_vm0, %v1405_v0, 0.0  ;;  %v1417_v16 = vmul.f32 %v1389_v37, %v1389_v37 }
 0x106   :  { %1443 = vadd.xlane.f32.xlu0 %v1442_v60  ;;  %v1394_v18 = vsub.f32 %v2018_v17, %v3331_v19  ;;  %v1395_v14 = vsub.f32 %v2019_v45, %v3331_v19  ;;  %v1418_v63 = vmul.f32 %v1390_v49, %v1390_v49  ;;  %v1446_v55 = vadd.f32 %v1445_v46, %v1415_v29  ;;  %v2026_v60 = vld [vmem:[%s5127_s2 + $0x18] sm:$0xff]  ;;  %v2027_v46 = vld [vmem:[%s5127_s2 + $0x20] sm:$0xff] }
 0x107   :  { %v1431_v47 = vadd.f32 %v1430_v23, %v1404_v40  ;;  %v1396_v24 = vsub.f32 %v2020_v61, %v3331_v19  ;;  %v1398_v54 = vsub.f32 %v2021_v34, %v3331_v19  ;;  %v1420_v30 = vmul.f32 %v1392_v48, %v1392_v48  ;;  %v2028_v48 = vld [vmem:[%s5127_s2 + $0x30] sm:$0xff] }
 0x108   :  { %v1421_v33 = vmul.f32 %v1393_v41, %v1393_v41  ;;  %v1422_v0 = vmul.f32 %v1394_v18, %v1394_v18  ;;  %v1447_v35 = vadd.f32 %v1446_v55, %v1416_v59  ;;  %v1450_v40 = vsel %vm186_vm0, %v1419_v10, 0.0 }
 0x109   :  { %v1433_v2 = vadd.f32 %v1432_v28, %v1431_v47  ;;  %v1397_v27 = vsub.f32 %v2022_v4, %v3331_v19  ;;  %v1423_v5 = vmul.f32 %v1395_v14, %v1395_v14  ;;  %v1679_v38 = vsub.f32 %v2023_v36, %v3356_v7  ;;  %v2029_v14 = vld [vmem:[%s5127_s2 + $0x28] sm:$0xff]  ;;  %v2034_v36 = vld [vmem:[%s5127_s2 + $0x58] sm:$0xff] }
 0x10a   :  { %v1454_v37 = vadd.f32 %v1421_v33, %v1420_v30  ;;  %v1680_v9 = vsub.f32 %v2024_v3, %v3356_v7  ;;  %v1448_v6 = vadd.f32 %v1447_v35, %v1417_v16  ;;  %v1424_v49 = vmul.f32 %v1396_v24, %v1396_v24  ;;  %v2031_v33 = vld [vmem:[%s5127_s2 + $0x40] sm:$0xff] }
 0x10b   :  { %1434 = vadd.xlane.f32.xlu1 %v1433_v2  ;;  %v1681_v29 = vsub.f32 %v2025_v51, %v3356_v7  ;;  %v1682_v59 = vsub.f32 %v2026_v60, %v3356_v7  ;;  %v1426_v10 = vmul.f32 %v1398_v54, %v1398_v54  ;;  %v1683_v32 = vsub.f32 %v2027_v46, %v3356_v7  ;;  %v2030_v54 = vld [vmem:[%s5127_s2 + $0x38] sm:$0xff]  ;;  %v2032_v2 = vld [vmem:[%s5127_s2 + $0x48] sm:$0xff] }
 0x10c   :  { %v1455_v23 = vadd.f32 %v1454_v37, %v1422_v0  ;;  %v1685_v11 = vsub.f32 %v2028_v48, %v3356_v7  ;;  %v1449_v41 = vadd.f32 %v1448_v6, %v1418_v63  ;;  %v1707_v28 = vmul.f32 %v1679_v38, %v1679_v38 }
 0x10d   :  { %v1708_v16 = vmul.f32 %v1680_v9, %v1680_v9  ;;  %v1709_v17 = vmul.f32 %v1681_v29, %v1681_v29  ;;  %v1425_v18 = vmul.f32 %v1397_v27, %v1397_v27  ;;  %v1684_v47 = vsub.f32 %v2029_v14, %v3356_v7  ;;  %v2035_v9 = vld [vmem:[%s5127_s2 + $0x60] sm:$0xff] }
 0x10e   :  { %v1456_v45 = vadd.f32 %v1455_v23, %v1423_v5  ;;  %v1710_v55 = vmul.f32 %v1682_v59, %v1682_v59  ;;  %v1451_v61 = vadd.f32 %v1450_v40, %v1449_v41  ;;  %v1713_v24 = vmul.f32 %v1685_v11, %v1685_v11  ;;  %v2033_v40 = vld [vmem:[%s5127_s2 + $0x50] sm:$0xff]  ;;  %v2036_v59 = vld [vmem:[%s5127_s2 + $0x68] sm:$0xff] }
 0x10f   :  { %v1735_v34 = vadd.f32 %v1708_v16, %v1707_v28  ;;  %v1686_v63 = vsub.f32 %v2030_v54, %v3365_v13  ;;  %v1687_v0 = vsub.f32 %v2031_v33, %v3365_v13  ;;  %v1688_v35 = vsub.f32 %v2032_v2, %v3365_v13  ;;  %v2037_v28 = vld [vmem:[%s5127_s2 + $0x70] sm:$0xff] }
 0x110   :  { %v1457_v30 = vadd.f32 %v1456_v45, %v1424_v49  ;;  %v1689_v4 = vsub.f32 %v2033_v40, %v3365_v13  ;;  %1452 = vadd.xlane.f32.xlu0 %v1451_v61  ;;  %v1459_v27 = vsel %vm186_vm0, %v1426_v10, 0.0  ;;  %v1711_v5 = vmul.f32 %v1683_v32, %v1683_v32  ;;  %v2039_v45 = vld [vmem:[%s5127_s2 + $0x80] sm:$0xff] }
 0x111   :  { %v1736_v37 = vadd.f32 %v1735_v34, %v1709_v17  ;;  %v1690_v38 = vsub.f32 %v2034_v36, %v3365_v13  ;;  %v1691_v6 = vsub.f32 %v2035_v9, %v3365_v13  ;;  %v1714_v49 = vmul.f32 %v1686_v63, %v1686_v63  ;;  %v2038_v17 = vld [vmem:[%s5127_s2 + $0x78] sm:$0xff] }
 0x112   :  { %v1458_v3 = vadd.f32 %v1457_v30, %v1425_v18  ;;  %v1715_v51 = vmul.f32 %v1687_v0, %v1687_v0  ;;  %v1712_v29 = vmul.f32 %v1684_v47, %v1684_v47  ;;  %v1692_v10 = vsub.f32 %v2036_v59, %v3365_v13  ;;  %v2041_v30 = vld [vmem:[%s5127_s2 + $0x90] sm:$0xff]  ;;  %v2046_v59 = vld [vmem:[%s5127_s2 + $0xb8] sm:$0xff] }
 0x113   :  { %v1737_v60 = vadd.f32 %v1736_v37, %v1710_v55  ;;  %v1716_v23 = vmul.f32 %v1688_v35, %v1688_v35  ;;  %v1740_v32 = vsel %vm186_vm0, %v1713_v24, 0.0  ;;  %v1717_v48 = vmul.f32 %v1689_v4, %v1689_v4  ;;  %v2040_v24 = vld [vmem:[%s5127_s2 + $0x88] sm:$0xff]  ;;  %v2042_v35 = vld [vmem:[%s5127_s2 + $0xa0] sm:$0xff]  ;;  %v2043_v37 = vld [vmem:[%s5127_s2 + $0x98] sm:$0xff] }
 0x114   :  { %v1460_v46 = vadd.f32 %v1459_v27, %v1458_v3  ;;  %v1744_v11 = vadd.f32 %v1715_v51, %v1714_v49  ;;  %v1693_v16 = vsub.f32 %v2037_v28, %v3419_v44  ;;  %v1694_v18 = vsub.f32 %v2038_v17, %v3419_v44  ;;  %v2045_v51 = vld [vmem:[%s5127_s2 + $0xb0] sm:$0xff]  ;;  %v2048_v28 = vld [vmem:[%s5127_s2 + $0xc8] sm:$0xff] }
 0x115   :  { %v1738_v41 = vadd.f32 %v1737_v60, %v1711_v5  ;;  %v1695_v14 = vsub.f32 %v2039_v45, %v3419_v44  ;;  %v1718_v47 = vmul.f32 %v1690_v38, %v1690_v38  ;;  %v1719_v55 = vmul.f32 %v1691_v6, %v1691_v6  ;;  %v2044_v6 = vld [vmem:[%s5127_s2 + $0xa8] sm:$0xff] }
 0x116   :  { %1461 = vadd.xlane.f32.xlu1 %v1460_v46  ;;  %v1745_v61 = vadd.f32 %v1744_v11, %v1716_v23  ;;  %v1696_v34 = vsub.f32 %v2040_v24, %v3419_v44  ;;  %v1720_v63 = vmul.f32 %v1692_v10, %v1692_v10  ;;  %v1697_v33 = vsub.f32 %v2041_v30, %v3419_v44  ;;  %v2047_v23 = vld [vmem:[%s5127_s2 + $0xc0] sm:$0xff]  ;;  %v2049_v24 = vld [vmem:[%s5127_s2 + $0xd8] sm:$0xff] }
 0x117   :  { %v1739_v54 = vadd.f32 %v1738_v41, %v1712_v29  ;;  %v1721_v0 = vmul.f32 %v1693_v16, %v1693_v16  ;;  %v1699_v40 = vsub.f32 %v2042_v35, %v3419_v44  ;;  %v1722_v4 = vmul.f32 %v1694_v18, %v1694_v18 }
 0x118   :  { %v1746_v2 = vadd.f32 %v1745_v61, %v1717_v48  ;;  %v1723_v27 = vmul.f32 %v1695_v14, %v1695_v14  ;;  %v1698_v36 = vsub.f32 %v2043_v37, %v3419_v44  ;;  %v1724_v38 = vmul.f32 %v1696_v34, %v1696_v34  ;;  %v2050_v34 = vld [vmem:[%s5127_s2 + $0xd0] sm:$0xff] }
 0x119   :  { %v1741_v5 = vadd.f32 %v1740_v32, %v1739_v54  ;;  %v1753_v9 = vadd.f32 %v1722_v4, %v1721_v0  ;;  %v1700_v49 = vsub.f32 %v2044_v6, %v3506_v42  ;;  %v1701_v29 = vsub.f32 %v2045_v51, %v3506_v42 }
 0x11a   :  { %v1747_v3 = vadd.f32 %v1746_v2, %v1718_v47  ;;  %v1749_v60 = vsel %vm186_vm0, %v1720_v63, 0.0  ;;  %v1702_v10 = vsub.f32 %v2046_v59, %v3506_v42  ;;  %v1703_v46 = vsub.f32 %v2047_v23, %v3506_v42 }
 0x11b   :  { %1742 = vadd.xlane.f32.xlu0 %v1741_v5  ;;  %v1725_v48 = vmul.f32 %v1697_v33, %v1697_v33  ;;  %v1727_v11 = vmul.f32 %v1699_v40, %v1699_v40  ;;  %v1754_v41 = vadd.f32 %v1753_v9, %v1723_v27  ;;  %v1704_v16 = vsub.f32 %v2048_v28, %v3506_v42 }
 0x11c   :  { %v1748_v32 = vadd.f32 %v1747_v3, %v1719_v55  ;;  %v1728_v17 = vmul.f32 %v1700_v49, %v1700_v49  ;;  %v1729_v18 = vmul.f32 %v1701_v29, %v1701_v29  ;;  %v1730_v45 = vmul.f32 %v1702_v10, %v1702_v10 }
 0x11d   :  { %v1726_v47 = vmul.f32 %v1698_v36, %v1698_v36  ;;  %v1755_v61 = vadd.f32 %v1754_v41, %v1724_v38  ;;  %v1706_v55 = vsub.f32 %v2049_v24, %v3506_v42  ;;  %v1705_v54 = vsub.f32 %v2050_v34, %v3506_v42 }
 0x11e   :  { %v1750_v14 = vadd.f32 %v1749_v60, %v1748_v32  ;;  %v1731_v63 = vmul.f32 %v1703_v46, %v1703_v46  ;;  %v1762_v30 = vadd.f32 %v1729_v18, %v1728_v17  ;;  %v2243_v0 = vmov 0  }
 0x11f   :  { %v1756_v33 = vadd.f32 %v1755_v61, %v1725_v48  ;;  %1939 = vset.pattern.permute.xlu0 %v2243_v0  ;;  %v1758_v2 = vsel %vm186_vm0, %v1727_v11, 0.0  ;;  %v1732_v35 = vmul.f32 %v1704_v16, %v1704_v16  ;;  %1940 = vset.pattern.permute.xlu1 %v2243_v0  ;;  %v1734_v27 = vmul.f32 %v1706_v55, %v1706_v55  ;;  %v21_v48 = vld [vmem:[%s5128_s3] sm:$0xff] }
 0x120   :  { %1751 = vadd.xlane.f32.xlu1 %v1750_v14  ;;  %v1763_v40 = vadd.f32 %v1762_v30, %v1730_v45  ;;  %v1733_v5 = vmul.f32 %v1705_v54, %v1705_v54  ;;  %v22_v14 = vld [vmem:[%s5128_s3 + $0x8] sm:$0xff]  ;;  %v23_v54 = vld [vmem:[%s5128_s3 + $0x10] sm:$0xff] }
 0x121   :  { %v1757_v4 = vadd.f32 %v1756_v33, %v1726_v47  ;;  %v1767_v3 = vsel %vm186_vm0, %v1734_v27, 0.0 }
 0x122   :  { %v1764_v37 = vadd.f32 %v1763_v40, %v1731_v63 }
 0x123   :  { %v1759_v36 = vadd.f32 %v1758_v2, %v1757_v4  ;;  %v24_v2 = vld [vmem:[%s5128_s3 + $0x18] sm:$0xff] }
 0x124   :  { %v1765_v38 = vadd.f32 %v1764_v37, %v1732_v35 }
 0x125   :  { %1760 = vadd.xlane.f32.xlu0 %v1759_v36 }
 0x126   :  { %v1766_v9 = vadd.f32 %v1765_v38, %v1733_v5  ;;  %v25_v5 = vld [vmem:[%s5128_s3 + $0x20] sm:$0xff] }
 0x128   :  { %v1768_v6 = vadd.f32 %v1767_v3, %v1766_v9  ;;  %v26_v9 = vld [vmem:[%s5128_s3 + $0x28] sm:$0xff] }
 0x12a   :  { %1769 = vadd.xlane.f32.xlu1 %v1768_v6 }
 0x13d   :  { %v575_v49 = vpop.xlane.xlu0 %574 }
 0x13e   :  { %v711_v51 = vmul.f32 0.0012755102, %v575_v49 }
 0x140   :  { %v727_v29 = vadd.f32 1e-05, %v711_v51 }
 0x141   :  { %v593_v60 = vpop.xlane.xlu0 %592 }
 0x142   :  { %1941 = vrsqrt.f32 %v727_v29  ;;  %v713_v59 = vmul.f32 0.0012755102, %v593_v60 }
 0x144   :  { %v729_v32 = vadd.f32 1e-05, %v713_v59  ;;  %v27_v59 = vld [vmem:[%s5128_s3 + $0x30] sm:$0xff] }
 0x146   :  { %v584_v10 = vpop.xlane.xlu1 %583 }
 0x147   :  { %v712_v23 = vmul.f32 0.0012755102, %v584_v10 }
 0x149   :  { %v728_v46 = vadd.f32 1e-05, %v712_v23 }
 0x14b   :  { %1943 = vrsqrt.f32 %v728_v46  ;;  %v602_v11 = vpop.xlane.xlu1 %601 }
 0x14c   :  { %v1942_v41 = vpop.eup %1941  ;;  %v714_v28 = vmul.f32 0.0012755102, %v602_v11  ;;  %1945 = vrsqrt.f32 %v729_v32  ;;  %v28_v11 = vld [vmem:[%s5128_s3 + $0x38] sm:$0xff] }
 0x14d   :  { %v3658_v16 = vmul.f32 %v1942_v41, %v21_v48 }
 0x14e   :  { %v730_v17 = vadd.f32 1e-05, %v714_v28 }
 0x14f   :  { %809 = vperm.xlu0 %1939, %v3658_v16  }
 0x150   :  { %1947 = vrsqrt.f32 %v730_v17 }
 0x151   :  { %v611_v18 = vpop.xlane.xlu0 %610 }
 0x152   :  { %v715_v45 = vmul.f32 0.0012755102, %v611_v18 }
 0x154   :  { %v731_v61 = vadd.f32 1e-05, %v715_v45 }
 0x155   :  { %v1944_v47 = vpop.eup %1943 }
 0x156   :  { %v3664_v24 = vmul.f32 %v1944_v47, %v22_v14  ;;  %v1946_v55 = vpop.eup %1945  ;;  %1949 = vrsqrt.f32 %v731_v61  ;;  %v620_v34 = vpop.xlane.xlu1 %619  ;;  %v29_v14 = vld [vmem:[%s5128_s3 + $0x40] sm:$0xff] }
 0x157   :  { %v716_v63 = vmul.f32 0.0012755102, %v620_v34  ;;  %v3670_v33 = vmul.f32 %v1946_v55, %v23_v54 }
 0x158   :  { %814 = vperm.xlu1 %1940, %v3664_v24  }
 0x159   :  { %v732_v30 = vadd.f32 1e-05, %v716_v63  ;;  %v30_v63 = vld [vmem:[%s5128_s3 + $0x48] sm:$0xff] }
 0x15a   :  { %v1948_v0 = vpop.eup %1947 }
 0x15b   :  { %1951 = vrsqrt.f32 %v732_v30  ;;  %v3676_v4 = vmul.f32 %v1948_v0, %v24_v2 }
 0x15c   :  { %v629_v35 = vpop.xlane.xlu0 %628  ;;  %819 = vperm.xlu1 %1940, %v3670_v33  }
 0x15d   :  { %v717_v40 = vmul.f32 0.0012755102, %v629_v35 }
 0x15f   :  { %v733_v27 = vadd.f32 1e-05, %v717_v40 }
 0x160   :  { %824 = vperm.xlu1 %1940, %v3676_v4   ;;  %v1950_v37 = vpop.eup %1949 }
 0x161   :  { %1953 = vrsqrt.f32 %v733_v27  ;;  %v3682_v38 = vmul.f32 %v1950_v37, %v25_v5  ;;  %v31_v27 = vld [vmem:[%s5128_s3 + $0x50] sm:$0xff] }
 0x162   :  { %v638_v36 = vpop.xlane.xlu1 %637 }
 0x163   :  { %v718_v3 = vmul.f32 0.0012755102, %v638_v36 }
 0x164   :  { %829 = vperm.xlu1 %1940, %v3682_v38  }
 0x165   :  { %v734_v6 = vadd.f32 1e-05, %v718_v3  ;;  %v1952_v49 = vpop.eup %1951 }
 0x166   :  { %v3688_v29 = vmul.f32 %v1952_v49, %v26_v9 }
 0x167   :  { %1955 = vrsqrt.f32 %v734_v6  ;;  %v647_v51 = vpop.xlane.xlu0 %646  ;;  %v32_v6 = vld [vmem:[%s5128_s3 + $0x58] sm:$0xff] }
 0x168   :  { %v719_v60 = vmul.f32 0.0012755102, %v647_v51  ;;  %834 = vperm.xlu1 %1940, %v3688_v29  }
 0x16a   :  { %v735_v10 = vadd.f32 1e-05, %v719_v60 }
 0x16b   :  { %v1954_v23 = vpop.eup %1953 }
 0x16c   :  { %1957 = vrsqrt.f32 %v735_v10  ;;  %v3694_v46 = vmul.f32 %v1954_v23, %v27_v59  ;;  %v33_v23 = vld [vmem:[%s5128_s3 + $0x60] sm:$0xff] }
 0x16d   :  { %v656_v32 = vpop.xlane.xlu1 %655 }
 0x16e   :  { %v720_v48 = vmul.f32 0.0012755102, %v656_v32  ;;  %839 = vperm.xlu1 %1940, %v3694_v46  }
 0x170   :  { %v736_v41 = vadd.f32 1e-05, %v720_v48 }
 0x171   :  { %v1956_v28 = vpop.eup %1955 }
 0x172   :  { %1959 = vrsqrt.f32 %v736_v41  ;;  %v665_v17 = vpop.xlane.xlu0 %664  ;;  %v3700_v18 = vmul.f32 %v1956_v28, %v28_v11 }
 0x173   :  { %v721_v45 = vmul.f32 0.0012755102, %v665_v17  ;;  %v34_v17 = vld [vmem:[%s5128_s3 + $0x68] sm:$0xff] }
 0x174   :  { %844 = vperm.xlu1 %1940, %v3700_v18  }
 0x175   :  { %v737_v47 = vadd.f32 1e-05, %v721_v45 }
 0x176   :  { %v1958_v61 = vpop.eup %1957 }
 0x177   :  { %1961 = vrsqrt.f32 %v737_v47  ;;  %v3706_v55 = vmul.f32 %v1958_v61, %v29_v14 }
 0x178   :  { %v674_v34 = vpop.xlane.xlu1 %673 }
 0x179   :  { %v722_v54 = vmul.f32 0.0012755102, %v674_v34  ;;  %849 = vperm.xlu1 %1940, %v3706_v55  }
 0x17b   :  { %v738_v30 = vadd.f32 1e-05, %v722_v54  ;;  %v35_v54 = vld [vmem:[%s5128_s3 + $0x70] sm:$0xff] }
 0x17c   :  { %v1960_v0 = vpop.eup %1959 }
 0x17d   :  { %1963 = vrsqrt.f32 %v738_v30  ;;  %v683_v2 = vpop.xlane.xlu0 %682  ;;  %v3712_v35 = vmul.f32 %v1960_v0, %v30_v63 }
 0x17e   :  { %v723_v40 = vmul.f32 0.0012755102, %v683_v2 }
 0x17f   :  { %854 = vperm.xlu0 %1939, %v3712_v35  }
 0x180   :  { %v739_v5 = vadd.f32 1e-05, %v723_v40 }
 0x181   :  { %v1962_v37 = vpop.eup %1961 }
 0x182   :  { %1965 = vrsqrt.f32 %v739_v5  ;;  %v3718_v36 = vmul.f32 %v1962_v37, %v31_v27  ;;  %v36_v5 = vld [vmem:[%s5128_s3 + $0x78] sm:$0xff] }
 0x183   :  { %v692_v3 = vpop.xlane.xlu1 %691 }
 0x184   :  { %v724_v9 = vmul.f32 0.0012755102, %v692_v3  ;;  %859 = vperm.xlu0 %1939, %v3718_v36  }
 0x186   :  { %v740_v49 = vadd.f32 1e-05, %v724_v9 }
 0x187   :  { %v1964_v51 = vpop.eup %1963 }
 0x188   :  { %1967 = vrsqrt.f32 %v740_v49  ;;  %v701_v60 = vpop.xlane.xlu0 %700  ;;  %v3724_v59 = vmul.f32 %v1964_v51, %v32_v6  ;;  %v38_v49 = vld [vmem:[%s5128_s3 + $0x88] sm:$0xff] }
 0x189   :  { %v725_v10 = vmul.f32 0.0012755102, %v701_v60 }
 0x18a   :  { %864 = vperm.xlu1 %1940, %v3724_v59  }
 0x18b   :  { %v741_v32 = vadd.f32 1e-05, %v725_v10 }
 0x18c   :  { %v1966_v48 = vpop.eup %1965 }
 0x18d   :  { %1969 = vrsqrt.f32 %v741_v32  ;;  %v3730_v11 = vmul.f32 %v1966_v48, %v33_v23  ;;  %v710_v41 = vpop.xlane.xlu1 %709  ;;  %v37_v48 = vld [vmem:[%s5128_s3 + $0x80] sm:$0xff] }
 0x18e   :  { %v726_v28 = vmul.f32 0.0012755102, %v710_v41 }
 0x18f   :  { %869 = vperm.xlu1 %1940, %v3730_v11  }
 0x190   :  { %v742_v45 = vadd.f32 1e-05, %v726_v28 }
 0x192   :  { %v1968_v14 = vpop.eup %1967  ;;  %1971 = vrsqrt.f32 %v742_v45 }
 0x193   :  { %v1444_v47 = vpop.xlane.xlu0 %1443  ;;  %v3736_v61 = vmul.f32 %v1968_v14, %v34_v17 }
 0x194   :  { %v1464_v34 = vmul.f32 0.0012755102, %v1444_v47 }
 0x195   :  { %874 = vperm.xlu0 %1939, %v3736_v61  }
 0x196   :  { %v1468_v63 = vadd.f32 1e-05, %v1464_v34  ;;  %v39_v34 = vld [vmem:[%s5128_s3 + $0x90] sm:$0xff] }
 0x197   :  { %v1970_v30 = vpop.eup %1969 }
 0x198   :  { %1973 = vrsqrt.f32 %v1468_v63  ;;  %v1435_v0 = vpop.xlane.xlu1 %1434  ;;  %v3742_v2 = vmul.f32 %v1970_v30, %v35_v54 }
 0x199   :  { %v1463_v40 = vmul.f32 0.0012755102, %v1435_v0 }
 0x19a   :  { %879 = vperm.xlu1 %1940, %v3742_v2  }
 0x19b   :  { %v1467_v27 = vadd.f32 1e-05, %v1463_v40 }
 0x19c   :  { %v1972_v37 = vpop.eup %1971 }
 0x19d   :  { %1975 = vrsqrt.f32 %v1467_v27  ;;  %v1453_v3 = vpop.xlane.xlu0 %1452  ;;  %v3748_v9 = vmul.f32 %v1972_v37, %v36_v5  ;;  %v40_v27 = vld [vmem:[%s5128_s3 + $0x98] sm:$0xff] }
 0x19e   :  { %v1465_v6 = vmul.f32 0.0012755102, %v1453_v3 }
 0x19f   :  { %884 = vperm.xlu0 %1939, %v3748_v9  }
 0x1a0   :  { %v1469_v51 = vadd.f32 1e-05, %v1465_v6 }
 0x1a2   :  { %v1974_v60 = vpop.eup %1973  ;;  %1977 = vrsqrt.f32 %v1469_v51 }
 0x1a3   :  { %v1462_v10 = vpop.xlane.xlu1 %1461  ;;  %v3754_v23 = vmul.f32 %v1974_v60, %v38_v49  ;;  %v41_v49 = vld [vmem:[%s5128_s3 + $0xa0] sm:$0xff] }
 0x1a4   :  { %v1466_v32 = vmul.f32 0.0012755102, %v1462_v10 }
 0x1a5   :  { %1494 = vperm.xlu1 %1940, %v3754_v23  }
 0x1a6   :  { %v1470_v41 = vadd.f32 1e-05, %v1466_v32 }
 0x1a7   :  { %v1976_v28 = vpop.eup %1975 }
 0x1a8   :  { %1979 = vrsqrt.f32 %v1470_v41  ;;  %v1743_v17 = vpop.xlane.xlu0 %1742  ;;  %v3760_v45 = vmul.f32 %v1976_v28, %v37_v48  ;;  %v42_v41 = vld [vmem:[%s5128_s3 + $0xa8] sm:$0xff] }
 0x1a9   :  { %v1771_v14 = vmul.f32 0.0012755102, %v1743_v17 }
 0x1aa   :  { %1489 = vperm.xlu0 %1939, %v3760_v45  }
 0x1ab   :  { %v1775_v47 = vadd.f32 1e-05, %v1771_v14 }
 0x1ac   :  { %v1978_v54 = vpop.eup %1977 }
 0x1ad   :  { %1981 = vrsqrt.f32 %v1775_v47  ;;  %v1752_v63 = vpop.xlane.xlu1 %1751  ;;  %v3766_v0 = vmul.f32 %v1978_v54, %v39_v34  ;;  %v43_v47 = vld [vmem:[%s5128_s3 + $0xb0] sm:$0xff] }
 0x1ae   :  { %v1772_v30 = vmul.f32 0.0012755102, %v1752_v63  ;;  %v776_v63 = vmul.f32 %v3664_v24, %v3157_v12  ;;  %v775_v24 = vmul.f32 %v3658_v16, %v3125_v58  ;;  %v47_v58 = vld [vmem:[%s5129_s4 + $0x10] sm:$0xff] }
 0x1af   :  { %1499 = vperm.xlu0 %1939, %v3766_v0  }
 0x1b0   :  { %v1776_v40 = vadd.f32 1e-05, %v1772_v30  ;;  %v46_v30 = vld [vmem:[%s5129_s4 + $0x8] sm:$0xff] }
 0x1b2   :  { %v1980_v5 = vpop.eup %1979  ;;  %1983 = vrsqrt.f32 %v1776_v40  ;;  %v1761_v37 = vpop.xlane.xlu0 %1760  ;;  %v44_v40 = vld [vmem:[%s5128_s3 + $0xb8] sm:$0xff] }
 0x1b3   :  { %v3772_v3 = vmul.f32 %v1980_v5, %v40_v27  ;;  %v1773_v6 = vmul.f32 0.0012755102, %v1761_v37  ;;  %v792_v5 = vsub.f32 %v46_v30, %v776_v63  ;;  %v778_v37 = vmul.f32 %v3676_v4, %v3155_v43  ;;  %v49_v4 = vld [vmem:[%s5129_s4 + $0x20] sm:$0xff] }
 0x1b4   :  { %v779_v43 = vmul.f32 %v3682_v38, %v3168_v53  ;;  %v52_v53 = vld [vmem:[%s5129_s4 + $0x38] sm:$0xff]  ;;  %v788_v63 = vmul.f32 %v3736_v61, %v3236_v21  ;;  %v785_v30 = vmul.f32 %v3718_v36, %v3210_v26  ;;  %v57_v26 = vld [vmem:[%s5129_s4 + $0x60] sm:$0xff] }
 0x1b5   :  { %1504 = vperm.xlu1 %1940, %v3772_v3   ;;  %v1777_v51 = vadd.f32 1e-05, %v1773_v6  ;;  %v48_v6 = vld [vmem:[%s5129_s4 + $0x18] sm:$0xff] }
 0x1b6   :  { %v795_v16 = vsub.f32 %v49_v4, %v779_v43  ;;  %v60_v21 = vld [vmem:[%s5129_s4 + $0x78] sm:$0xff] }
 0x1b7   :  { %v1982_v60 = vpop.eup %1981  ;;  %1985 = vrsqrt.f32 %v1777_v51  ;;  %v1770_v10 = vpop.xlane.xlu1 %1769  ;;  %v794_v51 = vsub.f32 %v48_v6, %v778_v37  ;;  %v789_v37 = vmul.f32 %v3742_v2, %v3254_v52  ;;  %v1482_v6 = vmul.f32 %v3772_v3, %v3331_v19  ;;  %v61_v52 = vld [vmem:[%s5129_s4 + $0x80] sm:$0xff]  ;;  %v66_v19 = vld [vmem:[%s5129_s4 + $0xa8] sm:$0xff] }
 0x1b8   :  { %v3778_v32 = vmul.f32 %v1982_v60, %v41_v49  ;;  %v1774_v48 = vmul.f32 0.0012755102, %v1770_v10  ;;  %v45_v49 = vld [vmem:[%s5129_s4] sm:$0xff]  ;;  %v777_v10 = vmul.f32 %v3670_v33, %v3123_v8  ;;  %v50_v8 = vld [vmem:[%s5129_s4 + $0x28] sm:$0xff] }
 0x1b9   :  { %v791_v60 = vsub.f32 %v45_v49, %v775_v24  ;;  %v1479_v24 = vmul.f32 %v3760_v45, %v3297_v25  ;;  %v63_v25 = vld [vmem:[%s5129_s4 + $0x90] sm:$0xff] }
 0x1ba   :  { %1797 = vperm.xlu0 %1939, %v3778_v32   ;;  %v1778_v28 = vadd.f32 1e-05, %v1774_v48  ;;  %v782_v48 = vmul.f32 %v3700_v18, %v3189_v39  ;;  %v793_v38 = vsub.f32 %v47_v58, %v777_v10  ;;  %v54_v39 = vld [vmem:[%s5129_s4 + $0x48] sm:$0xff] }
 0x1bb   :  { %v1483_v3 = vsub.f32 %v61_v52, %v1479_v24  ;;  %v2067_v24 = vld [vmem:[%s5125_s0 + $0x80] sm:$0xff] }
 0x1bc   :  { %v1984_v17 = vpop.eup %1983  ;;  %1987 = vrsqrt.f32 %v1778_v28  ;;  %v798_v33 = vsub.f32 %v52_v53, %v782_v48  ;;  %v784_v28 = vmul.f32 %v3712_v35, %v3200_v15  ;;  %v56_v15 = vld [vmem:[%s5129_s4 + $0x58] sm:$0xff] }
 0x1bd   :  { %v3784_v14 = vmul.f32 %v1984_v17, %v42_v41  ;;  %v780_v41 = vmul.f32 %v3688_v29, %v3170_v1  ;;  %v781_v17 = vmul.f32 %v3694_v46, %v3176_v57  ;;  %v51_v1 = vld [vmem:[%s5129_s4 + $0x30] sm:$0xff]  ;;  %v53_v57 = vld [vmem:[%s5129_s4 + $0x40] sm:$0xff] }
 0x1be   :  { %v800_v29 = vsub.f32 %v54_v39, %v784_v28  ;;  %v2051_v39 = vld [vmem:[%s5125_s0] sm:$0xff] }
 0x1bf   :  { %1802 = vperm.xlu1 %1940, %v3784_v14   ;;  %v796_v18 = vsub.f32 %v50_v8, %v780_v41  ;;  %v797_v35 = vsub.f32 %v51_v1, %v781_v17  ;;  %v1788_v49 = vmul.f32 %v3784_v14, %v3365_v13  ;;  %v1787_v13 = vmul.f32 %v3778_v32, %v3356_v7  ;;  %v68_v14 = vld [vmem:[%s5129_s4 + $0xb8] sm:$0xff]  ;;  %v67_v7 = vld [vmem:[%s5129_s4 + $0xb0] sm:$0xff]  ;;  %v2052_v17 = vld [vmem:[%s5125_s0 + $0x8] sm:$0xff] }
 0x1c1   :  { %v1986_v34 = vpop.eup %1985  ;;  %v1792_v45 = vsub.f32 %v66_v19, %v1788_v49 }
 0x1c2   :  { %v3790_v54 = vmul.f32 %v1986_v34, %v43_v47  ;;  %v786_v47 = vmul.f32 %v3724_v59, %v3219_v62  ;;  %v783_v34 = vmul.f32 %v3706_v55, %v3196_v22  ;;  %v58_v62 = vld [vmem:[%s5129_s4 + $0x68] sm:$0xff]  ;;  %v55_v22 = vld [vmem:[%s5129_s4 + $0x50] sm:$0xff] }
 0x1c3   :  { %v804_v55 = vsub.f32 %v58_v62, %v788_v63  ;;  %v801_v61 = vsub.f32 %v55_v22, %v785_v30  ;;  %v2057_v62 = vld [vmem:[%s5125_s0 + $0x30] sm:$0xff]  ;;  %v2058_v30 = vld [vmem:[%s5125_s0 + $0x38] sm:$0xff] }
 0x1c4   :  { %1807 = vperm.xlu0 %1939, %v3790_v54   ;;  %v802_v46 = vsub.f32 %v56_v15, %v786_v47  ;;  %v799_v59 = vsub.f32 %v53_v57, %v783_v34  ;;  %v2054_v15 = vld [vmem:[%s5125_s0 + $0x18] sm:$0xff]  ;;  %v2055_v34 = vld [vmem:[%s5125_s0 + $0x20] sm:$0xff] }
 0x1c6   :  { %v1988_v27 = vpop.eup %1987 }
 0x1c7   :  { %v3806_v12 = vmul.f32 %v1988_v27, %v44_v40  ;;  %v790_v40 = vmul.f32 %v3748_v9, %v3263_v56  ;;  %v787_v27 = vmul.f32 %v3730_v11, %v3227_v20  ;;  %v62_v56 = vld [vmem:[%s5129_s4 + $0x88] sm:$0xff]  ;;  %v59_v20 = vld [vmem:[%s5129_s4 + $0x70] sm:$0xff] }
 0x1c8   :  { %1006 = vperm.xlu0 %1939, %v792_v5   ;;  %v1480_v5 = vmul.f32 %v3754_v23, %v3288_v50  ;;  %v64_v50 = vld [vmem:[%s5129_s4 + $0x98] sm:$0xff]  ;;  %v805_v23 = vsub.f32 %v59_v20, %v789_v37  ;;  %v2064_v37 = vld [vmem:[%s5125_s0 + $0x68] sm:$0xff] }
 0x1c9   :  { %1812 = vperm.xlu1 %1940, %v3806_v12   ;;  %v806_v36 = vsub.f32 %v60_v21, %v790_v40  ;;  %v803_v9 = vsub.f32 %v57_v26, %v787_v27  ;;  %v1486_v2 = vsub.f32 %v64_v50, %v1482_v6  ;;  %v1790_v43 = vmul.f32 %v3806_v12, %v3506_v42  ;;  %v2060_v21 = vld [vmem:[%s5125_s0 + $0x48] sm:$0xff]  ;;  %v2061_v27 = vld [vmem:[%s5125_s0 + $0x50] sm:$0xff]  ;;  %v2066_v50 = vld [vmem:[%s5125_s0 + $0x78] sm:$0xff] }
 0x1ca   :  { %v1484_v11 = vsub.f32 %v62_v56, %v1480_v5  ;;  %v2063_v56 = vld [vmem:[%s5125_s0 + $0x60] sm:$0xff] }
 0x1cc   :  { %1016 = vperm.xlu0 %1939, %v794_v51   ;;  %v1481_v51 = vmul.f32 %v3766_v0, %v3322_v31  ;;  %v65_v31 = vld [vmem:[%s5129_s4 + $0xa0] sm:$0xff]  ;;  %v1794_v0 = vsub.f32 %v68_v14, %v1790_v43  ;;  %v2072_v14 = vld [vmem:[%s5125_s0 + $0xa8] sm:$0xff]  ;;  %s2244_s4 = smov [#allocation2]  }
 0x1cd   :  { %1001 = vperm.xlu1 %1940, %v791_v60   ;;  %v1789_v60 = vmul.f32 %v3790_v54, %v3419_v44  ;;  %v1791_v10 = vsub.f32 %v65_v31, %v1787_v13  ;;  %v2071_v43 = vld [vmem:[%s5125_s0 + $0xa0] sm:$0xff]  ;;  %s1924_s22 = sshll.u32 %s2244_s4, 4  ;;  %s1925_s22 = int_to_ptr.vmem [resolvable:$true] %s1924_s22 }
 0x1ce   :  { %v1485_v4 = vsub.f32 %v63_v25, %v1481_v51  ;;  %v810_v44 = vpop.permute.xlu0 %809  ;;  %v2070_v25 = vld [vmem:[%s5125_s0 + $0x98] sm:$0xff]  ;;  %p2224_p1 = scmp.lt.s32.totalorder %s1925_s22, %s1925_s22 }
 0x1cf   :  { %v1793_v32 = vsub.f32 %v67_v7, %v1789_v60  ;;  %v3947_v1 = vmul.f32 %v2052_v17, %v810_v44  ;;  %v3962_v57 = vmul.f32 %v2055_v34, %v810_v44  ;;  %v2079_v34 = vld [vmem:[%s5125_s0 + $0xe0] sm:$0xff] }
 0x1d0   :  { %1021 = vperm.xlu0 %1939, %v795_v16  }
 0x1d1   :  { %1011 = vperm.xlu1 %1940, %v793_v38  }
 0x1d4   :  { %1036 = vperm.xlu0 %1939, %v798_v33  }
 0x1d5   :  { %1026 = vperm.xlu1 %1940, %v796_v18   ;;  %v3942_v18 = vmul.f32 %v2051_v39, %v810_v44  ;;  %v2077_v39 = vld [vmem:[%s5125_s0 + $0xd0] sm:$0xff] }
 0x1d7   :  { %v815_v42 = vpop.permute.xlu1 %814 }
 0x1d8   :  { %1046 = vperm.xlu0 %1939, %v800_v29   ;;  %v2053_v29 = vld [vmem:[%s5125_s0 + $0x10] sm:$0xff]  ;;  %v3977_v22 = vmul.f32 %v2058_v30, %v815_v42  ;;  %v3992_v26 = vmul.f32 %v2061_v27, %v815_v42  ;;  %v4007_v20 = vmul.f32 %v2064_v37, %v815_v42  ;;  %v2084_v37 = vld [vmem:[%s5125_s0 + $0x108] sm:$0xff] }
 0x1d9   :  { %1031 = vperm.xlu1 %1940, %v797_v35   ;;  %v3952_v47 = vmul.f32 %v2053_v29, %v810_v44  ;;  %v3957_v35 = vmul.f32 %v2054_v15, %v810_v44  ;;  %v2078_v29 = vld [vmem:[%s5125_s0 + $0xd8] sm:$0xff] }
 0x1db   :  { %v820_v12 = vpop.permute.xlu1 %819 }
 0x1dc   :  { %1056 = vperm.xlu0 %1939, %v802_v46   ;;  %v2056_v46 = vld [vmem:[%s5125_s0 + $0x28] sm:$0xff]  ;;  %v4022_v52 = vmul.f32 %v2067_v24, %v820_v12  ;;  %v4044_v13 = vmul.f32 %v2071_v43, %v820_v12 }
 0x1dd   :  { %1041 = vperm.xlu1 %1940, %v799_v59   ;;  %v3967_v63 = vmul.f32 %v2056_v46, %v810_v44  ;;  %v3972_v59 = vmul.f32 %v2057_v62, %v810_v44  ;;  %v2080_v62 = vld [vmem:[%s5125_s0 + $0xe8] sm:$0xff] }
 0x1df   :  { %v3919_v58 = vpop.permute.xlu1 %824 }
 0x1e0   :  { %1066 = vperm.xlu0 %1939, %v804_v55   ;;  %v2059_v55 = vld [vmem:[%s5125_s0 + $0x40] sm:$0xff]  ;;  %v4082_v17 = vmul.f32 %v2077_v39, %v3919_v58  ;;  %v4088_v15 = vmul.f32 %v2078_v29, %v3919_v58 }
 0x1e1   :  { %1051 = vperm.xlu1 %1940, %v801_v61   ;;  %v3982_v40 = vmul.f32 %v2059_v55, %v815_v42  ;;  %v3987_v61 = vmul.f32 %v2060_v21, %v815_v42  ;;  %v2081_v55 = vld [vmem:[%s5125_s0 + $0xf0] sm:$0xff]  ;;  %v2082_v21 = vld [vmem:[%s5125_s0 + $0xf8] sm:$0xff]  ;;  %v2091_v39 = vld [vmem:[%s5125_s0 + $0x140] sm:$0xff] }
 0x1e3   :  { %v3921_v16 = vpop.permute.xlu1 %829 }
 0x1e4   :  { %1076 = vperm.xlu0 %1939, %v806_v36   ;;  %v2062_v36 = vld [vmem:[%s5125_s0 + $0x58] sm:$0xff]  ;;  %v4094_v46 = vmul.f32 %v2079_v34, %v3921_v16  ;;  %v4100_v30 = vmul.f32 %v2080_v62, %v3921_v16  ;;  %v4112_v27 = vmul.f32 %v2082_v21, %v3921_v16  ;;  %v2092_v34 = vld [vmem:[%s5125_s0 + $0x148] sm:$0xff]  ;;  %v2093_v21 = vld [vmem:[%s5125_s0 + $0x150] sm:$0xff] }
 0x1e5   :  { %1061 = vperm.xlu1 %1940, %v803_v9   ;;  %v3997_v5 = vmul.f32 %v2062_v36, %v815_v42  ;;  %v4002_v9 = vmul.f32 %v2063_v56, %v815_v42  ;;  %v2075_v42 = vld [vmem:[%s5125_s0 + $0xc0] sm:$0xff] }
 0x1e6   :  { %v2083_v36 = vld [vmem:[%s5125_s0 + $0x100] sm:$0xff] }
 0x1e7   :  { %v3923_v48 = vpop.permute.xlu1 %834  ;;  %v4118_v56 = vmul.f32 %v2083_v36, %v3921_v16 }
 0x1e8   :  { %1542 = vperm.xlu0 %1939, %v1484_v11   ;;  %v2065_v11 = vld [vmem:[%s5125_s0 + $0x70] sm:$0xff]  ;;  %v4166_v29 = vmul.f32 %v2091_v39, %v3923_v48  ;;  %v4172_v62 = vmul.f32 %v2092_v34, %v3923_v48  ;;  %v2098_v34 = vld [vmem:[%s5125_s0 + $0x178] sm:$0xff] }
 0x1e9   :  { %1071 = vperm.xlu1 %1940, %v805_v23   ;;  %v4012_v6 = vmul.f32 %v2065_v11, %v820_v12  ;;  %v4017_v23 = vmul.f32 %v2066_v50, %v820_v12  ;;  %v4124_v11 = vmul.f32 %v2084_v37, %v3921_v16  ;;  %v2085_v50 = vld [vmem:[%s5125_s0 + $0x110] sm:$0xff]  ;;  %v2094_v37 = vld [vmem:[%s5125_s0 + $0x158] sm:$0xff] }
 0x1ea   :  { %v4130_v24 = vmul.f32 %v2085_v50, %v3921_v16  ;;  %5333 = vst [vmem:[#allocation8_spill] sm:$0xff] %v4172_v62  ;;  %v2109_v62 = vld [vmem:[%s5125_s0 + $0x1d0] sm:$0xff] }
 0x1ec   :  { %1552 = vperm.xlu0 %1939, %v1486_v2   ;;  %v2068_v2 = vld [vmem:[%s5125_s0 + $0x88] sm:$0xff] }
 0x1ed   :  { %1537 = vperm.xlu1 %1940, %v1483_v3   ;;  %v3925_v53 = vpop.permute.xlu1 %839  ;;  %v4027_v49 = vmul.f32 %v2068_v2, %v820_v12  ;;  %v2069_v3 = vld [vmem:[%s5125_s0 + $0x90] sm:$0xff]  ;;  %v2086_v2 = vld [vmem:[%s5125_s0 + $0x118] sm:$0xff] }
 0x1ee   :  { %v4034_v51 = vmul.f32 %v2069_v3, %v820_v12  ;;  %v4136_v3 = vmul.f32 %v2086_v2, %v3923_v48  ;;  %v4180_v36 = vmul.f32 %v2093_v21, %v3925_v53  ;;  %v4186_v50 = vmul.f32 %v2094_v37, %v3925_v53  ;;  %v2099_v37 = vld [vmem:[%s5125_s0 + $0x180] sm:$0xff] }
 0x1ef   :  { %v4212_v21 = vmul.f32 %v2098_v34, %v3925_v53 }
 0x1f0   :  { %1850 = vperm.xlu0 %1939, %v1792_v45   ;;  %v4039_v45 = vmul.f32 %v2070_v25, %v820_v12  ;;  %v2076_v12 = vld [vmem:[%s5125_s0 + $0xc8] sm:$0xff]  ;;  %v2087_v25 = vld [vmem:[%s5125_s0 + $0x120] sm:$0xff]  ;;  %5334 = vst [vmem:[#allocation13_spill] sm:$0xff] %v4180_v36  ;;  %5335 = vst [vmem:[#allocation9_spill] sm:$0xff] %v4186_v50 }
 0x1f1   :  { %1547 = vperm.xlu1 %1940, %v1485_v4   ;;  %v4050_v4 = vmul.f32 %v2072_v14, %v3919_v58  ;;  %v4076_v44 = vmul.f32 %v2076_v12, %v3919_v58  ;;  %v4142_v43 = vmul.f32 %v2087_v25, %v3923_v48  ;;  %v2088_v14 = vld [vmem:[%s5125_s0 + $0x128] sm:$0xff]  ;;  %5339 = vst [vmem:[#allocation10_spill] sm:$0xff] %v4212_v21  ;;  %v2102_v21 = vld [vmem:[%s5125_s0 + $0x198] sm:$0xff]  ;;  %v2107_v50 = vld [vmem:[%s5125_s0 + $0x1c0] sm:$0xff] }
 0x1f2   :  { %v2096_v25 = vld [vmem:[%s5125_s0 + $0x168] sm:$0xff] }
 0x1f3   :  { %v3927_v54 = vpop.permute.xlu1 %844  ;;  %v2108_v36 = vld [vmem:[%s5125_s0 + $0x1c8] sm:$0xff] }
 0x1f4   :  { %1860 = vperm.xlu0 %1939, %v1794_v0   ;;  %v2073_v0 = vld [vmem:[%s5125_s0 + $0xb0] sm:$0xff] }
 0x1f5   :  { %1845 = vperm.xlu1 %1940, %v1791_v10   ;;  %v4058_v60 = vmul.f32 %v2073_v0, %v3919_v58  ;;  %v2074_v10 = vld [vmem:[%s5125_s0 + $0xb8] sm:$0xff]  ;;  %v2089_v0 = vld [vmem:[%s5125_s0 + $0x130] sm:$0xff] }
 0x1f6   :  { %v4064_v7 = vmul.f32 %v2074_v10, %v3919_v58  ;;  %v4154_v10 = vmul.f32 %v2089_v0, %v3923_v48 }
 0x1f8   :  { %v3931_v41 = vpop.permute.xlu1 %849 }
 0x1f9   :  { %1855 = vperm.xlu1 %1940, %v1793_v32   ;;  %v4070_v32 = vmul.f32 %v2075_v42, %v3919_v58  ;;  %v4106_v58 = vmul.f32 %v2081_v55, %v3921_v16  ;;  %v4148_v16 = vmul.f32 %v2088_v14, %v3923_v48  ;;  %v2090_v42 = vld [vmem:[%s5125_s0 + $0x138] sm:$0xff]  ;;  %v4198_v14 = vmul.f32 %v2096_v25, %v3925_v53  ;;  %v2100_v25 = vld [vmem:[%s5125_s0 + $0x188] sm:$0xff] }
 0x1fa   :  { %v4160_v12 = vmul.f32 %v2090_v42, %v3923_v48  ;;  %v2095_v48 = vld [vmem:[%s5125_s0 + $0x160] sm:$0xff]  ;;  %v2097_v42 = vld [vmem:[%s5125_s0 + $0x170] sm:$0xff] }
 0x1fb   :  { %v4192_v2 = vmul.f32 %v2095_v48, %v3925_v53  ;;  %5337 = vst [vmem:[#allocation6_spill] sm:$0xff] %v4198_v14  ;;  %v4206_v39 = vmul.f32 %v2097_v42, %v3925_v53  ;;  %v4218_v48 = vmul.f32 %v2099_v37, %v3925_v53  ;;  %v4224_v42 = vmul.f32 %v2100_v25, %v3927_v54  ;;  %v2103_v37 = vld [vmem:[%s5125_s0 + $0x1a0] sm:$0xff]  ;;  %v2105_v14 = vld [vmem:[%s5125_s0 + $0x1b0] sm:$0xff] }
 0x1fc   :  { %v4236_v53 = vmul.f32 %v2102_v21, %v3927_v54  ;;  %v4242_v25 = vmul.f32 %v2103_v37, %v3927_v54  ;;  %v4254_v21 = vmul.f32 %v2105_v14, %v3927_v54  ;;  %v4272_v14 = vmul.f32 %v2108_v36, %v3931_v41 }
 0x1fd   :  { %5336 = vst [vmem:[#allocation5_spill] sm:$0xff] %v4192_v2  ;;  %5338 = vst [vmem:[#allocation7_spill] sm:$0xff] %v4206_v39  ;;  %v2101_v39 = vld [vmem:[%s5125_s0 + $0x190] sm:$0xff]  ;;  %v2106_v2 = vld [vmem:[%s5125_s0 + $0x1b8] sm:$0xff] }
 0x1fe   :  { %v3929_v38 = vpop.permute.xlu0 %854  ;;  %5340 = vst [vmem:[#allocation14_spill] sm:$0xff] %v4218_v48  ;;  %v4230_v34 = vmul.f32 %v2101_v39, %v3927_v54  ;;  %v2104_v48 = vld [vmem:[%s5125_s0 + $0x1a8] sm:$0xff]  ;;  %v4260_v37 = vmul.f32 %v2106_v2, %v3927_v54  ;;  %5342 = vst [vmem:[#allocation19_spill] sm:$0xff] %v4272_v14  ;;  %v2110_v2 = vld [vmem:[%s5125_s0 + $0x1d8] sm:$0xff] }
 0x1ff   :  { %v4248_v39 = vmul.f32 %v2104_v48, %v3927_v54  ;;  %v4266_v48 = vmul.f32 %v2107_v50, %v3931_v41  ;;  %v4278_v54 = vmul.f32 %v2109_v62, %v3931_v41  ;;  %v4284_v50 = vmul.f32 %v2110_v2, %v3931_v41  ;;  %v2112_v14 = vld [vmem:[%s5125_s0 + $0x1e8] sm:$0xff] }
 0x200   :  { %v4296_v62 = vmul.f32 %v2112_v14, %v3931_v41 }
 0x201   :  { %5341 = vst [vmem:[#allocation16_spill] sm:$0xff] %v4266_v48  ;;  %5343 = vst [vmem:[#allocation11_spill] sm:$0xff] %v4278_v54  ;;  %v2111_v48 = vld [vmem:[%s5125_s0 + $0x1e0] sm:$0xff]  ;;  %v2113_v54 = vld [vmem:[%s5125_s0 + $0x1f8] sm:$0xff] }
 0x202   :  { %5344 = vst [vmem:[#allocation12_spill] sm:$0xff] %v4284_v50  ;;  %v4290_v36 = vmul.f32 %v2111_v48, %v3931_v41  ;;  %5346 = vst [vmem:[#allocation17_spill] sm:$0xff] %v4296_v62  ;;  %v4302_v2 = vmul.f32 %v2113_v54, %v3929_v38  ;;  %v2114_v50 = vld [vmem:[%s5125_s0 + $0x200] sm:$0xff]  ;;  %v2116_v62 = vld [vmem:[%s5125_s0 + $0x1f0] sm:$0xff] }
 0x203   :  { %v3933_v8 = vpop.permute.xlu0 %859  ;;  %v4308_v48 = vmul.f32 %v2114_v50, %v3929_v38  ;;  %v4320_v54 = vmul.f32 %v2116_v62, %v3931_v41  ;;  %v2117_v50 = vld [vmem:[%s5125_s0 + $0x210] sm:$0xff]  ;;  %v2119_v41 = vld [vmem:[%s5125_s0 + $0x220] sm:$0xff] }
 0x204   :  { %5345 = vst [vmem:[#allocation15_spill] sm:$0xff] %v4290_v36  ;;  %5347 = vst [vmem:[#allocation22_spill] sm:$0xff] %v4302_v2  ;;  %v2115_v36 = vld [vmem:[%s5125_s0 + $0x208] sm:$0xff]  ;;  %v4340_v62 = vmul.f32 %v2119_v41, %v3929_v38  ;;  %v2122_v41 = vld [vmem:[%s5125_s0 + $0x238] sm:$0xff] }
 0x205   :  { %5348 = vst [vmem:[#allocation23_spill] sm:$0xff] %v4308_v48  ;;  %v4314_v14 = vmul.f32 %v2115_v36, %v3929_v38  ;;  %5350 = vst [vmem:[#allocation18_spill] sm:$0xff] %v4320_v54  ;;  %v4328_v48 = vmul.f32 %v2117_v50, %v3929_v38  ;;  %v2118_v36 = vld [vmem:[%s5125_s0 + $0x218] sm:$0xff]  ;;  %v2120_v54 = vld [vmem:[%s5125_s0 + $0x228] sm:$0xff] }
 0x206   :  { %5353 = vst [vmem:[#allocation24_spill] sm:$0xff] %v4340_v62  ;;  %v4346_v50 = vmul.f32 %v2120_v54, %v3929_v38  ;;  %v4360_v62 = vmul.f32 %v2122_v41, %v3933_v8 }
 0x207   :  { %5349 = vst [vmem:[#allocation28_spill] sm:$0xff] %v4314_v14  ;;  %5351 = vst [vmem:[#allocation20_spill] sm:$0xff] %v4328_v48  ;;  %v4334_v14 = vmul.f32 %v2118_v36, %v3929_v38  ;;  %v2121_v36 = vld [vmem:[%s5125_s0 + $0x230] sm:$0xff]  ;;  %v2123_v38 = vld [vmem:[%s5125_s0 + $0x240] sm:$0xff] }
 0x208   :  { %5354 = vst [vmem:[#allocation29_spill] sm:$0xff] %v4346_v50  ;;  %5356 = vst [vmem:[#allocation34_spill] sm:$0xff] %v4360_v62  ;;  %v4366_v54 = vmul.f32 %v2123_v38, %v3933_v8  ;;  %v2124_v50 = vld [vmem:[%s5125_s0 + $0x248] sm:$0xff]  ;;  %v2126_v62 = vld [vmem:[%s5125_s0 + $0x258] sm:$0xff] }
 0x209   :  { %v3935_v33 = vpop.permute.xlu1 %864  ;;  %5352 = vst [vmem:[#allocation21_spill] sm:$0xff] %v4334_v14  ;;  %v4354_v14 = vmul.f32 %v2121_v36, %v3933_v8  ;;  %v4372_v36 = vmul.f32 %v2124_v50, %v3933_v8  ;;  %v4384_v38 = vmul.f32 %v2126_v62, %v3933_v8 }
 0x20a   :  { %5357 = vst [vmem:[#allocation25_spill] sm:$0xff] %v4366_v54  ;;  %v2127_v54 = vld [vmem:[%s5125_s0 + $0x260] sm:$0xff] }
 0x20b   :  { %5355 = vst [vmem:[#allocation30_spill] sm:$0xff] %v4354_v14  ;;  %5358 = vst [vmem:[#allocation26_spill] sm:$0xff] %v4372_v36  ;;  %v2125_v14 = vld [vmem:[%s5125_s0 + $0x250] sm:$0xff]  ;;  %v4390_v50 = vmul.f32 %v2127_v54, %v3933_v8  ;;  %v2128_v36 = vld [vmem:[%s5125_s0 + $0x268] sm:$0xff] }
 0x20c   :  { %v4378_v41 = vmul.f32 %v2125_v14, %v3933_v8  ;;  %5360 = vst [vmem:[#allocation31_spill] sm:$0xff] %v4384_v38  ;;  %v4396_v14 = vmul.f32 %v2128_v36, %v3935_v33  ;;  %v2130_v38 = vld [vmem:[%s5125_s0 + $0x278] sm:$0xff]  ;;  %v2131_v54 = vld [vmem:[%s5125_s0 + $0x280] sm:$0xff] }
 0x20d   :  { %5361 = vst [vmem:[#allocation35_spill] sm:$0xff] %v4390_v50  ;;  %v4408_v8 = vmul.f32 %v2130_v38, %v3935_v33  ;;  %v4414_v36 = vmul.f32 %v2131_v54, %v3935_v33  ;;  %v2132_v50 = vld [vmem:[%s5125_s0 + $0x288] sm:$0xff] }
 0x20e   :  { %v4029_v19 = vpop.permute.xlu1 %869  ;;  %5359 = vst [vmem:[#allocation27_spill] sm:$0xff] %v4378_v41  ;;  %v2129_v41 = vld [vmem:[%s5125_s0 + $0x270] sm:$0xff] }
 0x20f   :  { %v4402_v62 = vmul.f32 %v2129_v41, %v3935_v33  ;;  %5363 = vst [vmem:[#allocation37_spill] sm:$0xff] %v4408_v8  ;;  %5364 = vst [vmem:[#allocation32_spill] sm:$0xff] %v4414_v36  ;;  %v4420_v41 = vmul.f32 %v2132_v50, %v3935_v33  ;;  %v2134_v8 = vld [vmem:[%s5125_s0 + $0x298] sm:$0xff]  ;;  %v2135_v36 = vld [vmem:[%s5125_s0 + $0x2a0] sm:$0xff] }
 0x210   :  { %v4432_v54 = vmul.f32 %v2134_v8, %v3935_v33  ;;  %v4438_v50 = vmul.f32 %v2135_v36, %v4029_v19  ;;  %v2138_v8 = vld [vmem:[%s5125_s0 + $0x2b8] sm:$0xff] }
 0x211   :  { %5362 = vst [vmem:[#allocation40_spill] sm:$0xff] %v4402_v62  ;;  %5365 = vst [vmem:[#allocation33_spill] sm:$0xff] %v4420_v41  ;;  %v2133_v62 = vld [vmem:[%s5125_s0 + $0x290] sm:$0xff]  ;;  %v2136_v41 = vld [vmem:[%s5125_s0 + $0x2a8] sm:$0xff]  ;;  %v4456_v36 = vmul.f32 %v2138_v8, %v4029_v19 }
 0x212   :  { %v4426_v38 = vmul.f32 %v2133_v62, %v3935_v33  ;;  %5367 = vst [vmem:[#allocation38_spill] sm:$0xff] %v4432_v54  ;;  %5368 = vst [vmem:[#allocation43_spill] sm:$0xff] %v4438_v50  ;;  %v4444_v62 = vmul.f32 %v2136_v41, %v4029_v19  ;;  %v2139_v50 = vld [vmem:[%s5125_s0 + $0x2c0] sm:$0xff]  ;;  %v2141_v8 = vld [vmem:[%s5125_s0 + $0x2d8] sm:$0xff] }
 0x213   :  { %5371 = vst [vmem:[#allocation39_spill] sm:$0xff] %v4456_v36  ;;  %v4462_v41 = vmul.f32 %v2139_v50, %v4029_v19  ;;  %v2142_v50 = vld [vmem:[%s5125_s0 + $0x2e0] sm:$0xff]  ;;  %v2144_v54 = vld [vmem:[%s5125_s0 + $0x2d0] sm:$0xff] }
 0x214   :  { %v3937_v28 = vpop.permute.xlu0 %874  ;;  %5366 = vst [vmem:[#allocation36_spill] sm:$0xff] %v4426_v38  ;;  %5369 = vst [vmem:[#allocation49_spill] sm:$0xff] %v4444_v62  ;;  %v2137_v38 = vld [vmem:[%s5125_s0 + $0x2b0] sm:$0xff]  ;;  %v2140_v62 = vld [vmem:[%s5125_s0 + $0x2c8] sm:$0xff] }
 0x215   :  { %v4450_v33 = vmul.f32 %v2137_v38, %v4029_v19  ;;  %5372 = vst [vmem:[#allocation41_spill] sm:$0xff] %v4462_v41  ;;  %v4468_v38 = vmul.f32 %v2140_v62, %v4029_v19  ;;  %v4476_v36 = vmul.f32 %v2141_v8, %v3937_v28  ;;  %v4482_v41 = vmul.f32 %v2142_v50, %v3937_v28  ;;  %v2143_v62 = vld [vmem:[%s5125_s0 + $0x2e8] sm:$0xff]  ;;  %v2145_v50 = vld [vmem:[%s5125_s0 + $0x2f0] sm:$0xff] }
 0x216   :  { %v4494_v8 = vmul.f32 %v2144_v54, %v4029_v19  ;;  %v2147_v19 = vld [vmem:[%s5125_s0 + $0x300] sm:$0xff] }
 0x217   :  { %5370 = vst [vmem:[#allocation44_spill] sm:$0xff] %v4450_v33  ;;  %5373 = vst [vmem:[#allocation42_spill] sm:$0xff] %v4468_v38  ;;  %v4488_v38 = vmul.f32 %v2143_v62, %v3937_v28  ;;  %v2146_v62 = vld [vmem:[%s5125_s0 + $0x2f8] sm:$0xff]  ;;  %v4514_v54 = vmul.f32 %v2147_v19, %v3937_v28 }
 0x218   :  { %5374 = vst [vmem:[#allocation45_spill] sm:$0xff] %v4476_v36  ;;  %5375 = vst [vmem:[#allocation50_spill] sm:$0xff] %v4482_v41  ;;  %v4502_v41 = vmul.f32 %v2145_v50, %v3937_v28 }
 0x219   :  { %v4174_v55 = vpop.permute.xlu1 %879  ;;  %5376 = vst [vmem:[#allocation55_spill] sm:$0xff] %v4488_v38  ;;  %5377 = vst [vmem:[#allocation51_spill] sm:$0xff] %v4494_v8  ;;  %v4508_v38 = vmul.f32 %v2146_v62, %v3937_v28  ;;  %v2148_v8 = vld [vmem:[%s5125_s0 + $0x308] sm:$0xff] }
 0x21a   :  { %5378 = vst [vmem:[#allocation46_spill] sm:$0xff] %v4502_v41  ;;  %5380 = vst [vmem:[#allocation48_spill] sm:$0xff] %v4514_v54  ;;  %v4520_v50 = vmul.f32 %v2148_v8, %v3937_v28  ;;  %v2149_v41 = vld [vmem:[%s5125_s0 + $0x310] sm:$0xff]  ;;  %v2151_v54 = vld [vmem:[%s5125_s0 + $0x320] sm:$0xff] }
 0x21b   :  { %5379 = vst [vmem:[#allocation47_spill] sm:$0xff] %v4508_v38  ;;  %v4526_v62 = vmul.f32 %v2149_v41, %v4174_v55  ;;  %v2150_v38 = vld [vmem:[%s5125_s0 + $0x318] sm:$0xff]  ;;  %v4538_v28 = vmul.f32 %v2151_v54, %v4174_v55  ;;  %v2152_v8 = vld [vmem:[%s5125_s0 + $0x328] sm:$0xff] }
 0x21c   :  { %v4532_v19 = vmul.f32 %v2150_v38, %v4174_v55  ;;  %v4544_v41 = vmul.f32 %v2152_v8, %v4174_v55 }
 0x21d   :  { %5381 = vst [vmem:[#allocation52_spill] sm:$0xff] %v4526_v62  ;;  %5383 = vst [vmem:[#allocation58_spill] sm:$0xff] %v4538_v28  ;;  %v2153_v62 = vld [vmem:[%s5125_s0 + $0x348] sm:$0xff]  ;;  %v2155_v28 = vld [vmem:[%s5125_s0 + $0x338] sm:$0xff] }
 0x21e   :  { %v4052_v31 = vpop.permute.xlu0 %884  ;;  %5382 = vst [vmem:[#allocation56_spill] sm:$0xff] %v4532_v19  ;;  %5384 = vst [vmem:[#allocation60_spill] sm:$0xff] %v4544_v41  ;;  %v2154_v19 = vld [vmem:[%s5125_s0 + $0x330] sm:$0xff]  ;;  %v4562_v8 = vmul.f32 %v2155_v28, %v4174_v55  ;;  %v2156_v41 = vld [vmem:[%s5125_s0 + $0x340] sm:$0xff] }
 0x21f   :  { %v4550_v38 = vmul.f32 %v2153_v62, %v4052_v31  ;;  %v4556_v54 = vmul.f32 %v2154_v19, %v4174_v55  ;;  %v4568_v62 = vmul.f32 %v2156_v41, %v4174_v55  ;;  %v2160_v41 = vld [vmem:[%s5125_s0 + $0x368] sm:$0xff] }
 0x220   :  { %5387 = vst [vmem:[#allocation57_spill] sm:$0xff] %v4562_v8  ;;  %v2159_v8 = vld [vmem:[%s5125_s0 + $0x360] sm:$0xff] }
 0x221   :  { %5385 = vst [vmem:[#allocation53_spill] sm:$0xff] %v4550_v38  ;;  %5386 = vst [vmem:[#allocation54_spill] sm:$0xff] %v4556_v54  ;;  %v2157_v38 = vld [vmem:[%s5125_s0 + $0x350] sm:$0xff]  ;;  %v2158_v54 = vld [vmem:[%s5125_s0 + $0x358] sm:$0xff]  ;;  %v4586_v55 = vmul.f32 %v2159_v8, %v4052_v31 }
 0x222   :  { %5388 = vst [vmem:[#allocation59_spill] sm:$0xff] %v4568_v62  ;;  %v4574_v19 = vmul.f32 %v2157_v38, %v4052_v31  ;;  %v4580_v28 = vmul.f32 %v2158_v54, %v4052_v31  ;;  %v4592_v38 = vmul.f32 %v2160_v41, %v4052_v31  ;;  %v2161_v62 = vld [vmem:[%s5125_s0 + $0x370] sm:$0xff] }
 0x223   :  { %5391 = vst [vmem:[#allocation64_spill] sm:$0xff] %v4586_v55  ;;  %v4598_v54 = vmul.f32 %v2161_v62, %v4052_v31  ;;  %v2163_v55 = vld [vmem:[%s5126_s1 + $0x38] sm:$0xff] }
 0x224   :  { %v4322_v2 = vpop.permute.xlu1 %1494  ;;  %5389 = vst [vmem:[#allocation61_spill] sm:$0xff] %v4574_v19  ;;  %5390 = vst [vmem:[#allocation62_spill] sm:$0xff] %v4580_v28  ;;  %v2162_v28 = vld [vmem:[%s5125_s0 + $0x378] sm:$0xff]  ;;  %v2172_v19 = vld [vmem:[%s5126_s1 + $0x68] sm:$0xff] }
 0x225   :  { %5392 = vst [vmem:[#allocation63_spill] sm:$0xff] %v4592_v38  ;;  %5393 = vst [vmem:[#allocation65_spill] sm:$0xff] %v4598_v54  ;;  %v4604_v8 = vmul.f32 %v2162_v28, %v4052_v31  ;;  %v4610_v41 = vmul.f32 %v2163_v55, %v4322_v2  ;;  %v2164_v38 = vld [vmem:[%s5126_s1 + $0x40] sm:$0xff]  ;;  %v2165_v31 = vld [vmem:[%s5126_s1 + $0x48] sm:$0xff] }
 0x226   :  { %v4616_v62 = vmul.f32 %v2164_v38, %v4322_v2  ;;  %v4624_v28 = vmul.f32 %v2165_v31, %v4322_v2  ;;  %v2166_v55 = vld [vmem:[%s5126_s1 + $0x50] sm:$0xff]  ;;  %v2167_v38 = vld [vmem:[%s5126_s1 + $0x58] sm:$0xff] }
 0x227   :  { %5394 = vst [vmem:[#allocation66_spill] sm:$0xff] %v4604_v8  ;;  %5395 = vst [vmem:[#allocation67_spill] sm:$0xff] %v4610_v41  ;;  %v4630_v41 = vmul.f32 %v2166_v55, %v4322_v2  ;;  %v2168_v8 = vld [vmem:[%s5126_s1 + $0x60] sm:$0xff] }
 0x228   :  { %5396 = vst [vmem:[#allocation68_spill] sm:$0xff] %v4616_v62  ;;  %5397 = vst [vmem:[#allocation69_spill] sm:$0xff] %v4624_v28  ;;  %v4636_v62 = vmul.f32 %v2167_v38, %v4322_v2  ;;  %v4642_v31 = vmul.f32 %v2168_v8, %v4322_v2  ;;  %v2169_v55 = vld [vmem:[%s5126_s1] sm:$0xff]  ;;  %v2170_v38 = vld [vmem:[%s5126_s1 + $0x8] sm:$0xff] }
 0x229   :  { %v4200_v0 = vpop.permute.xlu0 %1489  ;;  %5398 = vst [vmem:[#allocation70_spill] sm:$0xff] %v4630_v41  ;;  %v2171_v8 = vld [vmem:[%s5126_s1 + $0x10] sm:$0xff] }
 0x22a   :  { %5399 = vst [vmem:[#allocation71_spill] sm:$0xff] %v4636_v62  ;;  %5400 = vst [vmem:[#allocation72_spill] sm:$0xff] %v4642_v31  ;;  %v4650_v41 = vmul.f32 %v2169_v55, %v4200_v0  ;;  %v4656_v62 = vmul.f32 %v2170_v38, %v4200_v0  ;;  %v4662_v31 = vmul.f32 %v2171_v8, %v4200_v0 }
 0x22b   :  { %v4668_v55 = vmul.f32 %v2172_v19, %v4322_v2  ;;  %v2176_v19 = vld [vmem:[%s5126_s1 + $0x30] sm:$0xff] }
 0x22c   :  { %5402 = vst [vmem:[#allocation74_spill] sm:$0xff] %v4650_v41  ;;  %5403 = vst [vmem:[#allocation75_spill] sm:$0xff] %v4656_v62  ;;  %v2173_v41 = vld [vmem:[%s5126_s1 + $0x18] sm:$0xff]  ;;  %v2174_v62 = vld [vmem:[%s5126_s1 + $0x20] sm:$0xff] }
 0x22d   :  { %5404 = vst [vmem:[#allocation76_spill] sm:$0xff] %v4662_v31  ;;  %5405 = vst [vmem:[#allocation77_spill] sm:$0xff] %v4668_v55  ;;  %v4674_v38 = vmul.f32 %v2173_v41, %v4200_v0  ;;  %v4680_v8 = vmul.f32 %v2174_v62, %v4200_v0  ;;  %v2175_v31 = vld [vmem:[%s5126_s1 + $0x28] sm:$0xff]  ;;  %v4692_v41 = vmul.f32 %v2176_v19, %v4200_v0 }
 0x22e   :  { %v4348_v48 = vpop.permute.xlu0 %1499  ;;  %v4686_v2 = vmul.f32 %v2175_v31, %v4200_v0  ;;  %v2180_v19 = vld [vmem:[%s5126_s1 + $0x88] sm:$0xff] }
 0x22f   :  { %5406 = vst [vmem:[#allocation78_spill] sm:$0xff] %v4674_v38  ;;  %5407 = vst [vmem:[#allocation79_spill] sm:$0xff] %v4680_v8  ;;  %v2177_v38 = vld [vmem:[%s5126_s1 + $0x70] sm:$0xff]  ;;  %v2178_v8 = vld [vmem:[%s5126_s1 + $0x78] sm:$0xff] }
 0x230   :  { %5408 = vst [vmem:[#allocation80_spill] sm:$0xff] %v4686_v2  ;;  %5409 = vst [vmem:[#allocation81_spill] sm:$0xff] %v4692_v41  ;;  %v4698_v62 = vmul.f32 %v2177_v38, %v4348_v48  ;;  %v4704_v31 = vmul.f32 %v2178_v8, %v4348_v48  ;;  %v2179_v2 = vld [vmem:[%s5126_s1 + $0x80] sm:$0xff]  ;;  %v4716_v38 = vmul.f32 %v2180_v19, %v4348_v48 }
 0x231   :  { %v4710_v0 = vmul.f32 %v2179_v2, %v4348_v48 }
 0x232   :  { %5410 = vst [vmem:[#allocation82_spill] sm:$0xff] %v4698_v62  ;;  %5411 = vst [vmem:[#allocation83_spill] sm:$0xff] %v4704_v31  ;;  %v2181_v62 = vld [vmem:[%s5126_s1 + $0x90] sm:$0xff]  ;;  %v2182_v31 = vld [vmem:[%s5126_s1 + $0x98] sm:$0xff] }
 0x233   :  { %5412 = vst [vmem:[#allocation84_spill] sm:$0xff] %v4710_v0  ;;  %5413 = vst [vmem:[#allocation85_spill] sm:$0xff] %v4716_v38  ;;  %v4722_v8 = vmul.f32 %v2181_v62, %v4348_v48  ;;  %v4728_v2 = vmul.f32 %v2182_v31, %v4348_v48  ;;  %v2183_v0 = vld [vmem:[%s5126_s1 + $0xa0] sm:$0xff]  ;;  %v2184_v38 = vld [vmem:[%s5126_s1 + $0xa8] sm:$0xff] }
 0x234   :  { %v4470_v33 = vpop.permute.xlu1 %1504  ;;  %v4734_v19 = vmul.f32 %v2183_v0, %v4348_v48  ;;  %v2185_v48 = vld [vmem:[%s5126_s1 + $0xb0] sm:$0xff] }
 0x235   :  { %5414 = vst [vmem:[#allocation86_spill] sm:$0xff] %v4722_v8  ;;  %5415 = vst [vmem:[#allocation87_spill] sm:$0xff] %v4728_v2  ;;  %v4740_v62 = vmul.f32 %v2184_v38, %v4470_v33  ;;  %v4752_v0 = vmul.f32 %v2185_v48, %v4470_v33 }
 0x236   :  { %5416 = vst [vmem:[#allocation88_spill] sm:$0xff] %v4734_v19 }
 0x239   :  { %v4496_v36 = vpop.permute.xlu0 %1797 }
 0x23e   :  { %v4618_v54 = vpop.permute.xlu1 %1802 }
 0x243   :  { %v4644_v28 = vpop.permute.xlu0 %1807 }
 0x244   :  { %5401 = vst [vmem:[#allocation73_spill] sm:$0xff] %v4644_v28 }
 0x247   :  { %v1007_v8 = vpop.permute.xlu0 %1006 }
 0x248   :  { %v1086_v41 = vadd.f32 %v1007_v8, %v3977_v22  ;;  %v1087_v31 = vadd.f32 %v1007_v8, %v3982_v40  ;;  %v1088_v2 = vadd.f32 %v1007_v8, %v3987_v61  ;;  %v1089_v55 = vadd.f32 %v1007_v8, %v3992_v26  ;;  %v4746_v28 = vpop.permute.xlu1 %1812  ;;  %v2186_v40 = vld [vmem:[%s5126_s1 + $0xb8] sm:$0xff]  ;;  %v2187_v26 = vld [vmem:[%s5126_s1 + $0xc0] sm:$0xff] }
 0x249   :  { %v1090_v38 = vadd.f32 %v1007_v8, %v3997_v5  ;;  %v1091_v19 = vadd.f32 %v1007_v8, %v4002_v9  ;;  %v1092_v22 = vadd.f32 %v1007_v8, %v4007_v20  ;;  %v4761_v61 = vmul.f32 %v2186_v40, %v4470_v33  ;;  %v2188_v5 = vld [vmem:[%s5126_s1 + $0xc8] sm:$0xff]  ;;  %v2189_v20 = vld [vmem:[%s5126_s1 + $0xd0] sm:$0xff]  ;;  %v2190_v40 = vld [vmem:[%s5127_s2] sm:$0xff] }
 0x24a   :  { %v4767_v48 = vmul.f32 %v2187_v26, %v4470_v33  ;;  %v4773_v9 = vmul.f32 %v2188_v5, %v4470_v33  ;;  %v4779_v8 = vmul.f32 %v2189_v20, %v4470_v33  ;;  %1198 = vst [vmem:[#allocation2 + $0x38] sm:$0xff] %v1086_v41  ;;  %1199 = vst [vmem:[#allocation2 + $0x40] sm:$0xff] %v1087_v31  ;;  %v2191_v5 = vld [vmem:[%s5127_s2 + $0x8] sm:$0xff]  ;;  %v2192_v41 = vld [vmem:[%s5127_s2 + $0x10] sm:$0xff] }
 0x24b   :  { %1200 = vst [vmem:[#allocation2 + $0x48] sm:$0xff] %v1088_v2  ;;  %1201 = vst [vmem:[#allocation2 + $0x50] sm:$0xff] %v1089_v55  ;;  %v4785_v26 = vmul.f32 %v2190_v40, %v4496_v36  ;;  %v4797_v55 = vmul.f32 %v2192_v41, %v4496_v36  ;;  %v2193_v2 = vld [vmem:[%s5126_s1 + $0xd8] sm:$0xff]  ;;  %v1017_v20 = vpop.permute.xlu0 %1016 }
 0x24c   :  { %5417 = vst [vmem:[#allocation89_spill] sm:$0xff] %v4773_v9  ;;  %5418 = vst [vmem:[#allocation90_spill] sm:$0xff] %v4779_v8  ;;  %v4791_v9 = vmul.f32 %v2191_v5, %v4496_v36  ;;  %v4803_v31 = vmul.f32 %v2193_v2, %v4470_v33  ;;  %v1100_v40 = vadd.f32 %v1017_v20, %v4050_v4 }
 0x24d   :  { %5419 = vst [vmem:[#allocation91_spill] sm:$0xff] %v4785_v26  ;;  %5421 = vst [vmem:[#allocation93_spill] sm:$0xff] %v4797_v55  ;;  %v1101_v5 = vadd.f32 %v1017_v20, %v4058_v60  ;;  %v1103_v41 = vadd.f32 %v1017_v20, %v4070_v32  ;;  %v1002_v55 = vpop.permute.xlu1 %1001  ;;  %v1104_v26 = vadd.f32 %v1017_v20, %v4076_v44  ;;  %v2194_v44 = vld [vmem:[%s5127_s2 + $0x18] sm:$0xff] }
 0x24e   :  { %5420 = vst [vmem:[#allocation92_spill] sm:$0xff] %v4791_v9  ;;  %1202 = vst [vmem:[#allocation2 + $0x58] sm:$0xff] %v1090_v38  ;;  %v1102_v9 = vadd.f32 %v1017_v20, %v4064_v7  ;;  %v1105_v8 = vadd.f32 %v1017_v20, %v4082_v17  ;;  %v1106_v33 = vadd.f32 %v1017_v20, %v4088_v15 }
 0x24f   :  { %1203 = vst [vmem:[#allocation2 + $0x60] sm:$0xff] %v1091_v19  ;;  %1204 = vst.msk [vmem:[#allocation2 + $0x68] sm:$0xff] %vm186_vm0, %v1092_v22  ;;  %v1079_v19 = vadd.f32 %v1002_v55, %v3942_v18  ;;  %v1080_v4 = vadd.f32 %v1002_v55, %v3947_v1  ;;  %v1081_v60 = vadd.f32 %v1002_v55, %v3952_v47  ;;  %v2195_v18 = vld [vmem:[%s5127_s2 + $0x20] sm:$0xff]  ;;  %v1022_v1 = vpop.permute.xlu0 %1021 }
 0x250   :  { %1212 = vst [vmem:[#allocation2 + $0xa8] sm:$0xff] %v1100_v40  ;;  %1213 = vst [vmem:[#allocation2 + $0xb0] sm:$0xff] %v1101_v5  ;;  %v1082_v7 = vadd.f32 %v1002_v55, %v3957_v35  ;;  %v1083_v32 = vadd.f32 %v1002_v55, %v3962_v57  ;;  %v4822_v17 = vmul.f32 %v2194_v44, %v4496_v36  ;;  %v5426_v44 = vld [vmem:[#allocation20_spill] sm:$0xff] }
 0x251   :  { %1214 = vst [vmem:[#allocation2 + $0xb8] sm:$0xff] %v1102_v9  ;;  %1215 = vst [vmem:[#allocation2 + $0xc0] sm:$0xff] %v1103_v41  ;;  %v4828_v15 = vmul.f32 %v2195_v18, %v4496_v36  ;;  %v1084_v47 = vadd.f32 %v1002_v55, %v3967_v63  ;;  %v1085_v35 = vadd.f32 %v1002_v55, %v3972_v59 }
 0x252   :  { %1216 = vst [vmem:[#allocation2 + $0xc8] sm:$0xff] %v1104_v26  ;;  %1217 = vst [vmem:[#allocation2 + $0xd0] sm:$0xff] %v1105_v8  ;;  %v1107_v57 = vadd.f32 %v1022_v1, %v4094_v46  ;;  %v1108_v38 = vadd.f32 %v1022_v1, %v4100_v30  ;;  %v1109_v22 = vadd.f32 %v1022_v1, %v4106_v58  ;;  %v1012_v8 = vpop.permute.xlu1 %1011 }
 0x253   :  { %1218 = vst.msk [vmem:[#allocation2 + $0xd8] sm:$0xff] %vm186_vm0, %v1106_v33  ;;  %1191 = vst [vmem:[#allocation2] sm:$0xff] %v1079_v19  ;;  %v1110_v9 = vadd.f32 %v1022_v1, %v4112_v27  ;;  %v1111_v26 = vadd.f32 %v1022_v1, %v4118_v56  ;;  %v1112_v63 = vadd.f32 %v1022_v1, %v4124_v11  ;;  %v2196_v11 = vld [vmem:[%s5127_s2 + $0x28] sm:$0xff] }
 0x254   :  { %1192 = vst [vmem:[#allocation2 + $0x8] sm:$0xff] %v1080_v4  ;;  %1193 = vst [vmem:[#allocation2 + $0x10] sm:$0xff] %v1081_v60  ;;  %v1113_v59 = vadd.f32 %v1022_v1, %v4130_v24  ;;  %v1093_v46 = vadd.f32 %v1012_v8, %v4012_v6  ;;  %v1094_v30 = vadd.f32 %v1012_v8, %v4017_v23  ;;  %v2197_v6 = vld [vmem:[%s5127_s2 + $0x30] sm:$0xff]  ;;  %v1037_v23 = vpop.permute.xlu0 %1036  ;;  %v5423_v33 = vld [vmem:[#allocation22_spill] sm:$0xff] }
 0x255   :  { %1194 = vst [vmem:[#allocation2 + $0x18] sm:$0xff] %v1082_v7  ;;  %1195 = vst [vmem:[#allocation2 + $0x20] sm:$0xff] %v1083_v32  ;;  %v1095_v58 = vadd.f32 %v1012_v8, %v4022_v52  ;;  %v1096_v27 = vadd.f32 %v1012_v8, %v4027_v49  ;;  %v1097_v56 = vadd.f32 %v1012_v8, %v4034_v51  ;;  %v5424_v4 = vld [vmem:[#allocation23_spill] sm:$0xff]  ;;  %v5425_v7 = vld [vmem:[#allocation28_spill] sm:$0xff] }
 0x256   :  { %1196 = vst [vmem:[#allocation2 + $0x28] sm:$0xff] %v1084_v47  ;;  %1197 = vst.msk [vmem:[#allocation2 + $0x30] sm:$0xff] %vm186_vm0, %v1085_v35  ;;  %v4850_v24 = vmul.f32 %v2196_v11, %v4496_v36  ;;  %v4856_v55 = vmul.f32 %v2197_v6, %v4496_v36  ;;  %v1098_v52 = vadd.f32 %v1012_v8, %v4039_v45  ;;  %v1027_v36 = vpop.permute.xlu1 %1026  ;;  %v5427_v47 = vld [vmem:[#allocation21_spill] sm:$0xff]  ;;  %v2200_v11 = vld [vmem:[%s5127_s2 + $0x48] sm:$0xff] }
 0x257   :  { %1219 = vst [vmem:[#allocation2 + $0xe0] sm:$0xff] %v1107_v57  ;;  %1220 = vst [vmem:[#allocation2 + $0xe8] sm:$0xff] %v1108_v38  ;;  %v1099_v49 = vadd.f32 %v1012_v8, %v4044_v13  ;;  %v1128_v51 = vadd.f32 %v1037_v23, %v4224_v42  ;;  %v1129_v2 = vadd.f32 %v1037_v23, %v4230_v34  ;;  %v5428_v57 = vld [vmem:[#allocation24_spill] sm:$0xff]  ;;  %v5429_v38 = vld [vmem:[#allocation29_spill] sm:$0xff] }
 0x258   :  { %1221 = vst [vmem:[#allocation2 + $0xf0] sm:$0xff] %v1109_v22  ;;  %1222 = vst [vmem:[#allocation2 + $0xf8] sm:$0xff] %v1110_v9  ;;  %v1130_v20 = vadd.f32 %v1037_v23, %v4236_v53  ;;  %v1131_v40 = vadd.f32 %v1037_v23, %v4242_v25  ;;  %v1132_v5 = vadd.f32 %v1037_v23, %v4248_v39  ;;  %v5430_v9 = vld [vmem:[#allocation13_spill] sm:$0xff] }
 0x259   :  { %1223 = vst [vmem:[#allocation2 + $0x100] sm:$0xff] %v1111_v26  ;;  %1224 = vst [vmem:[#allocation2 + $0x108] sm:$0xff] %v1112_v63  ;;  %v1133_v45 = vadd.f32 %v1037_v23, %v4254_v21  ;;  %v1134_v13 = vadd.f32 %v1037_v23, %v4260_v37  ;;  %v1114_v42 = vadd.f32 %v1027_v36, %v4136_v3  ;;  %v2198_v21 = vld [vmem:[%s5127_s2 + $0x38] sm:$0xff]  ;;  %v2199_v3 = vld [vmem:[%s5127_s2 + $0x40] sm:$0xff] }
 0x25a   :  { %1225 = vst.msk [vmem:[#allocation2 + $0x110] sm:$0xff] %vm186_vm0, %v1113_v59  ;;  %1205 = vst [vmem:[#allocation2 + $0x70] sm:$0xff] %v1093_v46  ;;  %v1115_v34 = vadd.f32 %v1027_v36, %v4142_v43  ;;  %v1116_v53 = vadd.f32 %v1027_v36, %v4148_v16  ;;  %v1117_v25 = vadd.f32 %v1027_v36, %v4154_v10  ;;  %v1047_v43 = vpop.permute.xlu0 %1046  ;;  %v5422_v10 = vld [vmem:[#allocation8_spill] sm:$0xff]  ;;  %v1032_v1 = vpop.permute.xlu1 %1031  ;;  %v5431_v26 = vld [vmem:[#allocation9_spill] sm:$0xff] }
 0x25b   :  { %1206 = vst [vmem:[#allocation2 + $0x78] sm:$0xff] %v1094_v30  ;;  %1207 = vst [vmem:[#allocation2 + $0x80] sm:$0xff] %v1095_v58  ;;  %v1118_v39 = vadd.f32 %v1027_v36, %v4160_v12  ;;  %v4878_v37 = vmul.f32 %v2198_v21, %v4618_v54  ;;  %v4884_v41 = vmul.f32 %v2199_v3, %v4618_v54  ;;  %v5432_v59 = vld [vmem:[#allocation5_spill] sm:$0xff]  ;;  %v5433_v30 = vld [vmem:[#allocation6_spill] sm:$0xff] }
 0x25c   :  { %1208 = vst [vmem:[#allocation2 + $0x88] sm:$0xff] %v1096_v27  ;;  %1209 = vst [vmem:[#allocation2 + $0x90] sm:$0xff] %v1097_v56  ;;  %v1119_v16 = vadd.f32 %v1027_v36, %v4166_v29  ;;  %v1120_v12 = vadd.f32 %v1027_v36, %v5422_v10  ;;  %v1142_v19 = vadd.f32 %v1047_v43, %v5423_v33  ;;  %v5434_v27 = vld [vmem:[#allocation7_spill] sm:$0xff]  ;;  %v5441_v3 = vld [vmem:[#allocation36_spill] sm:$0xff] }
 0x25d   :  { %1210 = vst [vmem:[#allocation2 + $0x98] sm:$0xff] %v1098_v52  ;;  %1211 = vst.msk [vmem:[#allocation2 + $0xa0] sm:$0xff] %vm186_vm0, %v1099_v49  ;;  %v1143_v60 = vadd.f32 %v1047_v43, %v5424_v4  ;;  %v1144_v32 = vadd.f32 %v1047_v43, %v5425_v7  ;;  %v1145_v18 = vadd.f32 %v1047_v43, %v5426_v44  ;;  %v2201_v23 = vld [vmem:[%s5127_s2 + $0x50] sm:$0xff]  ;;  %v5446_v7 = vld [vmem:[#allocation12_spill] sm:$0xff] }
 0x25e   :  { %1240 = vst [vmem:[#allocation2 + $0x188] sm:$0xff] %v1128_v51  ;;  %1241 = vst [vmem:[#allocation2 + $0x190] sm:$0xff] %v1129_v2  ;;  %v1146_v35 = vadd.f32 %v1047_v43, %v5427_v47  ;;  %v1147_v29 = vadd.f32 %v1047_v43, %v5428_v57  ;;  %v1148_v22 = vadd.f32 %v1047_v43, %v5429_v38  ;;  %v1057_v49 = vpop.permute.xlu0 %1056  ;;  %v5435_v51 = vld [vmem:[#allocation10_spill] sm:$0xff]  ;;  %v5444_v33 = vld [vmem:[#allocation19_spill] sm:$0xff] }
 0x25f   :  { %1242 = vst [vmem:[#allocation2 + $0x198] sm:$0xff] %v1130_v20  ;;  %1243 = vst [vmem:[#allocation2 + $0x1a0] sm:$0xff] %v1131_v40  ;;  %v1121_v8 = vadd.f32 %v1032_v1, %v5430_v9  ;;  %v1122_v63 = vadd.f32 %v1032_v1, %v5431_v26  ;;  %v1123_v46 = vadd.f32 %v1032_v1, %v5432_v59  ;;  %v5436_v20 = vld [vmem:[#allocation14_spill] sm:$0xff]  ;;  %v5445_v4 = vld [vmem:[#allocation11_spill] sm:$0xff] }
 0x260   :  { %1244 = vst [vmem:[#allocation2 + $0x1a8] sm:$0xff] %v1132_v5  ;;  %1245 = vst [vmem:[#allocation2 + $0x1b0] sm:$0xff] %v1133_v45  ;;  %v1124_v58 = vadd.f32 %v1032_v1, %v5433_v30  ;;  %v1125_v56 = vadd.f32 %v1032_v1, %v5434_v27  ;;  %v4906_v6 = vmul.f32 %v2200_v11, %v4618_v54  ;;  %v5437_v5 = vld [vmem:[#allocation40_spill] sm:$0xff]  ;;  %v5447_v44 = vld [vmem:[#allocation15_spill] sm:$0xff] }
 0x261   :  { %1246 = vst.msk [vmem:[#allocation2 + $0x1b8] sm:$0xff] %vm186_vm0, %v1134_v13  ;;  %1226 = vst [vmem:[#allocation2 + $0x118] sm:$0xff] %v1114_v42  ;;  %v4912_v52 = vmul.f32 %v2201_v23, %v4618_v54  ;;  %v1126_v2 = vadd.f32 %v1032_v1, %v5435_v51  ;;  %v1127_v40 = vadd.f32 %v1032_v1, %v5436_v20  ;;  %v5438_v13 = vld [vmem:[#allocation37_spill] sm:$0xff]  ;;  %v2202_v1 = vld [vmem:[%s5127_s2 + $0x58] sm:$0xff] }
 0x262   :  { %1227 = vst [vmem:[#allocation2 + $0x120] sm:$0xff] %v1115_v34  ;;  %1228 = vst [vmem:[#allocation2 + $0x128] sm:$0xff] %v1116_v53  ;;  %v1156_v36 = vadd.f32 %v1057_v49, %v4396_v14  ;;  %v1157_v45 = vadd.f32 %v1057_v49, %v5437_v5  ;;  %v1158_v42 = vadd.f32 %v1057_v49, %v5438_v13  ;;  %v5439_v34 = vld [vmem:[#allocation32_spill] sm:$0xff]  ;;  %v5448_v38 = vld [vmem:[#allocation17_spill] sm:$0xff] }
 0x263   :  { %1229 = vst [vmem:[#allocation2 + $0x130] sm:$0xff] %v1117_v25  ;;  %1230 = vst [vmem:[#allocation2 + $0x138] sm:$0xff] %v1118_v39  ;;  %v1159_v53 = vadd.f32 %v1057_v49, %v5439_v34  ;;  %v1042_v25 = vpop.permute.xlu1 %1041  ;;  %v5440_v39 = vld [vmem:[#allocation33_spill] sm:$0xff]  ;;  %v1161_v43 = vadd.f32 %v1057_v49, %v5441_v3  ;;  %v5443_v14 = vld [vmem:[#allocation16_spill] sm:$0xff]  ;;  %v4934_v47 = vmul.f32 %v2202_v1, %v4618_v54 }
 0x264   :  { %1231 = vst [vmem:[#allocation2 + $0x140] sm:$0xff] %v1119_v16  ;;  %1232 = vst.msk [vmem:[#allocation2 + $0x148] sm:$0xff] %vm186_vm0, %v1120_v12  ;;  %v1160_v21 = vadd.f32 %v1057_v49, %v5440_v39  ;;  %v5442_v16 = vld [vmem:[#allocation38_spill] sm:$0xff]  ;;  %v1135_v12 = vadd.f32 %v1042_v25, %v5443_v14  ;;  %v5450_v26 = vld [vmem:[#allocation45_spill] sm:$0xff] }
 0x265   :  { %1254 = vst [vmem:[#allocation2 + $0x1f8] sm:$0xff] %v1142_v19  ;;  %1255 = vst [vmem:[#allocation2 + $0x200] sm:$0xff] %v1143_v60  ;;  %v1162_v10 = vadd.f32 %v1057_v49, %v5442_v16  ;;  %v1136_v19 = vadd.f32 %v1042_v25, %v5444_v33  ;;  %v1137_v60 = vadd.f32 %v1042_v25, %v5445_v4  ;;  %v5449_v9 = vld [vmem:[#allocation18_spill] sm:$0xff]  ;;  %v5452_v30 = vld [vmem:[#allocation55_spill] sm:$0xff] }
 0x266   :  { %1256 = vst [vmem:[#allocation2 + $0x208] sm:$0xff] %v1144_v32  ;;  %1257 = vst [vmem:[#allocation2 + $0x210] sm:$0xff] %v1145_v18  ;;  %v1138_v32 = vadd.f32 %v1042_v25, %v5446_v7  ;;  %v1139_v18 = vadd.f32 %v1042_v25, %v5447_v44  ;;  %v5451_v59 = vld [vmem:[#allocation50_spill] sm:$0xff]  ;;  %v5454_v23 = vld [vmem:[#allocation47_spill] sm:$0xff] }
 0x267   :  { %1258 = vst [vmem:[#allocation2 + $0x218] sm:$0xff] %v1146_v35  ;;  %1259 = vst [vmem:[#allocation2 + $0x220] sm:$0xff] %v1147_v29  ;;  %v2203_v35 = vld [vmem:[%s5127_s2 + $0x60] sm:$0xff]  ;;  %v1067_v29 = vpop.permute.xlu0 %1066  ;;  %v5453_v27 = vld [vmem:[#allocation46_spill] sm:$0xff]  ;;  %v1052_v11 = vpop.permute.xlu1 %1051 }
 0x268   :  { %1260 = vst.msk [vmem:[#allocation2 + $0x228] sm:$0xff] %vm186_vm0, %v1148_v22  ;;  %1233 = vst [vmem:[#allocation2 + $0x150] sm:$0xff] %v1121_v8  ;;  %v4940_v57 = vmul.f32 %v2203_v35, %v4618_v54  ;;  %v1140_v22 = vadd.f32 %v1042_v25, %v5448_v38  ;;  %v1141_v8 = vadd.f32 %v1042_v25, %v5449_v9  ;;  %v5455_v51 = vld [vmem:[#allocation48_spill] sm:$0xff]  ;;  %v5457_v5 = vld [vmem:[#allocation34_spill] sm:$0xff] }
 0x269   :  { %1234 = vst [vmem:[#allocation2 + $0x158] sm:$0xff] %v1122_v63  ;;  %1235 = vst [vmem:[#allocation2 + $0x160] sm:$0xff] %v1123_v46  ;;  %v1170_v63 = vadd.f32 %v1067_v29, %v5450_v26  ;;  %v1171_v46 = vadd.f32 %v1067_v29, %v5451_v59  ;;  %v1174_v49 = vadd.f32 %v1067_v29, %v5454_v23  ;;  %v5458_v13 = vld [vmem:[#allocation25_spill] sm:$0xff]  ;;  %v5459_v34 = vld [vmem:[#allocation26_spill] sm:$0xff] }
 0x26a   :  { %1236 = vst [vmem:[#allocation2 + $0x168] sm:$0xff] %v1124_v58  ;;  %1237 = vst [vmem:[#allocation2 + $0x170] sm:$0xff] %v1125_v56  ;;  %v1172_v58 = vadd.f32 %v1067_v29, %v5452_v30  ;;  %v1173_v56 = vadd.f32 %v1067_v29, %v5453_v27  ;;  %v1176_v20 = vadd.f32 %v1067_v29, %v4520_v50  ;;  %v5460_v25 = vld [vmem:[#allocation27_spill] sm:$0xff]  ;;  %v2204_v50 = vld [vmem:[%s5127_s2 + $0x68] sm:$0xff] }
 0x26b   :  { %1238 = vst [vmem:[#allocation2 + $0x178] sm:$0xff] %v1126_v2  ;;  %1239 = vst.msk [vmem:[#allocation2 + $0x180] sm:$0xff] %vm186_vm0, %v1127_v40  ;;  %v1175_v2 = vadd.f32 %v1067_v29, %v5455_v51  ;;  %v5456_v40 = vld [vmem:[#allocation30_spill] sm:$0xff]  ;;  %v1153_v39 = vadd.f32 %v1052_v11, %v5460_v25  ;;  %v1077_v3 = vpop.permute.xlu0 %1076  ;;  %v5463_v33 = vld [vmem:[#allocation73_spill] sm:$0xff]  ;;  %v1062_v35 = vpop.permute.xlu1 %1061 }
 0x26c   :  { %1268 = vst [vmem:[#allocation2 + $0x268] sm:$0xff] %v1156_v36  ;;  %1269 = vst [vmem:[#allocation2 + $0x270] sm:$0xff] %v1157_v45  ;;  %v1149_v36 = vadd.f32 %v1052_v11, %v5456_v40  ;;  %v1150_v45 = vadd.f32 %v1052_v11, %v5457_v5  ;;  %v5464_v4 = vld [vmem:[#allocation53_spill] sm:$0xff]  ;;  %v5468_v29 = vld [vmem:[#allocation63_spill] sm:$0xff] }
 0x26d   :  { %1270 = vst [vmem:[#allocation2 + $0x278] sm:$0xff] %v1158_v42  ;;  %1271 = vst [vmem:[#allocation2 + $0x280] sm:$0xff] %v1159_v53  ;;  %v1151_v42 = vadd.f32 %v1052_v11, %v5458_v13  ;;  %v1152_v53 = vadd.f32 %v1052_v11, %v5459_v34  ;;  %v1188_v38 = vadd.f32 %v1077_v3, %v5468_v29  ;;  %v5475_v23 = vld [vmem:[#allocation41_spill] sm:$0xff]  ;;  %v5477_v40 = vld [vmem:[#allocation51_spill] sm:$0xff] }
 0x26e   :  { %1272 = vst [vmem:[#allocation2 + $0x288] sm:$0xff] %v1160_v21  ;;  %1273 = vst [vmem:[#allocation2 + $0x290] sm:$0xff] %v1161_v43  ;;  %v4962_v21 = vmul.f32 %v2204_v50, %v4618_v54  ;;  %v5461_v43 = vld [vmem:[#allocation31_spill] sm:$0xff]  ;;  %v1184_v54 = vadd.f32 %v1077_v3, %v5464_v4  ;;  %v2206_v5 = vld [vmem:[%s5127_s2 + $0xa8] sm:$0xff] }
 0x26f   :  { %1274 = vst.msk [vmem:[#allocation2 + $0x298] sm:$0xff] %vm186_vm0, %v1162_v10  ;;  %1247 = vst [vmem:[#allocation2 + $0x1c0] sm:$0xff] %v1135_v12  ;;  %v1154_v16 = vadd.f32 %v1052_v11, %v5461_v43  ;;  %v5462_v10 = vld [vmem:[#allocation35_spill] sm:$0xff]  ;;  %v1543_v51 = vpop.permute.xlu0 %1542  ;;  %v2207_v13 = vld [vmem:[%s5127_s2 + $0x78] sm:$0xff] }
 0x270   :  { %1248 = vst [vmem:[#allocation2 + $0x1c8] sm:$0xff] %v1136_v19  ;;  %1249 = vst [vmem:[#allocation2 + $0x1d0] sm:$0xff] %v1137_v60  ;;  %v1155_v14 = vadd.f32 %v1052_v11, %v5462_v10  ;;  %v2205_v12 = vld [vmem:[%s5127_s2 + $0x70] sm:$0xff]  ;;  %v5465_v60 = vld [vmem:[#allocation61_spill] sm:$0xff]  ;;  %v1072_v10 = vpop.permute.xlu1 %1071 }
 0x271   :  { %1250 = vst [vmem:[#allocation2 + $0x1d8] sm:$0xff] %v1138_v32  ;;  %1251 = vst [vmem:[#allocation2 + $0x1e0] sm:$0xff] %v1139_v18  ;;  %v4971_v19 = vmul.f32 %v2205_v12, %v5463_v33  ;;  %v1185_v7 = vadd.f32 %v1077_v3, %v5465_v60  ;;  %v5466_v32 = vld [vmem:[#allocation62_spill] sm:$0xff]  ;;  %v5467_v18 = vld [vmem:[#allocation64_spill] sm:$0xff] }
 0x272   :  { %1252 = vst [vmem:[#allocation2 + $0x1e8] sm:$0xff] %v1140_v22  ;;  %1253 = vst.msk [vmem:[#allocation2 + $0x1f0] sm:$0xff] %vm186_vm0, %v1141_v8  ;;  %v1186_v44 = vadd.f32 %v1077_v3, %v5466_v32  ;;  %v1187_v1 = vadd.f32 %v1077_v3, %v5467_v18  ;;  %v5469_v22 = vld [vmem:[#allocation65_spill] sm:$0xff]  ;;  %v5470_v8 = vld [vmem:[#allocation66_spill] sm:$0xff] }
 0x273   :  { %1282 = vst [vmem:[#allocation2 + $0x2d8] sm:$0xff] %v1170_v63  ;;  %1283 = vst [vmem:[#allocation2 + $0x2e0] sm:$0xff] %v1171_v46  ;;  %v1189_v9 = vadd.f32 %v1077_v3, %v5469_v22  ;;  %v1190_v26 = vadd.f32 %v1077_v3, %v5470_v8  ;;  %v5471_v63 = vld [vmem:[#allocation43_spill] sm:$0xff]  ;;  %v5472_v46 = vld [vmem:[#allocation49_spill] sm:$0xff] }
 0x274   :  { %1284 = vst [vmem:[#allocation2 + $0x2e8] sm:$0xff] %v1172_v58  ;;  %1285 = vst [vmem:[#allocation2 + $0x2f0] sm:$0xff] %v1173_v56  ;;  %v1163_v59 = vadd.f32 %v1062_v35, %v5471_v63  ;;  %v1164_v30 = vadd.f32 %v1062_v35, %v5472_v46  ;;  %v5473_v58 = vld [vmem:[#allocation44_spill] sm:$0xff]  ;;  %v5474_v56 = vld [vmem:[#allocation39_spill] sm:$0xff] }
 0x275   :  { %1286 = vst [vmem:[#allocation2 + $0x2f8] sm:$0xff] %v1174_v49  ;;  %1287 = vst [vmem:[#allocation2 + $0x300] sm:$0xff] %v1175_v2  ;;  %v1165_v27 = vadd.f32 %v1062_v35, %v5473_v58  ;;  %v1166_v11 = vadd.f32 %v1062_v35, %v5474_v56  ;;  %v1167_v49 = vadd.f32 %v1062_v35, %v5475_v23  ;;  %v5476_v2 = vld [vmem:[#allocation42_spill] sm:$0xff]  ;;  %v5478_v34 = vld [vmem:[#allocation67_spill] sm:$0xff] }
 0x276   :  { %1288 = vst.msk [vmem:[#allocation2 + $0x308] sm:$0xff] %vm186_vm0, %v1176_v20  ;;  %1261 = vst [vmem:[#allocation2 + $0x230] sm:$0xff] %v1149_v36  ;;  %v1168_v20 = vadd.f32 %v1062_v35, %v5476_v2  ;;  %v1169_v36 = vadd.f32 %v1062_v35, %v5477_v40  ;;  %v5479_v25 = vld [vmem:[#allocation68_spill] sm:$0xff]  ;;  %v5480_v50 = vld [vmem:[#allocation69_spill] sm:$0xff] }
 0x277   :  { %1262 = vst [vmem:[#allocation2 + $0x238] sm:$0xff] %v1150_v45  ;;  %1263 = vst [vmem:[#allocation2 + $0x240] sm:$0xff] %v1151_v42  ;;  %v4993_v45 = vmul.f32 %v2206_v5, %v4746_v28  ;;  %v4999_v42 = vmul.f32 %v2207_v13, %v5463_v33  ;;  %v1564_v3 = vadd.f32 %v1543_v51, %v5480_v50  ;;  %v5481_v43 = vld [vmem:[#allocation70_spill] sm:$0xff]  ;;  %v5483_v4 = vld [vmem:[#allocation72_spill] sm:$0xff] }
 0x278   :  { %1264 = vst [vmem:[#allocation2 + $0x248] sm:$0xff] %v1152_v53  ;;  %1265 = vst [vmem:[#allocation2 + $0x250] sm:$0xff] %v1153_v39  ;;  %v1562_v53 = vadd.f32 %v1543_v51, %v5478_v34  ;;  %v1563_v39 = vadd.f32 %v1543_v51, %v5479_v25  ;;  %v5484_v60 = vld [vmem:[#allocation77_spill] sm:$0xff]  ;;  %v5485_v32 = vld [vmem:[#allocation52_spill] sm:$0xff] }
 0x279   :  { %1266 = vst [vmem:[#allocation2 + $0x258] sm:$0xff] %v1154_v16  ;;  %1267 = vst.msk [vmem:[#allocation2 + $0x260] sm:$0xff] %vm186_vm0, %v1155_v14  ;;  %v1565_v16 = vadd.f32 %v1543_v51, %v5481_v43  ;;  %v5482_v14 = vld [vmem:[#allocation71_spill] sm:$0xff]  ;;  %v5486_v18 = vld [vmem:[#allocation56_spill] sm:$0xff] }
 0x27a   :  { %1296 = vst [vmem:[#allocation2 + $0x348] sm:$0xff] %v1184_v54  ;;  %1297 = vst [vmem:[#allocation2 + $0x350] sm:$0xff] %v1185_v7  ;;  %v1566_v12 = vadd.f32 %v1543_v51, %v5482_v14  ;;  %v1567_v54 = vadd.f32 %v1543_v51, %v5483_v4  ;;  %v1568_v7 = vadd.f32 %v1543_v51, %v5484_v60  ;;  %v5487_v35 = vld [vmem:[#allocation58_spill] sm:$0xff]  ;;  %v5490_v63 = vld [vmem:[#allocation57_spill] sm:$0xff] }
 0x27b   :  { %1298 = vst [vmem:[#allocation2 + $0x358] sm:$0xff] %v1186_v44  ;;  %1299 = vst [vmem:[#allocation2 + $0x360] sm:$0xff] %v1187_v1  ;;  %v1177_v44 = vadd.f32 %v1072_v10, %v5485_v32  ;;  %v1178_v1 = vadd.f32 %v1072_v10, %v5486_v18  ;;  %v1179_v29 = vadd.f32 %v1072_v10, %v5487_v35  ;;  %v5491_v46 = vld [vmem:[#allocation59_spill] sm:$0xff]  ;;  %v2209_v56 = vld [vmem:[%s5127_s2 + $0xb8] sm:$0xff] }
 0x27c   :  { %1300 = vst [vmem:[#allocation2 + $0x368] sm:$0xff] %v1188_v38  ;;  %1301 = vst [vmem:[#allocation2 + $0x370] sm:$0xff] %v1189_v9  ;;  %v5488_v38 = vld [vmem:[#allocation60_spill] sm:$0xff]  ;;  %v5489_v9 = vld [vmem:[#allocation54_spill] sm:$0xff] }
 0x27d   :  { %1302 = vst.msk [vmem:[#allocation2 + $0x378] sm:$0xff] %vm186_vm0, %v1190_v26  ;;  %1275 = vst [vmem:[#allocation2 + $0x2a0] sm:$0xff] %v1163_v59  ;;  %v1180_v22 = vadd.f32 %v1072_v10, %v5488_v38  ;;  %v1181_v8 = vadd.f32 %v1072_v10, %v5489_v9  ;;  %v1553_v26 = vpop.permute.xlu0 %1552  ;;  %v1182_v59 = vadd.f32 %v1072_v10, %v5490_v63  ;;  %v2208_v58 = vld [vmem:[%s5127_s2 + $0xb0] sm:$0xff]  ;;  %v5492_v40 = vld [vmem:[#allocation89_spill] sm:$0xff] }
 0x27e   :  { %1276 = vst [vmem:[#allocation2 + $0x2a8] sm:$0xff] %v1164_v30  ;;  %1277 = vst [vmem:[#allocation2 + $0x2b0] sm:$0xff] %v1165_v27  ;;  %v1183_v30 = vadd.f32 %v1072_v10, %v5491_v46  ;;  %v5021_v27 = vmul.f32 %v2208_v58, %v4746_v28  ;;  %v1576_v23 = vadd.f32 %v1553_v26, %v4740_v62  ;;  %v5493_v5 = vld [vmem:[#allocation90_spill] sm:$0xff]  ;;  %v5499_v4 = vld [vmem:[#allocation80_spill] sm:$0xff] }
 0x27f   :  { %1278 = vst [vmem:[#allocation2 + $0x2b8] sm:$0xff] %v1166_v11  ;;  %1279 = vst [vmem:[#allocation2 + $0x2c0] sm:$0xff] %v1167_v49  ;;  %v5027_v11 = vmul.f32 %v2209_v56, %v4746_v28  ;;  %v1577_v49 = vadd.f32 %v1553_v26, %v4752_v0  ;;  %v1578_v51 = vadd.f32 %v1553_v26, %v4761_v61  ;;  %v5494_v62 = vld [vmem:[#allocation74_spill] sm:$0xff]  ;;  %v5495_v61 = vld [vmem:[#allocation75_spill] sm:$0xff] }
 0x280   :  { %1280 = vst [vmem:[#allocation2 + $0x2c8] sm:$0xff] %v1168_v20  ;;  %1281 = vst.msk [vmem:[#allocation2 + $0x2d0] sm:$0xff] %vm186_vm0, %v1169_v36  ;;  %v1579_v2 = vadd.f32 %v1553_v26, %v4767_v48  ;;  %v1538_v20 = vpop.permute.xlu1 %1537  ;;  %v1580_v36 = vadd.f32 %v1553_v26, %v5492_v40  ;;  %v1581_v13 = vadd.f32 %v1553_v26, %v5493_v5  ;;  %v2211_v14 = vld [vmem:[%s5127_s2 + $0xc8] sm:$0xff]  ;;  %v5500_v60 = vld [vmem:[#allocation81_spill] sm:$0xff] }
 0x281   :  { %1590 = vst [vmem:[#allocation2 + $0x3b8] sm:$0xff] %v1562_v53  ;;  %1591 = vst [vmem:[#allocation2 + $0x3c0] sm:$0xff] %v1563_v39  ;;  %v1582_v34 = vadd.f32 %v1553_v26, %v4803_v31  ;;  %v1555_v0 = vadd.f32 %v1538_v20, %v5494_v62  ;;  %v1556_v48 = vadd.f32 %v1538_v20, %v5495_v61  ;;  %v5496_v53 = vld [vmem:[#allocation76_spill] sm:$0xff]  ;;  %v5497_v39 = vld [vmem:[#allocation78_spill] sm:$0xff]  ;;  %v1851_v31 = vpop.permute.xlu0 %1850 }
 0x282   :  { %1592 = vst [vmem:[#allocation2 + $0x3c8] sm:$0xff] %v1564_v3  ;;  %1593 = vst [vmem:[#allocation2 + $0x3d0] sm:$0xff] %v1565_v16  ;;  %v1557_v25 = vadd.f32 %v1538_v20, %v5496_v53  ;;  %v1558_v50 = vadd.f32 %v1538_v20, %v5497_v39  ;;  %v5498_v3 = vld [vmem:[#allocation79_spill] sm:$0xff]  ;;  %v2210_v16 = vld [vmem:[%s5127_s2 + $0xc0] sm:$0xff]  ;;  %v1870_v32 = vadd.f32 %v1851_v31, %v4878_v37 }
 0x283   :  { %1594 = vst [vmem:[#allocation2 + $0x3d8] sm:$0xff] %v1566_v12  ;;  %1595 = vst [vmem:[#allocation2 + $0x3e0] sm:$0xff] %v1567_v54  ;;  %v1559_v43 = vadd.f32 %v1538_v20, %v5498_v3  ;;  %v1839_v10 = vmul.f32 %v2210_v16, %v4746_v28  ;;  %v1840_v12 = vmul.f32 %v2211_v14, %v4746_v28  ;;  %v5501_v37 = vld [vmem:[#allocation82_spill] sm:$0xff]  ;;  %v5503_v9 = vld [vmem:[#allocation84_spill] sm:$0xff] }
 0x284   :  { %1596 = vst.msk [vmem:[#allocation2 + $0x3e8] sm:$0xff] %vm186_vm0, %v1568_v7  ;;  %1289 = vst [vmem:[#allocation2 + $0x310] sm:$0xff] %v1177_v44  ;;  %v1560_v54 = vadd.f32 %v1538_v20, %v5499_v4  ;;  %v1561_v7 = vadd.f32 %v1538_v20, %v5500_v60  ;;  %v1871_v44 = vadd.f32 %v1851_v31, %v4884_v41  ;;  %v1548_v35 = vpop.permute.xlu1 %1547  ;;  %v5504_v26 = vld [vmem:[#allocation85_spill] sm:$0xff]  ;;  %v2213_v46 = vld [vmem:[%s5127_s2 + $0xd8] sm:$0xff] }
 0x285   :  { %1290 = vst [vmem:[#allocation2 + $0x318] sm:$0xff] %v1178_v1  ;;  %1291 = vst [vmem:[#allocation2 + $0x320] sm:$0xff] %v1179_v29  ;;  %v1872_v18 = vadd.f32 %v1851_v31, %v4906_v6  ;;  %v1873_v1 = vadd.f32 %v1851_v31, %v4912_v52  ;;  %v1874_v29 = vadd.f32 %v1851_v31, %v4934_v47  ;;  %v5502_v6 = vld [vmem:[#allocation83_spill] sm:$0xff]  ;;  %v5505_v47 = vld [vmem:[#allocation86_spill] sm:$0xff]  ;;  %v1861_v58 = vpop.permute.xlu0 %1860 }
 0x286   :  { %1292 = vst [vmem:[#allocation2 + $0x328] sm:$0xff] %v1180_v22  ;;  %1293 = vst [vmem:[#allocation2 + $0x330] sm:$0xff] %v1181_v8  ;;  %v1875_v38 = vadd.f32 %v1851_v31, %v4940_v57  ;;  %v1876_v22 = vadd.f32 %v1851_v31, %v4962_v21  ;;  %v1569_v41 = vadd.f32 %v1548_v35, %v5501_v37  ;;  %v2212_v57 = vld [vmem:[%s5127_s2 + $0xd0] sm:$0xff]  ;;  %v2218_v16 = vld [vmem:[%s5127_s2 + $0xa0] sm:$0xff] }
 0x287   :  { %1294 = vst [vmem:[#allocation2 + $0x338] sm:$0xff] %v1182_v59  ;;  %1295 = vst.msk [vmem:[#allocation2 + $0x340] sm:$0xff] %vm186_vm0, %v1183_v30  ;;  %v1570_v52 = vadd.f32 %v1548_v35, %v5502_v6  ;;  %v1571_v8 = vadd.f32 %v1548_v35, %v5503_v9  ;;  %v1572_v63 = vadd.f32 %v1548_v35, %v5504_v26  ;;  %v5506_v56 = vld [vmem:[#allocation87_spill] sm:$0xff] }
 0x288   :  { %1604 = vst [vmem:[#allocation2 + $0x428] sm:$0xff] %v1576_v23  ;;  %1605 = vst [vmem:[#allocation2 + $0x430] sm:$0xff] %v1577_v49  ;;  %v1573_v59 = vadd.f32 %v1548_v35, %v5505_v47  ;;  %v1841_v21 = vmul.f32 %v2212_v57, %v4746_v28  ;;  %v1842_v30 = vmul.f32 %v2213_v46, %v4746_v28  ;;  %v5507_v49 = vld [vmem:[#allocation88_spill] sm:$0xff]  ;;  %v1846_v5 = vpop.permute.xlu1 %1845  ;;  %v5508_v62 = vld [vmem:[#allocation91_spill] sm:$0xff] }
 0x289   :  { %1606 = vst [vmem:[#allocation2 + $0x438] sm:$0xff] %v1578_v51  ;;  %1607 = vst [vmem:[#allocation2 + $0x440] sm:$0xff] %v1579_v2  ;;  %v1574_v23 = vadd.f32 %v1548_v35, %v5506_v56  ;;  %v1575_v51 = vadd.f32 %v1548_v35, %v5507_v49  ;;  %v1884_v2 = vadd.f32 %v1861_v58, %v4993_v45  ;;  %v5509_v45 = vld [vmem:[#allocation92_spill] sm:$0xff] }
 0x28a   :  { %1608 = vst [vmem:[#allocation2 + $0x448] sm:$0xff] %v1580_v36  ;;  %1609 = vst [vmem:[#allocation2 + $0x450] sm:$0xff] %v1581_v13  ;;  %v1885_v20 = vadd.f32 %v1861_v58, %v5021_v27  ;;  %v1886_v40 = vadd.f32 %v1861_v58, %v5027_v11  ;;  %v1887_v36 = vadd.f32 %v1861_v58, %v1839_v10  ;;  %v5510_v11 = vld [vmem:[#allocation93_spill] sm:$0xff] }
 0x28b   :  { %1610 = vst.msk [vmem:[#allocation2 + $0x458] sm:$0xff] %vm186_vm0, %v1582_v34  ;;  %1583 = vst [vmem:[#allocation2 + $0x380] sm:$0xff] %v1555_v0  ;;  %v1888_v13 = vadd.f32 %v1861_v58, %v1840_v12  ;;  %v1889_v28 = vadd.f32 %v1861_v58, %v1841_v21  ;;  %v1890_v34 = vadd.f32 %v1861_v58, %v1842_v30 }
 0x28c   :  { %1584 = vst [vmem:[#allocation2 + $0x388] sm:$0xff] %v1556_v48  ;;  %1585 = vst [vmem:[#allocation2 + $0x390] sm:$0xff] %v1557_v25  ;;  %v1863_v0 = vadd.f32 %v1846_v5, %v5508_v62  ;;  %v1864_v27 = vadd.f32 %v1846_v5, %v5509_v45  ;;  %v1865_v61 = vadd.f32 %v1846_v5, %v5510_v11  ;;  %v1856_v14 = vpop.permute.xlu1 %1855 }
 0x28d   :  { %1586 = vst [vmem:[#allocation2 + $0x398] sm:$0xff] %v1558_v50  ;;  %1587 = vst [vmem:[#allocation2 + $0x3a0] sm:$0xff] %v1559_v43  ;;  %v1866_v48 = vadd.f32 %v1846_v5, %v4822_v17  ;;  %v1867_v53 = vadd.f32 %v1846_v5, %v4828_v15  ;;  %v1868_v25 = vadd.f32 %v1846_v5, %v4850_v24  ;;  %v2214_v50 = vld [vmem:[%s5127_s2 + $0x80] sm:$0xff]  ;;  %v2215_v17 = vld [vmem:[%s5127_s2 + $0x88] sm:$0xff] }
 0x28e   :  { %1588 = vst [vmem:[#allocation2 + $0x3a8] sm:$0xff] %v1560_v54  ;;  %1589 = vst.msk [vmem:[#allocation2 + $0x3b0] sm:$0xff] %vm186_vm0, %v1561_v7  ;;  %v1869_v39 = vadd.f32 %v1846_v5, %v4856_v55  ;;  %v1831_v3 = vmul.f32 %v2214_v50, %v5463_v33  ;;  %v1832_v15 = vmul.f32 %v2215_v17, %v5463_v33  ;;  %v2216_v24 = vld [vmem:[%s5127_s2 + $0x90] sm:$0xff]  ;;  %v2217_v43 = vld [vmem:[%s5127_s2 + $0x98] sm:$0xff]  ;;  %s2219_s2 = scalar_lea.vmem %s1925_s22, 21504 }
 0x28f   :  { %1898 = vst [vmem:[#allocation2 + $0x498] sm:$0xff] %v1870_v32  ;;  %1899 = vst [vmem:[#allocation2 + $0x4a0] sm:$0xff] %v1871_v44  ;;  %v1833_v55 = vmul.f32 %v2216_v24, %v5463_v33  ;;  %v1834_v31 = vmul.f32 %v2217_v43, %v5463_v33  ;;  %v1835_v10 = vmul.f32 %v2218_v16, %v5463_v33  ;;  %p2220_p0 = scmp.ne.s32.totalorder %s1925_s22, %s2219_s2  ;;  %p2225_p2 = scmp.lt.s32.totalorder %s2219_s2, %s2219_s2 }
 0x290   :  { %1900 = vst [vmem:[#allocation2 + $0x4a8] sm:$0xff] %v1872_v18  ;;  %1901 = vst [vmem:[#allocation2 + $0x4b0] sm:$0xff] %v1873_v1  ;;  %v1877_v12 = vadd.f32 %v1856_v14, %v4971_v19  ;;  %v1878_v4 = vadd.f32 %v1856_v14, %v4999_v42  ;;  %v1879_v54 = vadd.f32 %v1856_v14, %v1831_v3 }
 0x291   :  { %1902 = vst [vmem:[#allocation2 + $0x4b8] sm:$0xff] %v1874_v29  ;;  %1903 = vst [vmem:[#allocation2 + $0x4c0] sm:$0xff] %v1875_v38  ;;  %v1880_v60 = vadd.f32 %v1856_v14, %v1832_v15  ;;  %v1881_v7 = vadd.f32 %v1856_v14, %v1833_v55  ;;  %v1882_v32 = vadd.f32 %v1856_v14, %v1834_v31  ;;  %p2226_p3 = por %p2225_p2, %p2224_p1 }
 0x292   :  { %1904 = vst.msk [vmem:[#allocation2 + $0x4c8] sm:$0xff] %vm186_vm0, %v1876_v22  ;;  %1597 = vst [vmem:[#allocation2 + $0x3f0] sm:$0xff] %v1569_v41  ;;  %v1883_v44 = vadd.f32 %v1856_v14, %v1835_v10 }
 0x293   :  { %1598 = vst [vmem:[#allocation2 + $0x3f8] sm:$0xff] %v1570_v52  ;;  %1599 = vst [vmem:[#allocation2 + $0x400] sm:$0xff] %v1571_v8  ;;  %p2227_p4 = pnand %p2226_p3, %p2220_p0 }
 0x294   :  { %1600 = vst [vmem:[#allocation2 + $0x408] sm:$0xff] %v1572_v63  ;;  %1601 = vst [vmem:[#allocation2 + $0x410] sm:$0xff] %v1573_v59 }
 0x295   :  { %1602 = vst [vmem:[#allocation2 + $0x418] sm:$0xff] %v1574_v23  ;;  %1603 = vst.msk [vmem:[#allocation2 + $0x420] sm:$0xff] %vm186_vm0, %v1575_v51 }
 0x296   :  { %1912 = vst [vmem:[#allocation2 + $0x508] sm:$0xff] %v1884_v2  ;;  %1913 = vst [vmem:[#allocation2 + $0x510] sm:$0xff] %v1885_v20 }
 0x297   :  { %1914 = vst [vmem:[#allocation2 + $0x518] sm:$0xff] %v1886_v40  ;;  %1915 = vst [vmem:[#allocation2 + $0x520] sm:$0xff] %v1887_v36 }
 0x298   :  { %1916 = vst [vmem:[#allocation2 + $0x528] sm:$0xff] %v1888_v13  ;;  %1917 = vst [vmem:[#allocation2 + $0x530] sm:$0xff] %v1889_v28 }
 0x299   :  { %1918 = vst.msk [vmem:[#allocation2 + $0x538] sm:$0xff] %vm186_vm0, %v1890_v34  ;;  %1891 = vst [vmem:[#allocation2 + $0x460] sm:$0xff] %v1863_v0 }
 0x29a   :  { %1892 = vst [vmem:[#allocation2 + $0x468] sm:$0xff] %v1864_v27  ;;  %1893 = vst [vmem:[#allocation2 + $0x470] sm:$0xff] %v1865_v61 }
 0x29b   :  { %1894 = vst [vmem:[#allocation2 + $0x478] sm:$0xff] %v1866_v48  ;;  %1895 = vst [vmem:[#allocation2 + $0x480] sm:$0xff] %v1867_v53 }
 0x29c   :  { %1896 = vst [vmem:[#allocation2 + $0x488] sm:$0xff] %v1868_v25  ;;  %1897 = vst.msk [vmem:[#allocation2 + $0x490] sm:$0xff] %vm186_vm0, %v1869_v39 }
 0x29d   :  { %1905 = vst [vmem:[#allocation2 + $0x4d0] sm:$0xff] %v1877_v12  ;;  %1906 = vst [vmem:[#allocation2 + $0x4d8] sm:$0xff] %v1878_v4 }
 0x29e   :  { %1907 = vst [vmem:[#allocation2 + $0x4e0] sm:$0xff] %v1879_v54  ;;  %1908 = vst [vmem:[#allocation2 + $0x4e8] sm:$0xff] %v1880_v60 }
 0x29f   :  { %1909 = vst [vmem:[#allocation2 + $0x4f0] sm:$0xff] %v1881_v7  ;;  %1910 = vst [vmem:[#allocation2 + $0x4f8] sm:$0xff] %v1882_v32 }
 0x2a0   :  { %1911 = vst.msk [vmem:[#allocation2 + $0x500] sm:$0xff] %vm186_vm0, %v1883_v44 }
 0x2a1   :  { %2230 = shalt.err (!%p2227_p4)
}
 0x2a2   :  { %s2231_s6 = scalar_lea.hbm %s5130_s5, 21504 }
 0x2a3   :  { %p2232_p5 = scmp.ne.s32.totalorder %s5130_s5, %s2231_s6  ;;  %p2235_p6 = scmp.lt.u32.totalorder %s2231_s6, %s5130_s5 }
 0x2a5   :  { %p2237_p7 = pnand %p2235_p6, %p2232_p5 }
 0x2a7   :  { %2240 = shalt.err (!%p2237_p7)
}
 0x2a8   :  { %s2245_s8 = smov 896   ;;  %s2246_s9 = smov 56  }
 0x2a9   :  { %1930 = dma.vmem_to_hbm [thread:$0]  %s1925_s22, 21504, %s5130_s5, [#allocation3], %s2245_s8, %s2245_s8, %s2246_s9  }
 0x2aa   :  { %2241 = dma.done.wait [#allocation3], 21504  }
 0x2ab   :  { %2242 = vsyncadd [#allocation3], 4294945792 }
 0x2ac   :  { %1934 = vsyncpa [#allocation3], 1 }

</bundles_post_ra>
